<compile_context>
chip_gen: v5e
topology: v5e:2x2
jax: 0.10.0
libtpu: 0.0.40
codegen_flags: <defaults>
</compile_context>

<pallas_src>
import functools
import math

import jax
import jax.numpy as jnp
from jax import lax
from jax.experimental import pallas as pl
from jax.experimental.pallas import tpu as pltpu

EMBED_DIM = 32
NUM_HEADS = 4
SEQ_LEN = 8
BATCH = 2
LN_EPS = 1e-5

_HIGHEST = lax.Precision.HIGHEST

# 2D dimension numbers: "A @ B.T" (contract dim 1 of both) and "A @ B".
_DN_ABT = (((1,), (1,)), ((), ()))
_DN_AB = (((1,), (0,)), ((), ()))
# Head-batched patterns (identical to the flash-attention reference kernels):
#   _DN_BMM : (h, m, c) x (h, c, n) -> (h, m, n)
#   _DN_BTT : (h, m, c) x (h, n, c) -> (h, m, n)   (contract last dims)
_DN_BMM = (((2,), (1,)), ((0,), (0,)))
_DN_BTT = (((2,), (2,)), ((0,), (0,)))


def _residual_attention_kernel(x_ref, w_ref, bcol_ref, vrow_ref, o_ref, *, num_heads):
    S, B, E = x_ref.shape
    H = num_heads
    Dh = E // H

    w_in = w_ref[0:3 * E, :]        # (3E, E) torch-layout in_proj (Wq rows pre-scaled)
    w_out = w_ref[3 * E:4 * E, :]   # (E, E)  torch-layout out_proj
    b_col = bcol_ref[...]           # (3E, 1) in_proj bias (q part pre-scaled)
    b_out = vrow_ref[0:1, :]        # (1, E)  out_proj bias
    gamma = vrow_ref[1:2, :]        # (1, E)  LayerNorm weight
    beta = vrow_ref[2:3, :]         # (1, E)  LayerNorm bias

    x = x_ref[...].astype(jnp.float32)              # (S, B, E)

    outs = []
    for b in range(B):                               # B=2, static unroll: one grid step
        xb = x[:, b, :]                              # (S, E)

        # Fused QKV in-projection, transposed orientation:
        #   (3E, E) . (S, E)^T -> (3E, S); features on sublanes, sequence on lanes.
        qkv_t = lax.dot_general(w_in, xb, _DN_ABT, precision=_HIGHEST,
                                preferred_element_type=jnp.float32) + b_col

        # Free (sublane-tile-aligned) head split: rows are [q|k|v] x head x Dh.
        qkv_h = qkv_t.reshape(3, H, Dh, S)
        q_hqd = jnp.transpose(qkv_h[0], (0, 2, 1))   # (H, S, Dh)
        k_hdk = qkv_h[1]                             # (H, Dh, S)
        v_hdk = qkv_h[2]                             # (H, Dh, S)

        # scores[h, q, k]; 1/sqrt(Dh) already folded into Wq / bq.
        scores = lax.dot_general(q_hqd, k_hdk, _DN_BMM, precision=_HIGHEST,
                                 preferred_element_type=jnp.float32)   # (H, S, S)
        m = jnp.max(scores, axis=-1, keepdims=True)
        p = jnp.exp(scores - m)
        p = p / jnp.sum(p, axis=-1, keepdims=True)   # exact softmax (stays inside 1e-4)

        # ctx^T[h, d, q] = sum_k v[h, d, k] * p[h, q, k]
        ctx_t = lax.dot_general(v_hdk, p, _DN_BTT, precision=_HIGHEST,
                                preferred_element_type=jnp.float32)    # (H, Dh, S)
        ctx_es = ctx_t.reshape(E, S)                 # free head merge -> (E, S)

        # Output projection fused over all heads: (E, E) . (E, S) -> (E, S).
        attn_t = lax.dot_general(w_out, ctx_es, _DN_AB, precision=_HIGHEST,
                                 preferred_element_type=jnp.float32)
        attn = attn_t.T + b_out                      # (S, E)

        # Residual + LayerNorm (biased variance, eps=1e-5 -- torch semantics).
        y = xb + attn
        mean = jnp.mean(y, axis=-1, keepdims=True)
        c = y - mean
        var = jnp.mean(c * c, axis=-1, keepdims=True)
        outs.append(c * lax.rsqrt(var + LN_EPS) * gamma + beta)

    o_ref[...] = jnp.stack(outs, axis=1).astype(o_ref.dtype)


def pack_params(params, *, num_heads=NUM_HEADS):
    """One-time host-side packing: 7 torch-layout tensors -> 3 kernel refs."""
    E = params["ln_weight"].shape[0]
    Dh = E // num_heads
    scale = 1.0 / math.sqrt(Dh)
    w_in = jnp.concatenate([params["in_proj_weight"][:E] * scale,
                            params["in_proj_weight"][E:]], axis=0)        # (3E, E)
    w_all = jnp.concatenate([w_in, params["out_proj_weight"]], axis=0)    # (4E, E)
    b_in = jnp.concatenate([params["in_proj_bias"][:E] * scale,
                            params["in_proj_bias"][E:]], axis=0)
    b_col = b_in.reshape(3 * E, 1)                                        # (3E, 1)
    vrows = jnp.stack([params["out_proj_bias"], params["ln_weight"],
                       params["ln_bias"]], axis=0)                        # (3, E)
    return w_all, b_col, vrows


def residual_attention(x_sbe, padding_mask, packed_params, *, num_heads=NUM_HEADS):
    """x_sbe: (S, B, E), seq-first like nn.MultiheadAttention(batch_first=False)."""
    del padding_mask  # the reference forward never passes it to the attention call
    S, B, E = x_sbe.shape
    w_all, b_col, vrows = packed_params
    kernel = functools.partial(_residual_attention_kernel, num_heads=num_heads)
    vmem = lambda: pl.BlockSpec(memory_space=pltpu.MemorySpace.VMEM)
    return pl.pallas_call(
        kernel,
        out_shape=jax.ShapeDtypeStruct((S, B, E), x_sbe.dtype),
        in_specs=[vmem(), vmem(), vmem(), vmem()],
        out_specs=vmem(),
    )(x_sbe, w_all, b_col, vrows)


def _reference(x_sbe, params, num_heads):
    """Pure-JAX reference mirroring torch.nn.MultiheadAttention + LayerNorm."""
    S, B, E = x_sbe.shape
    Dh = E // num_heads
    x = jnp.transpose(x_sbe, (1, 0, 2))                                   # (B, S, E)
    qkv = jnp.einsum("bse,fe->bsf", x, params["in_proj_weight"],
                     precision=_HIGHEST) + params["in_proj_bias"]
    q, k, v = jnp.split(qkv, 3, axis=-1)

    def split_heads(t):
        return t.reshape(B, S, num_heads, Dh).transpose(0, 2, 1, 3)       # (B,H,S,Dh)

    qh, kh, vh = split_heads(q), split_heads(k), split_heads(v)
    scores = jnp.einsum("bhqd,bhkd->bhqk", qh, kh,
                        precision=_HIGHEST) / math.sqrt(Dh)
    p = jax.nn.softmax(scores, axis=-1)
    ctx = jnp.einsum("bhqk,bhkd->bhqd", p, vh, precision=_HIGHEST)
    ctx = ctx.transpose(0, 2, 1, 3).reshape(B, S, E)
    attn = jnp.einsum("bse,fe->bsf", ctx, params["out_proj_weight"],
                      precision=_HIGHEST) + params["out_proj_bias"]
    y = x + attn
    mean = y.mean(-1, keepdims=True)
    var = ((y - mean) ** 2).mean(-1, keepdims=True)
    yn = (y - mean) / jnp.sqrt(var + LN_EPS)
    out = yn * params["ln_weight"] + params["ln_bias"]
    return jnp.transpose(out, (1, 0, 2))


def make_params(key, embed_dim):
    k1, k2, k3, k4 = jax.random.split(key, 4)
    s = 1.0 / math.sqrt(embed_dim)
    return {
        "in_proj_weight": jax.random.uniform(k1, (3 * embed_dim, embed_dim),
                                             jnp.float32, -s, s),
        "in_proj_bias": jax.random.uniform(k2, (3 * embed_dim,), jnp.float32, -s, s),
        "out_proj_weight": jax.random.uniform(k3, (embed_dim, embed_dim),
                                              jnp.float32, -s, s),
        "out_proj_bias": jax.random.uniform(k4, (embed_dim,), jnp.float32, -s, s),
        "ln_weight": jnp.ones((embed_dim,), jnp.float32),
        "ln_bias": jnp.zeros((embed_dim,), jnp.float32),
    }


if __name__ == "__main__":
    key = jax.random.PRNGKey(0)
    kx, kp = jax.random.split(key)

    x = jax.random.normal(kx, (SEQ_LEN, BATCH, EMBED_DIM), jnp.float32)   # (S, B, E)
    padding_mask = jnp.zeros((BATCH, SEQ_LEN), jnp.bool_)                 # unused
    params = make_params(kp, EMBED_DIM)
    packed = pack_params(params, num_heads=NUM_HEADS)                     # host-side, one-time

    # TODO(synk): attention dropout (dropout=0.1 in __init__) is a no-op in eval mode;
    # not implemented in the kernel.
    out = residual_attention(x, padding_mask, packed, num_heads=NUM_HEADS)
    out = jax.block_until_ready(out)

    ref = _reference(x, params, NUM_HEADS)
    assert out.shape == (SEQ_LEN, BATCH, EMBED_DIM)
    max_err = float(jnp.max(jnp.abs(out - ref)))
    assert jnp.allclose(out, ref, atol=1e-4, rtol=1e-4), (
        f"mismatch vs reference (max abs err {max_err:.3e})")

    print("KERNEL_OK")
</pallas_src>

<mosaic_0001>
module attributes {stable_mosaic.version = 11 : i64} {
  func.func @_residual_attention_kernel(%arg0: memref<8x2x32xf32, #tpu.memory_space<vmem>>, %arg1: memref<128x32xf32, #tpu.memory_space<vmem>>, %arg2: memref<96x1xf32, #tpu.memory_space<vmem>>, %arg3: memref<3x32xf32, #tpu.memory_space<vmem>>, %arg4: memref<8x2x32xf32, #tpu.memory_space<vmem>>) attributes {dimension_semantics = [], scalar_prefetch = 0 : i64, scratch_operands = 0 : i64, tpu.core_type = #tpu.core_type<tc>} {
    %c0 = arith.constant 0 : index
    %c0_0 = arith.constant 0 : index
    %0 = vector.load %arg1[%c0, %c0_0] : memref<128x32xf32, #tpu.memory_space<vmem>>, vector<96x32xf32>
    %c96 = arith.constant 96 : index
    %c0_1 = arith.constant 0 : index
    %1 = vector.load %arg1[%c96, %c0_1] : memref<128x32xf32, #tpu.memory_space<vmem>>, vector<32x32xf32>
    %c0_2 = arith.constant 0 : index
    %c0_3 = arith.constant 0 : index
    %2 = vector.load %arg2[%c0_2, %c0_3] : memref<96x1xf32, #tpu.memory_space<vmem>>, vector<96x1xf32>
    %c0_4 = arith.constant 0 : index
    %c0_5 = arith.constant 0 : index
    %3 = vector.load %arg3[%c0_4, %c0_5] : memref<3x32xf32, #tpu.memory_space<vmem>>, vector<1x32xf32>
    %c1 = arith.constant 1 : index
    %c0_6 = arith.constant 0 : index
    %4 = vector.load %arg3[%c1, %c0_6] : memref<3x32xf32, #tpu.memory_space<vmem>>, vector<1x32xf32>
    %c2 = arith.constant 2 : index
    %c0_7 = arith.constant 0 : index
    %5 = vector.load %arg3[%c2, %c0_7] : memref<3x32xf32, #tpu.memory_space<vmem>>, vector<1x32xf32>
    %c0_8 = arith.constant 0 : index
    %c0_9 = arith.constant 0 : index
    %c0_10 = arith.constant 0 : index
    %6 = vector.load %arg0[%c0_8, %c0_9, %c0_10] : memref<8x2x32xf32, #tpu.memory_space<vmem>>, vector<8x2x32xf32>
    %7 = vector.extract_strided_slice %6 {offsets = [0, 0, 0], sizes = [8, 1, 32], strides = [1, 1, 1]} : vector<8x2x32xf32> to vector<8x1x32xf32>
    %8 = vector.shape_cast %7 : vector<8x1x32xf32> to vector<8x32xf32>
    %cst = arith.constant dense<0.000000e+00> : vector<96x8xf32>
    %9 = tpu.matmul %0, %8, %cst {dimension_numbers = #tpu.dot_dimension_numbers<[1], [1], [0], [0], [0, 0, 1, 0], [], []>, precision = #tpu.contract_precision<fp32>} : vector<96x32xf32>, vector<8x32xf32>, vector<96x8xf32> -> vector<96x8xf32>
    %10 = vector.broadcast %2 : vector<96x1xf32> to vector<96x8xf32>
    %11 = arith.addf %9, %10 : vector<96x8xf32>
    %12 = vector.shape_cast %11 : vector<96x8xf32> to vector<3x4x8x8xf32>
    %13 = vector.extract_strided_slice %12 {offsets = [0, 0, 0, 0], sizes = [1, 4, 8, 8], strides = [1, 1, 1, 1]} : vector<3x4x8x8xf32> to vector<1x4x8x8xf32>
    %14 = vector.shape_cast %13 : vector<1x4x8x8xf32> to vector<4x8x8xf32>
    %15 = tpu.transpose %14, [0, 2, 1] : vector<4x8x8xf32> -> vector<4x8x8xf32>
    %16 = vector.extract_strided_slice %12 {offsets = [1, 0, 0, 0], sizes = [1, 4, 8, 8], strides = [1, 1, 1, 1]} : vector<3x4x8x8xf32> to vector<1x4x8x8xf32>
    %17 = vector.shape_cast %16 : vector<1x4x8x8xf32> to vector<4x8x8xf32>
    %18 = vector.extract_strided_slice %12 {offsets = [2, 0, 0, 0], sizes = [1, 4, 8, 8], strides = [1, 1, 1, 1]} : vector<3x4x8x8xf32> to vector<1x4x8x8xf32>
    %19 = vector.shape_cast %18 : vector<1x4x8x8xf32> to vector<4x8x8xf32>
    %cst_11 = arith.constant dense<0.000000e+00> : vector<4x8x8xf32>
    %20 = tpu.matmul %15, %17, %cst_11 {dimension_numbers = #tpu.dot_dimension_numbers<[2], [1], [1], [2], [0, 0, 0, 1, 1, 2], [0], [0]>, precision = #tpu.contract_precision<fp32>} : vector<4x8x8xf32>, vector<4x8x8xf32>, vector<4x8x8xf32> -> vector<4x8x8xf32>
    %cst_12 = arith.constant dense<0xFF800000> : vector<4x8xf32>
    %21 = vector.multi_reduction <maximumf>, %20, %cst_12 [2] : vector<4x8x8xf32> to vector<4x8xf32>
    %22 = vector.shape_cast %21 : vector<4x8xf32> to vector<4x8x1xf32>
    %23 = vector.broadcast %22 : vector<4x8x1xf32> to vector<4x8x8xf32>
    %24 = arith.subf %20, %23 : vector<4x8x8xf32>
    %25 = math.exp %24 : vector<4x8x8xf32>
    %cst_13 = arith.constant dense<0.000000e+00> : vector<4x8xf32>
    %26 = vector.multi_reduction <add>, %25, %cst_13 [2] : vector<4x8x8xf32> to vector<4x8xf32>
    %27 = vector.shape_cast %26 : vector<4x8xf32> to vector<4x8x1xf32>
    %28 = vector.broadcast %27 : vector<4x8x1xf32> to vector<4x8x8xf32>
    %29 = arith.divf %25, %28 : vector<4x8x8xf32>
    %cst_14 = arith.constant dense<0.000000e+00> : vector<4x8x8xf32>
    %30 = tpu.matmul %19, %29, %cst_14 {dimension_numbers = #tpu.dot_dimension_numbers<[2], [2], [1], [1], [0, 0, 0, 1, 1, 1], [0], [0]>, precision = #tpu.contract_precision<fp32>} : vector<4x8x8xf32>, vector<4x8x8xf32>, vector<4x8x8xf32> -> vector<4x8x8xf32>
    %31 = vector.shape_cast %30 : vector<4x8x8xf32> to vector<32x8xf32>
    %cst_15 = arith.constant dense<0.000000e+00> : vector<32x8xf32>
    %32 = tpu.matmul %1, %31, %cst_15 {dimension_numbers = #tpu.dot_dimension_numbers<[1], [0], [0], [1], [0, 0, 1, 1], [], []>, precision = #tpu.contract_precision<fp32>} : vector<32x32xf32>, vector<32x8xf32>, vector<32x8xf32> -> vector<32x8xf32>
    %33 = tpu.transpose %32, [1, 0] : vector<32x8xf32> -> vector<8x32xf32>
    %34 = vector.broadcast %3 : vector<1x32xf32> to vector<8x32xf32>
    %35 = arith.addf %33, %34 : vector<8x32xf32>
    %36 = arith.addf %8, %35 : vector<8x32xf32>
    %cst_16 = arith.constant dense<0.000000e+00> : vector<8xf32>
    %37 = vector.multi_reduction <add>, %36, %cst_16 [1] : vector<8x32xf32> to vector<8xf32>
    %38 = vector.shape_cast %37 : vector<8xf32> to vector<8x1xf32>
    %cst_17 = arith.constant 3.200000e+01 : f32
    %39 = vector.broadcast %cst_17 : f32 to vector<8x1xf32>
    %40 = arith.divf %38, %39 : vector<8x1xf32>
    %41 = vector.broadcast %40 : vector<8x1xf32> to vector<8x32xf32>
    %42 = arith.subf %36, %41 : vector<8x32xf32>
    %43 = arith.mulf %42, %42 : vector<8x32xf32>
    %cst_18 = arith.constant dense<0.000000e+00> : vector<8xf32>
    %44 = vector.multi_reduction <add>, %43, %cst_18 [1] : vector<8x32xf32> to vector<8xf32>
    %45 = vector.shape_cast %44 : vector<8xf32> to vector<8x1xf32>
    %cst_19 = arith.constant 3.200000e+01 : f32
    %46 = vector.broadcast %cst_19 : f32 to vector<8x1xf32>
    %47 = arith.divf %45, %46 : vector<8x1xf32>
    %cst_20 = arith.constant 9.99999974E-6 : f32
    %48 = vector.broadcast %cst_20 : f32 to vector<8x1xf32>
    %49 = arith.addf %47, %48 : vector<8x1xf32>
    %50 = math.rsqrt %49 : vector<8x1xf32>
    %51 = vector.broadcast %50 : vector<8x1xf32> to vector<8x32xf32>
    %52 = arith.mulf %42, %51 : vector<8x32xf32>
    %53 = vector.broadcast %4 : vector<1x32xf32> to vector<8x32xf32>
    %54 = arith.mulf %52, %53 : vector<8x32xf32>
    %55 = vector.broadcast %5 : vector<1x32xf32> to vector<8x32xf32>
    %56 = arith.addf %54, %55 : vector<8x32xf32>
    %57 = vector.extract_strided_slice %6 {offsets = [0, 1, 0], sizes = [8, 1, 32], strides = [1, 1, 1]} : vector<8x2x32xf32> to vector<8x1x32xf32>
    %58 = vector.shape_cast %57 : vector<8x1x32xf32> to vector<8x32xf32>
    %cst_21 = arith.constant dense<0.000000e+00> : vector<96x8xf32>
    %59 = tpu.matmul %0, %58, %cst_21 {dimension_numbers = #tpu.dot_dimension_numbers<[1], [1], [0], [0], [0, 0, 1, 0], [], []>, precision = #tpu.contract_precision<fp32>} : vector<96x32xf32>, vector<8x32xf32>, vector<96x8xf32> -> vector<96x8xf32>
    %60 = vector.broadcast %2 : vector<96x1xf32> to vector<96x8xf32>
    %61 = arith.addf %59, %60 : vector<96x8xf32>
    %62 = vector.shape_cast %61 : vector<96x8xf32> to vector<3x4x8x8xf32>
    %63 = vector.extract_strided_slice %62 {offsets = [0, 0, 0, 0], sizes = [1, 4, 8, 8], strides = [1, 1, 1, 1]} : vector<3x4x8x8xf32> to vector<1x4x8x8xf32>
    %64 = vector.shape_cast %63 : vector<1x4x8x8xf32> to vector<4x8x8xf32>
    %65 = tpu.transpose %64, [0, 2, 1] : vector<4x8x8xf32> -> vector<4x8x8xf32>
    %66 = vector.extract_strided_slice %62 {offsets = [1, 0, 0, 0], sizes = [1, 4, 8, 8], strides = [1, 1, 1, 1]} : vector<3x4x8x8xf32> to vector<1x4x8x8xf32>
    %67 = vector.shape_cast %66 : vector<1x4x8x8xf32> to vector<4x8x8xf32>
    %68 = vector.extract_strided_slice %62 {offsets = [2, 0, 0, 0], sizes = [1, 4, 8, 8], strides = [1, 1, 1, 1]} : vector<3x4x8x8xf32> to vector<1x4x8x8xf32>
    %69 = vector.shape_cast %68 : vector<1x4x8x8xf32> to vector<4x8x8xf32>
    %cst_22 = arith.constant dense<0.000000e+00> : vector<4x8x8xf32>
    %70 = tpu.matmul %65, %67, %cst_22 {dimension_numbers = #tpu.dot_dimension_numbers<[2], [1], [1], [2], [0, 0, 0, 1, 1, 2], [0], [0]>, precision = #tpu.contract_precision<fp32>} : vector<4x8x8xf32>, vector<4x8x8xf32>, vector<4x8x8xf32> -> vector<4x8x8xf32>
    %cst_23 = arith.constant dense<0xFF800000> : vector<4x8xf32>
    %71 = vector.multi_reduction <maximumf>, %70, %cst_23 [2] : vector<4x8x8xf32> to vector<4x8xf32>
    %72 = vector.shape_cast %71 : vector<4x8xf32> to vector<4x8x1xf32>
    %73 = vector.broadcast %72 : vector<4x8x1xf32> to vector<4x8x8xf32>
    %74 = arith.subf %70, %73 : vector<4x8x8xf32>
    %75 = math.exp %74 : vector<4x8x8xf32>
    %cst_24 = arith.constant dense<0.000000e+00> : vector<4x8xf32>
    %76 = vector.multi_reduction <add>, %75, %cst_24 [2] : vector<4x8x8xf32> to vector<4x8xf32>
    %77 = vector.shape_cast %76 : vector<4x8xf32> to vector<4x8x1xf32>
    %78 = vector.broadcast %77 : vector<4x8x1xf32> to vector<4x8x8xf32>
    %79 = arith.divf %75, %78 : vector<4x8x8xf32>
    %cst_25 = arith.constant dense<0.000000e+00> : vector<4x8x8xf32>
    %80 = tpu.matmul %69, %79, %cst_25 {dimension_numbers = #tpu.dot_dimension_numbers<[2], [2], [1], [1], [0, 0, 0, 1, 1, 1], [0], [0]>, precision = #tpu.contract_precision<fp32>} : vector<4x8x8xf32>, vector<4x8x8xf32>, vector<4x8x8xf32> -> vector<4x8x8xf32>
    %81 = vector.shape_cast %80 : vector<4x8x8xf32> to vector<32x8xf32>
    %cst_26 = arith.constant dense<0.000000e+00> : vector<32x8xf32>
    %82 = tpu.matmul %1, %81, %cst_26 {dimension_numbers = #tpu.dot_dimension_numbers<[1], [0], [0], [1], [0, 0, 1, 1], [], []>, precision = #tpu.contract_precision<fp32>} : vector<32x32xf32>, vector<32x8xf32>, vector<32x8xf32> -> vector<32x8xf32>
    %83 = tpu.transpose %82, [1, 0] : vector<32x8xf32> -> vector<8x32xf32>
    %84 = vector.broadcast %3 : vector<1x32xf32> to vector<8x32xf32>
    %85 = arith.addf %83, %84 : vector<8x32xf32>
    %86 = arith.addf %58, %85 : vector<8x32xf32>
    %cst_27 = arith.constant dense<0.000000e+00> : vector<8xf32>
    %87 = vector.multi_reduction <add>, %86, %cst_27 [1] : vector<8x32xf32> to vector<8xf32>
    %88 = vector.shape_cast %87 : vector<8xf32> to vector<8x1xf32>
    %cst_28 = arith.constant 3.200000e+01 : f32
    %89 = vector.broadcast %cst_28 : f32 to vector<8x1xf32>
    %90 = arith.divf %88, %89 : vector<8x1xf32>
    %91 = vector.broadcast %90 : vector<8x1xf32> to vector<8x32xf32>
    %92 = arith.subf %86, %91 : vector<8x32xf32>
    %93 = arith.mulf %92, %92 : vector<8x32xf32>
    %cst_29 = arith.constant dense<0.000000e+00> : vector<8xf32>
    %94 = vector.multi_reduction <add>, %93, %cst_29 [1] : vector<8x32xf32> to vector<8xf32>
    %95 = vector.shape_cast %94 : vector<8xf32> to vector<8x1xf32>
    %cst_30 = arith.constant 3.200000e+01 : f32
    %96 = vector.broadcast %cst_30 : f32 to vector<8x1xf32>
    %97 = arith.divf %95, %96 : vector<8x1xf32>
    %cst_31 = arith.constant 9.99999974E-6 : f32
    %98 = vector.broadcast %cst_31 : f32 to vector<8x1xf32>
    %99 = arith.addf %97, %98 : vector<8x1xf32>
    %100 = math.rsqrt %99 : vector<8x1xf32>
    %101 = vector.broadcast %100 : vector<8x1xf32> to vector<8x32xf32>
    %102 = arith.mulf %92, %101 : vector<8x32xf32>
    %103 = vector.broadcast %4 : vector<1x32xf32> to vector<8x32xf32>
    %104 = arith.mulf %102, %103 : vector<8x32xf32>
    %105 = vector.broadcast %5 : vector<1x32xf32> to vector<8x32xf32>
    %106 = arith.addf %104, %105 : vector<8x32xf32>
    %107 = vector.shape_cast %56 : vector<8x32xf32> to vector<8x1x32xf32>
    %108 = vector.shape_cast %106 : vector<8x32xf32> to vector<8x1x32xf32>
    %109 = tpu.concatenate %107, %108 in 1 : vector<8x1x32xf32>, vector<8x1x32xf32> -> vector<8x2x32xf32>
    %c0_32 = arith.constant 0 : index
    %c0_33 = arith.constant 0 : index
    %c0_34 = arith.constant 0 : index
    %110 = vector.load %arg4[%c0_32, %c0_33, %c0_34] : memref<8x2x32xf32, #tpu.memory_space<vmem>>, vector<8x2x32xf32>
    tpu.vector_store %arg4[%c0_32, %c0_33, %c0_34], %109 {strides = array<i32>} : memref<8x2x32xf32, #tpu.memory_space<vmem>>, vector<8x2x32xf32>,
    return
  }
}

</mosaic_0001>

<bundles_post_ra>
// kernel: tpu_custom_call.1
= control target key start
LH: loop header
LB: loop body
LE: loop exit
PB: predicated region body
PF: predicated region fallthrough
CT: control target
= control target key end

     0   :  { %vm126_vm0 = vcmask 1041409   ;;  %vm129_vm1 = vcmask 1042434   ;;  %vm132_vm2 = vcmask 1043459   ;;  %vm135_vm3 = vcmask 1044484   ;;  %s6421_s0 = inlined_call_operand.vmem [shape: f32[8,2,32], index: 0, kind: input, shape index: {}]   ;;  %s6422_s1 = inlined_call_operand.vmem [shape: f32[128,32], index: 1, kind: input, shape index: {}]   ;;  %s6423_s2 = inlined_call_operand.vmem [shape: f32[96,1], index: 2, kind: input, shape index: {}]   ;;  %s6424_s3 = inlined_call_operand.vmem [shape: f32[3,32], index: 3, kind: input, shape index: {}]   ;;  %s6425_s4 = inlined_call_operand.hbm [shape: f32[8,2,32], index: 4, kind: output, shape index: {}]  }
   0x1   :  { %v49_v0 = vld [vmem:[%s6421_s0] sm:$0x3]  ;;  %v50_v1 = vld [vmem:[%s6421_s0 + $0x2] sm:$0x3]  ;;  %v51_v2 = vld [vmem:[%s6421_s0 + $0x4] sm:$0x3] }
   0x2   :  { %v52_v3 = vld [vmem:[%s6421_s0 + $0x6] sm:$0x3]  ;;  %v53_v4 = vld [vmem:[%s6421_s0 + $0x8] sm:$0x3]  ;;  %v54_v5 = vld [vmem:[%s6421_s0 + $0xa] sm:$0x3] }
   0x3   :  { %v55_v6 = vld [vmem:[%s6421_s0 + $0xc] sm:$0x3]  ;;  %v125_v7 = vrot.slane %v50_v1, 7  ;;  %v56_v8 = vld [vmem:[%s6421_s0 + $0xe] sm:$0x3]  ;;  %v128_v9 = vrot.slane %v51_v2, 6 }
   0x4   :  { %v131_v10 = vrot.slane %v52_v3, 5  ;;  %v134_v12 = vrot.slane %v53_v4, 4  ;;  %v137_v13 = vrot.slane %v54_v5, 3  ;;  %v18_v14 = vld [vmem:[%s6422_s1] sm:$0xff]  ;;  %v28_v15 = vld [vmem:[%s6422_s1 + $0x50] sm:$0xff]  ;;  %v19_v16 = vld [vmem:[%s6422_s1 + $0x8] sm:$0xff] }
   0x5   :  { %v127_v11 = vsel %vm126_vm0, %v125_v7, %v49_v0  ;;  %vm138_vm4 = vcmask 1045509   ;;  %v140_v18 = vrot.slane %v55_v6, 2  ;;  %vm141_vm5 = vcmask 1046534   ;;  %v29_v19 = vld [vmem:[%s6422_s1 + $0x58] sm:$0xff]  ;;  %v20_v22 = vld [vmem:[%s6422_s1 + $0x10] sm:$0xff]  ;;  %v34_v31 = vld [vmem:[%s6423_s2] sm:$0xff] }
   0x6   :  { %v130_v17 = vsel %vm129_vm1, %v128_v9, %v127_v11  ;;  %v143_v21 = vrot.slane %v56_v8, 1  ;;  %vm144_vm6 = vcmask 1047559   ;;  %vm146_vm7 = vcmask 261120  }
   0x7   :  { %v133_v20 = vsel %vm132_vm2, %v131_v10, %v130_v17  ;;  %v148_v24 = vsel %vm146_vm7, %v18_v14, 0  ;;  %v178_v25 = vsel %vm146_vm7, %v28_v15, 0  ;;  %v151_v26 = vsel %vm146_vm7, %v19_v16, 0 }
   0x8   :  { %v136_v23 = vsel %vm135_vm3, %v134_v12, %v133_v20  ;;  %v5230_v28 = vand.u32 4294901760, %v148_v24  ;;  %v5232_v29 = vand.u32 4294901760, %v178_v25  ;;  %v5234_v30 = vand.u32 4294901760, %v151_v26 }
   0x9   :  { %v139_v27 = vsel %vm138_vm4, %v137_v13, %v136_v23  ;;  %v181_v33 = vsel %vm146_vm7, %v29_v19, 0  ;;  %v154_v34 = vsel %vm146_vm7, %v20_v22, 0 }
   0xa   :  { %6483 = vst [vmem:[#allocation5_spill] sm:$0xff] %v5232_v29  ;;  %v142_v32 = vsel %vm141_vm5, %v140_v18, %v139_v27 }
   0xb   :  { %9 = vsyncpa [#allocation3], 0  ;;  %v145_v35 = vsel %vm144_vm6, %v143_v21, %v142_v32  ;;  %v5244_v36 = vsub.f32 %v148_v24, %v5230_v28  ;;  %v5247_v37 = vsub.f32 %v178_v25, %v5232_v29  ;;  %v5250_v38 = vsub.f32 %v151_v26, %v5234_v30  ;;  %v35_v40 = vld [vmem:[%s6423_s2 + $0x8] sm:$0xff]  ;;  %v21_v56 = vld [vmem:[%s6422_s1 + $0x18] sm:$0xff]  ;;  %s5045_s20 = sshll.u32 %s6425_s4, 4  ;;  %s5156_s21 = smov 32   ;;  %s5046_s20 = int_to_ptr.hbm [resolvable:$true] %s5045_s20 }
   0xc   :  { %v5153_v39 = vmov 0   ;;  %v183_v41 = vsel %vm146_vm7, %v145_v35, 0  ;;  %v5256_v42 = vand.u32 4294901760, %v181_v33  ;;  %v5267_v47 = vand.u32 4294901760, %v154_v34  ;;  %v39_v61 = vld [vmem:[%s6423_s2 + $0x28] sm:$0xff]  ;;  %v22_v4 = vld [vmem:[%s6422_s1 + $0x20] sm:$0xff] }
   0xd   :  { %6484 = vst [vmem:[#allocation6_spill] sm:$0xff] %v5247_v37  ;;  %5065 = vset.pattern.permute.xlu0 %v5153_v39  ;;  %5066 = vset.pattern.permute.xlu1 %v5153_v39  ;;  %v200_v43 = vand.u32 4294901760, %v183_v41  ;;  %v5259_v44 = vand.u32 4294901760, %v5244_v36  ;;  %v5262_v45 = vand.u32 4294901760, %v5247_v37  ;;  %v5274_v51 = vand.u32 4294901760, %v5250_v38  ;;  %v37_v7 = vld [vmem:[%s6423_s2 + $0x18] sm:$0xff] }
   0xe   :  { %6485 = vst [vmem:[#allocation7_spill] sm:$0xff] %v5256_v42  ;;  %59 = vperm.xlu0 %5065, %v34_v31   ;;  %64 = vperm.xlu1 %5066, %v35_v40   ;;  %v5265_v46 = vsub.f32 %v181_v33, %v5256_v42  ;;  %v5287_v57 = vsub.f32 %v154_v34, %v5267_v47  ;;  %v157_v62 = vsel %vm146_vm7, %v21_v56, 0  ;;  %v160_v8 = vsel %vm146_vm7, %v22_v4, 0  ;;  %v23_v12 = vld [vmem:[%s6422_s1 + $0x28] sm:$0xff]  ;;  %v38_v15 = vld [vmem:[%s6423_s2 + $0x20] sm:$0xff]  ;;  %v24_v20 = vld [vmem:[%s6422_s1 + $0x30] sm:$0xff] }
   0xf   :  { %6486 = vst [vmem:[#allocation8_spill] sm:$0xff] %v5262_v45  ;;  %5067 = vset.pattern.permute.xlu2 %v5153_v39  ;;  %201 = vmatpush.xpose.msra.mxu0 %v200_v43  ;;  %v205_v48 = vsub.f32 %v5244_v36, %v5259_v44  ;;  %v285_v49 = vsub.f32 %v5247_v37, %v5262_v45  ;;  %v5306_v3 = vand.u32 4294901760, %v157_v62  ;;  %v5329_v11 = vand.u32 4294901760, %v160_v8  ;;  %v36_v23 = vld [vmem:[%s6423_s2 + $0x10] sm:$0xff]  ;;  %v25_v31 = vld [vmem:[%s6422_s1 + $0x38] sm:$0xff]  ;;  %s5157_s22 = smov 2  }
  0x10   :  { %6487 = vst [vmem:[#allocation9_spill] sm:$0xff] %v5265_v46  ;;  %5057 = vmatpush.xpose.msra.mxu2 %v200_v43  ;;  %v315_v50 = vsub.f32 %v183_v41, %v200_v43  ;;  %v5277_v52 = vand.u32 4294901760, %v5265_v46  ;;  %v213_v59 = vsub.f32 %v5250_v38, %v5274_v51  ;;  %v5304_v2 = vand.u32 4294901760, %v5287_v57  ;;  %69 = vperm.xlu2 %5067, %v36_v23   ;;  %v40_v34 = vld [vmem:[%s6423_s2 + $0x30] sm:$0xff] }
  0x11   :  { %v5279_v53 = vand.u32 4294901760, %v205_v48  ;;  %v5281_v54 = vand.u32 4294901760, %v285_v49  ;;  %v5318_v6 = vsub.f32 %v157_v62, %v5306_v3  ;;  %v5341_v14 = vsub.f32 %v160_v8, %v5329_v11 }
  0x12   :  { %6488 = vst [vmem:[#allocation10_spill] sm:$0xff] %v5277_v52  ;;  %v316_v55 = vand.u32 4294901760, %v315_v50  ;;  %v293_v60 = vsub.f32 %v5265_v46, %v5277_v52  ;;  %v5299_v0 = vand.u32 4294901760, %v213_v59  ;;  %v221_v5 = vsub.f32 %v5287_v57, %v5304_v2 }
  0x13   :  { %6489 = vst [vmem:[#allocation11_spill] sm:$0xff] %v5281_v54  ;;  %207 = vmatmul.f32.vlgmr.msra.gmra.mxu0 %v5279_v53  ;;  %287 = vmatmul.f32.vlgmr.msra.gmra.mxu2 %v5281_v54  ;;  %v5327_v10 = vand.u32 4294901760, %v5318_v6  ;;  %v163_v16 = vsel %vm146_vm7, %v23_v12, 0  ;;  %v5350_v18 = vand.u32 4294901760, %v5341_v14  ;;  %v166_v24 = vsel %vm146_vm7, %v24_v20, 0 }
  0x14   :  { %386 = vmatpush.xpose.msrb.mxu2 %v315_v50  ;;  %v317_v58 = vsub.f32 %v315_v50, %v316_v55  ;;  %556 = vmatpush.xpose.msrb.mxu0 %v316_v55  ;;  %v5301_v1 = vand.u32 4294901760, %v293_v60  ;;  %6491 = vst [vmem:[#allocation13_spill] sm:$0xff] %v5304_v2  ;;  %v5324_v9 = vand.u32 4294901760, %v221_v5  ;;  %v5352_v19 = vand.u32 4294901760, %v163_v16  ;;  %v41_v50 = vld [vmem:[%s6423_s2 + $0x38] sm:$0xff]  ;;  %v27_v60 = vld [vmem:[%s6422_s1 + $0x48] sm:$0xff] }
  0x15   :  { %6492 = vst [vmem:[#allocation14_spill] sm:$0xff] %v5327_v10  ;;  %v229_v13 = vsub.f32 %v5318_v6, %v5327_v10  ;;  %v237_v21 = vsub.f32 %v5341_v14, %v5350_v18  ;;  %v5375_v27 = vand.u32 4294901760, %v166_v24  ;;  %v169_v35 = vsel %vm146_vm7, %v25_v31, 0 }
  0x16   :  { %v318_v63 = vand.u32 4294901760, %v317_v58  ;;  %84 = vperm.xlu1 %5066, %v39_v61   ;;  %6490 = vst [vmem:[#allocation12_spill] sm:$0xff] %v5301_v1  ;;  %79 = vperm.xlu0 %5065, %v38_v15   ;;  %v5364_v22 = vsub.f32 %v163_v16, %v5352_v19  ;;  %v5398_v41 = vand.u32 4294901760, %v169_v35  ;;  %vm800_vm8 = vcmask 64512  }
  0x17   :  { %6493 = vst [vmem:[#allocation15_spill] sm:$0xff] %v5341_v14  ;;  %v5347_v17 = vand.u32 4294901760, %v229_v13  ;;  %v5370_v25 = vand.u32 4294901760, %v237_v21  ;;  %v5387_v33 = vsub.f32 %v166_v24, %v5375_v27 }
  0x18   :  { %319 = vmatpush.xpose.msra.mxu1 %v318_v63  ;;  %5058 = vmatpush.xpose.msra.mxu3 %v318_v63  ;;  %6494 = vst [vmem:[#allocation16_spill] sm:$0xff] %v5350_v18  ;;  %v5373_v26 = vand.u32 4294901760, %v5364_v22  ;;  %v5410_v49 = vsub.f32 %v169_v35, %v5398_v41  ;;  %v175_v63 = vsel %vm146_vm7, %v27_v60, 0 }
  0x19   :  { %6495 = vst [vmem:[#allocation17_spill] sm:$0xff] %v5364_v22  ;;  %v5396_v40 = vand.u32 4294901760, %v5387_v33 }
  0x1a   :  { %6496 = vst [vmem:[#allocation18_spill] sm:$0xff] %v5373_v26  ;;  %v245_v32 = vsub.f32 %v5364_v22, %v5373_v26  ;;  %v5419_v58 = vand.u32 4294901760, %v5410_v49 }
  0x1b   :  { %321 = vmatmul.f32.vlgmr.msra.gmra.mxu1 %v5230_v28  ;;  %361 = vmatmul.f32.vlgmr.msra.gmra.mxu3 %v5232_v29  ;;  %6497 = vst [vmem:[#allocation19_spill] sm:$0xff] %v5387_v33  ;;  %v253_v48 = vsub.f32 %v5387_v33, %v5396_v40 }
  0x1c   :  { %464 = vmatpush.xpose.msrb.mxu3 %v200_v43  ;;  %622 = vmatpush.xpose.msrb.mxu1 %v200_v43  ;;  %v5393_v39 = vand.u32 4294901760, %v245_v32  ;;  %6498 = vst [vmem:[#allocation20_spill] sm:$0xff] %v5396_v40  ;;  %v26_v43 = vld [vmem:[%s6422_s1 + $0x40] sm:$0xff]  ;;  %v261_v61 = vsub.f32 %v5410_v49, %v5419_v58 }
  0x1d   :  { %215 = vmatmul.f32.gmra.mxu0 %v5299_v0  ;;  %295 = vmatmul.f32.gmra.mxu2 %v5301_v1  ;;  %6499 = vst [vmem:[#allocation21_spill] sm:$0xff] %v5398_v41  ;;  %v172_v55 = vsel %vm146_vm7, %v26_v43, 0  ;;  %v5416_v56 = vand.u32 4294901760, %v253_v48 }
  0x1e   :  { %74 = vperm.xlu1 %5066, %v37_v7   ;;  %89 = vperm.xlu0 %5065, %v40_v34   ;;  %6500 = vst [vmem:[#allocation22_spill] sm:$0xff] %v5410_v49  ;;  %v5421_v59 = vand.u32 4294901760, %v172_v55  ;;  %v5436_v4 = vand.u32 4294901760, %v261_v61  ;;  %v5441_v7 = vand.u32 4294901760, %v175_v63 }
  0x1f   :  { %6501 = vst [vmem:[#allocation23_spill] sm:$0xff] %v5419_v58 }
  0x20   :  { %6502 = vst [vmem:[#allocation24_spill] sm:$0xff] %v5421_v59  ;;  %v5433_v62 = vsub.f32 %v172_v55, %v5421_v59  ;;  %v5450_v12 = vsub.f32 %v175_v63, %v5441_v7 }
  0x21   :  { %6504 = vst [vmem:[#allocation26_spill] sm:$0xff] %v5436_v4 }
  0x22   :  { %6503 = vst [vmem:[#allocation25_spill] sm:$0xff] %v5433_v62  ;;  %v5439_v5 = vand.u32 4294901760, %v5433_v62  ;;  %v5455_v15 = vand.u32 4294901760, %v5450_v12 }
  0x23   :  { %325 = vmatmul.f32.gmra.mxu1 %v5234_v30  ;;  %365 = vmatmul.f32.gmra.mxu3 %v5256_v42  ;;  %6506 = vst [vmem:[#allocation28_spill] sm:$0xff] %v5441_v7 }
  0x24   :  { %6505 = vst [vmem:[#allocation27_spill] sm:$0xff] %v5439_v5  ;;  %v269_v8 = vsub.f32 %v5433_v62, %v5439_v5  ;;  %v277_v16 = vsub.f32 %v5450_v12, %v5455_v15 }
  0x25   :  { %223 = vmatmul.f32.gmra.mxu0 %v5324_v9  ;;  %389 = vmatmul.f32.vlgmr.msrb.gmra.mxu2 %v5244_v36  ;;  %6507 = vst [vmem:[#allocation29_spill] sm:$0xff] %v5450_v12 }
  0x26   :  { %94 = vperm.xlu1 %5066, %v41_v50   ;;  %v5452_v13 = vand.u32 4294901760, %v269_v8  ;;  %6509 = vst [vmem:[#allocation31_spill] sm:$0xff] %v5455_v15  ;;  %v5463_v20 = vand.u32 4294901760, %v277_v16 }
  0x28   :  { %6508 = vst [vmem:[#allocation30_spill] sm:$0xff] %v5452_v13 }
  0x29   :  { %6510 = vst [vmem:[#allocation32_spill] sm:$0xff] %v5463_v20 }
  0x2b   :  { %329 = vmatmul.f32.gmra.mxu1 %v5267_v47  ;;  %468 = vmatmul.f32.vlgmr.msrb.gmra.mxu3 %v5259_v44 }
  0x2d   :  { %231 = vmatmul.f32.gmra.mxu0 %v5347_v17  ;;  %394 = vmatmul.f32.gmra.mxu2 %v5250_v38 }
  0x33   :  { %333 = vmatmul.f32.gmra.mxu1 %v5306_v3  ;;  %474 = vmatmul.f32.gmra.mxu3 %v5274_v51 }
  0x35   :  { %239 = vmatmul.f32.gmra.mxu0 %v5370_v25  ;;  %399 = vmatmul.f32.gmra.mxu2 %v5287_v57 }
  0x3b   :  { %337 = vmatmul.f32.gmra.mxu1 %v5329_v11  ;;  %480 = vmatmul.f32.gmra.mxu3 %v5304_v2 }
  0x3d   :  { %247 = vmatmul.f32.gmra.mxu0 %v5393_v39  ;;  %404 = vmatmul.f32.gmra.mxu2 %v5318_v6 }
  0x43   :  { %341 = vmatmul.f32.gmra.mxu1 %v5352_v19  ;;  %486 = vmatmul.f32.gmra.mxu3 %v5327_v10 }
  0x45   :  { %255 = vmatmul.f32.gmra.mxu0 %v5416_v56  ;;  %409 = vmatmul.f32.gmra.mxu2 %v5341_v14 }
  0x4b   :  { %345 = vmatmul.f32.gmra.mxu1 %v5375_v27  ;;  %492 = vmatmul.f32.gmra.mxu3 %v5350_v18 }
  0x4d   :  { %263 = vmatmul.f32.gmra.mxu0 %v5436_v4  ;;  %414 = vmatmul.f32.gmra.mxu2 %v5364_v22 }
  0x53   :  { %349 = vmatmul.f32.gmra.mxu1 %v5398_v41  ;;  %498 = vmatmul.f32.gmra.mxu3 %v5373_v26 }
  0x55   :  { %271 = vmatmul.f32.gmra.mxu0 %v5452_v13  ;;  %419 = vmatmul.f32.gmra.mxu2 %v5387_v33 }
  0x5b   :  { %353 = vmatmul.f32.gmra.mxu1 %v5421_v59  ;;  %504 = vmatmul.f32.gmra.mxu3 %v5396_v40 }
  0x5d   :  { %279 = vmatmul.f32.gmra.mxu0 %v5463_v20  ;;  %424 = vmatmul.f32.gmra.mxu2 %v5410_v49 }
  0x63   :  { %357 = vmatmul.f32.gmra.mxu1 %v5441_v7  ;;  %510 = vmatmul.f32.gmra.mxu3 %v5419_v58 }
  0x65   :  { %558 = vmatmul.f32.vlgmr.msrb.gmra.mxu0 %v5230_v28  ;;  %429 = vmatmul.f32.gmra.mxu2 %v5433_v62 }
  0x6b   :  { %624 = vmatmul.f32.vlgmr.msrb.gmra.mxu1 %v5230_v28  ;;  %516 = vmatmul.f32.gmra.mxu3 %v5439_v5 }
  0x6d   :  { %562 = vmatmul.f32.gmra.mxu0 %v5234_v30  ;;  %434 = vmatmul.f32.gmra.mxu2 %v5450_v12 }
  0x73   :  { %628 = vmatmul.f32.gmra.mxu1 %v5234_v30  ;;  %522 = vmatmul.f32.gmra.mxu3 %v5455_v15 }
  0x75   :  { %566 = vmatmul.f32.gmra.mxu0 %v5267_v47  ;;  %439 = vmatmul.f32.gmra.mxu2 %v5247_v37 }
  0x7b   :  { %632 = vmatmul.f32.gmra.mxu1 %v5267_v47  ;;  %528 = vmatmul.f32.gmra.mxu3 %v5262_v45 }
  0x7d   :  { %570 = vmatmul.f32.gmra.mxu0 %v5306_v3  ;;  %444 = vmatmul.f32.gmra.mxu2 %v5265_v46 }
  0x80   :  { %v5533_v62 = vpop.permute.xlu0 %59  ;;  %v5536_v40 = vpop.permute.xlu1 %64 }
  0x81   :  { %6511 = vst [vmem:[#allocation33_spill] sm:$0xff] %v5533_v62 }
  0x83   :  { %636 = vmatmul.f32.gmra.mxu1 %v5306_v3  ;;  %534 = vmatmul.f32.gmra.mxu3 %v5277_v52 }
  0x85   :  { %574 = vmatmul.f32.gmra.mxu0 %v5329_v11 }
  0x88   :  { %v5541_v13 = vpop.permute.xlu1 %84 }
  0x8b   :  { %640 = vmatmul.f32.gmra.mxu1 %v5329_v11 }
  0x8d   :  { %578 = vmatmul.f32.gmra.mxu0 %v5352_v19 }
  0x90   :  { %v208_v21 = vpop.f32.mrf.mxu0 }
  0x93   :  { %644 = vmatmul.f32.gmra.mxu1 %v5352_v19 }
  0x95   :  { %582 = vmatmul.f32.gmra.mxu0 %v5375_v27 }
  0x96   :  { %v5513_v63 = vpop.f32.mrf.mxu2 }
  0x98   :  { %v322_v23 = vpop.f32.mrf.mxu1 }
  0x9a   :  { %v216_v24 = vpop.f32.mrf.mxu0 }
  0x9b   :  { %648 = vmatmul.f32.gmra.mxu1 %v5375_v27 }
  0x9d   :  { %586 = vmatmul.f32.gmra.mxu0 %v5398_v41 }
  0x9e   :  { %v5515_v8 = vpop.f32.mrf.mxu3 }
  0xa0   :  { %v326_v31 = vpop.f32.mrf.mxu1  ;;  %v5521_v45 = vpop.f32.mrf.mxu2 }
  0xa2   :  { %v224_v32 = vpop.f32.mrf.mxu0 }
  0xa3   :  { %652 = vmatmul.f32.gmra.mxu1 %v5398_v41 }
  0xa5   :  { %590 = vmatmul.f32.gmra.mxu0 %v5421_v59 }
  0xa6   :  { %v5523_v46 = vpop.f32.mrf.mxu3 }
  0xa8   :  { %v330_v34 = vpop.f32.mrf.mxu1  ;;  %v390_v5 = vpop.f32.mrf.mxu2 }
  0xaa   :  { %v232_v35 = vpop.f32.mrf.mxu0 }
  0xab   :  { %656 = vmatmul.f32.gmra.mxu1 %v5421_v59 }
  0xad   :  { %594 = vmatmul.f32.gmra.mxu0 %v5441_v7 }
  0xae   :  { %v469_v1 = vpop.f32.mrf.mxu3 }
  0xb0   :  { %v334_v43 = vpop.f32.mrf.mxu1  ;;  %v395_v26 = vpop.f32.mrf.mxu2 }
  0xb2   :  { %v5498_v48 = vpop.f32.mrf.mxu0 }
  0xb3   :  { %660 = vmatmul.f32.gmra.mxu1 %v5441_v7  ;;  %v217_v7 = vadd.f32 %v216_v24, %v5536_v40 }
  0xb5   :  { %598 = vmatmul.f32.gmra.mxu0 %v5232_v29  ;;  %v327_v10 = vadd.f32 %v326_v31, %v217_v7 }
  0xb6   :  { %v475_v20 = vpop.f32.mrf.mxu3 }
  0xb8   :  { %v5502_v50 = vpop.f32.mrf.mxu1  ;;  %v400_v41 = vpop.f32.mrf.mxu2 }
  0xba   :  { %v5504_v55 = vpop.f32.mrf.mxu0 }
  0xbb   :  { %664 = vmatmul.f32.gmra.mxu1 %v5232_v29 }
  0xbd   :  { %602 = vmatmul.f32.gmra.mxu0 %v5256_v42 }
  0xc0   :  { %v5508_v60 = vpop.f32.mrf.mxu1  ;;  %v405_v7 = vpop.f32.mrf.mxu2 }
  0xc2   :  { %v5510_v61 = vpop.f32.mrf.mxu0 }
  0xc3   :  { %668 = vmatmul.f32.gmra.mxu1 %v5256_v42  ;;  %v209_v42 = vadd.f32 %v208_v21, %v5533_v62  ;;  %v5543_v21 = vpop.permute.xlu2 %69  ;;  %v396_v62 = vadd.f32 %v395_v26, %v327_v10 }
  0xc5   :  { %v323_v54 = vadd.f32 %v322_v23, %v209_v42  ;;  %v225_v42 = vadd.f32 %v224_v32, %v5543_v21  ;;  %v476_v23 = vadd.f32 %v475_v20, %v396_v62  ;;  %v5549_v62 = vpop.permute.xlu0 %79 }
  0xc7   :  { %v391_v33 = vadd.f32 %v390_v5, %v323_v54  ;;  %v481_v54 = vpop.f32.mrf.mxu3  ;;  %v331_v24 = vadd.f32 %v330_v34, %v225_v42 }
  0xc8   :  { %v5517_v16 = vpop.f32.mrf.mxu1  ;;  %v410_v42 = vpop.f32.mrf.mxu2 }
  0xc9   :  { %v470_v18 = vadd.f32 %v469_v1, %v391_v33  ;;  %v401_v33 = vadd.f32 %v400_v41, %v331_v24 }
  0xca   :  { %v5519_v52 = vpop.f32.mrf.mxu0 }
  0xcf   :  { %v487_v26 = vpop.f32.mrf.mxu3 }
  0xd0   :  { %v5525_v15 = vpop.f32.mrf.mxu1 }
  0xd2   :  { %v5527_v37 = vpop.f32.mrf.mxu0 }
  0xd8   :  { %v5529_v12 = vpop.f32.mrf.mxu1 }
  0xda   :  { %v5531_v58 = vpop.f32.mrf.mxu0 }
  0xe0   :  { %v5538_v49 = vpop.f32.mrf.mxu1 }
  0xe2   :  { %v559_v29 = vpop.f32.mrf.mxu0 }
  0xe3   :  { %v560_v22 = vadd.f32 %v559_v29, %v470_v18  ;;  %v5546_v18 = vpop.permute.xlu1 %74 }
  0xe8   :  { %v625_v59 = vpop.f32.mrf.mxu1 }
  0xe9   :  { %v626_v4 = vadd.f32 %v625_v59, %v560_v22  ;;  %v233_v22 = vadd.f32 %v232_v35, %v5546_v18  ;;  %v482_v59 = vadd.f32 %v481_v54, %v401_v33 }
  0xea   :  { %v563_v14 = vpop.f32.mrf.mxu0 }
  0xeb   :  { %672 = vxpose.xlu2.b32.start.end [1/1] (short) (narrow) %v626_v4, 8  ;;  %v564_v5 = vadd.f32 %v563_v14, %v476_v23  ;;  %v335_v31 = vadd.f32 %v334_v43, %v233_v22 }
  0xed   :  { %v406_v20 = vadd.f32 %v405_v7, %v335_v31 }
  0xef   :  { %v488_v34 = vadd.f32 %v487_v26, %v406_v20 }
  0xf0   :  { %v629_v2 = vpop.f32.mrf.mxu1 }
  0xf1   :  { %v630_v29 = vadd.f32 %v629_v2, %v564_v5  ;;  %v241_v2 = vadd.f32 %v5498_v48, %v5549_v62  ;;  %v493_v5 = vpop.f32.mrf.mxu3 }
  0xf2   :  { %v567_v1 = vpop.f32.mrf.mxu0 }
  0xf3   :  { %704 = vxpose.xlu0.b32.start.end [1/1] (short) (narrow) %v630_v29, 8  ;;  %v568_v10 = vadd.f32 %v567_v1, %v482_v59  ;;  %v339_v35 = vadd.f32 %v5502_v50, %v241_v2  ;;  %v249_v50 = vadd.f32 %v5504_v55, %v5541_v13 }
  0xf5   :  { %v411_v24 = vadd.f32 %v410_v42, %v339_v35  ;;  %v343_v31 = vadd.f32 %v5508_v60, %v249_v50 }
  0xf7   :  { %v494_v1 = vadd.f32 %v493_v5, %v411_v24 }
  0xf8   :  { %v633_v4 = vpop.f32.mrf.mxu1 }
  0xf9   :  { %v634_v32 = vadd.f32 %v633_v4, %v568_v10  ;;  %v415_v4 = vpop.f32.mrf.mxu2 }
  0xfa   :  { %v571_v14 = vpop.f32.mrf.mxu0 }
  0xfb   :  { %736 = vxpose.xlu1.b32.start.end [1/1] (short) (narrow) %v634_v32, 8  ;;  %v572_v41 = vadd.f32 %v571_v14, %v488_v34  ;;  %v499_v32 = vpop.f32.mrf.mxu3  ;;  %v416_v14 = vadd.f32 %v415_v4, %v343_v31 }
  0xfd   :  { %v500_v2 = vadd.f32 %v499_v32, %v416_v14 }
 0x100   :  { %v637_v23 = vpop.f32.mrf.mxu1 }
 0x101   :  { %v638_v54 = vadd.f32 %v637_v23, %v572_v41 }
 0x102   :  { %v575_v43 = vpop.f32.mrf.mxu0 }
 0x103   :  { %768 = vxpose.xlu2.b32.start.end [1/1] (short) (narrow) %v638_v54, 8  ;;  %v576_v29 = vadd.f32 %v575_v43, %v494_v1  ;;  %v5557_v54 = vpop.permute.xlu0 %89 }
 0x104   :  { %6512 = vst [vmem:[#allocation34_spill] sm:$0xff] %v5557_v54  ;;  %v257_v55 = vadd.f32 %v5510_v61, %v5557_v54 }
 0x108   :  { %v641_v33 = vpop.f32.mrf.mxu1 }
 0x109   :  { %v642_v22 = vadd.f32 %v641_v33, %v576_v29  ;;  %v420_v29 = vpop.f32.mrf.mxu2 }
 0x10a   :  { %v579_v20 = vpop.f32.mrf.mxu0 }
 0x10b   :  { %v819_v59 = vand.u32 4294901760, %v642_v22  ;;  %v580_v41 = vadd.f32 %v579_v20, %v500_v2 }
 0x10d   :  { %v846_v7 = vsub.f32 %v642_v22, %v819_v59  ;;  %820 = vmatpush.msra.mxu2 %v819_v59  ;;  %v347_v22 = vadd.f32 %v5517_v16, %v257_v55 }
 0x10f   :  { %v847_v10 = vand.u32 4294901760, %v846_v7  ;;  %873 = vmatpush.msrb.mxu2 %v846_v7  ;;  %v421_v50 = vadd.f32 %v420_v29, %v347_v22 }
 0x110   :  { %v645_v34 = vpop.f32.mrf.mxu1 }
 0x111   :  { %v848_v48 = vsub.f32 %v846_v7, %v847_v10  ;;  %v646_v42 = vadd.f32 %v645_v34, %v580_v41 }
 0x112   :  { %v583_v4 = vpop.f32.mrf.mxu0 }
 0x113   :  { %v849_v26 = vand.u32 4294901760, %v848_v48  ;;  %v968_v23 = vand.u32 4294901760, %v646_v42  ;;  %v505_v48 = vpop.f32.mrf.mxu3 }
 0x114   :  { %v506_v32 = vadd.f32 %v505_v48, %v421_v50 }
 0x115   :  { %850 = vmatpush.msra.mxu3 %v849_v26  ;;  %v995_v35 = vsub.f32 %v646_v42, %v968_v23 }
 0x116   :  { %v584_v61 = vadd.f32 %v583_v4, %v506_v32 }
 0x117   :  { %896 = vmatpush.msrb.mxu3 %v819_v59  ;;  %v996_v60 = vand.u32 4294901760, %v995_v35 }
 0x118   :  { %v649_v20 = vpop.f32.mrf.mxu1 }
 0x119   :  { %v997_v7 = vsub.f32 %v995_v35, %v996_v60  ;;  %v650_v2 = vadd.f32 %v649_v20, %v584_v61 }
 0x11a   :  { %v587_v50 = vpop.f32.mrf.mxu0 }
 0x11b   :  { %v998_v14 = vand.u32 4294901760, %v997_v7  ;;  %v511_v48 = vpop.f32.mrf.mxu3 }
 0x184   :  { %v688_v5 = vpop.trf.xlu2 }
 0x185   :  { %v802_v24 = vsel %vm800_vm8, %v688_v5, 0 }
 0x186   :  { %v821_v43 = vand.u32 4294901760, %v802_v24 }
 0x188   :  { %v822_v1 = vsub.f32 %v802_v24, %v821_v43  ;;  %852 = vmatmul.f32.vlgmr.msra.gmra.mxu3 %v821_v43  ;;  %v5564_v24 = vpop.permute.xlu1 %94 }
 0x189   :  { %944 = vmatpush.msra.mxu3 %v819_v59  ;;  %v1117_v59 = vand.u32 4294901760, %v650_v2  ;;  %6513 = vst [vmem:[#allocation35_spill] sm:$0xff] %v5564_v24  ;;  %v265_v29 = vadd.f32 %v5519_v52, %v5564_v24 }
 0x18a   :  { %v823_v33 = vand.u32 4294901760, %v822_v1 }
 0x18b   :  { %v1144_v42 = vsub.f32 %v650_v2, %v1117_v59  ;;  %v351_v22 = vadd.f32 %v5525_v15, %v265_v29 }
 0x18c   :  { %v824_v26 = vsub.f32 %v822_v1, %v823_v33 }
 0x18e   :  { %v825_v31 = vand.u32 4294901760, %v824_v26 }
 0x190   :  { %826 = vmatmul.f32.vlgmr.msra.gmra.mxu2 %v825_v31  ;;  %900 = vmatmul.f32.vlgmr.msrb.gmra.mxu3 %v823_v33 }
 0x191   :  { %922 = vmatpush.msra.mxu2 %v847_v10  ;;  %999 = vmatpush.msrb.mxu3 %v998_v14  ;;  %v1145_v10 = vand.u32 4294901760, %v1144_v42  ;;  %v653_v14 = vpop.f32.mrf.mxu1 }
 0x193   :  { %v1146_v7 = vsub.f32 %v1144_v42, %v1145_v10 }
 0x195   :  { %v1147_v32 = vand.u32 4294901760, %v1146_v7 }
 0x197   :  { %v720_v34 = vpop.trf.xlu0 }
 0x198   :  { %876 = vmatmul.f32.vlgmr.msrb.gmra.mxu2 %v822_v1  ;;  %946 = vmatmul.f32.vlgmr.msra.gmra.mxu3 %v821_v43  ;;  %v951_v16 = vsel %vm800_vm8, %v720_v34, 0  ;;  %v425_v1 = vpop.f32.mrf.mxu2 }
 0x199   :  { %969 = vmatpush.msrb.mxu2 %v968_v23  ;;  %1045 = vmatpush.msra.mxu3 %v968_v23  ;;  %v970_v41 = vand.u32 4294901760, %v951_v16  ;;  %v426_v26 = vadd.f32 %v425_v1, %v351_v22 }
 0x19b   :  { %v971_v5 = vsub.f32 %v951_v16, %v970_v41  ;;  %v512_v31 = vadd.f32 %v511_v48, %v426_v26 }
 0x19d   :  { %v972_v55 = vand.u32 4294901760, %v971_v5  ;;  %v588_v20 = vadd.f32 %v587_v50, %v512_v31 }
 0x19f   :  { %v973_v33 = vsub.f32 %v971_v5, %v972_v55  ;;  %v752_v52 = vpop.trf.xlu1 }
 0x1a0   :  { %924 = vmatmul.f32.vlgmr.msra.gmra.mxu2 %v821_v43  ;;  %1001 = vmatmul.f32.vlgmr.msrb.gmra.mxu3 %v970_v41  ;;  %v5573_v48 = vpop.f32.mrf.mxu2 }
 0x1a1   :  { %1022 = vmatpush.msra.mxu2 %v995_v35  ;;  %1093 = vmatpush.msrb.mxu3 %v968_v23  ;;  %v974_v4 = vand.u32 4294901760, %v973_v33  ;;  %v654_v35 = vadd.f32 %v653_v14, %v588_v20  ;;  %v1100_v23 = vsel %vm800_vm8, %v752_v52, 0  ;;  %v784_v33 = vpop.trf.xlu2 }
 0x1a2   :  { %v1119_v43 = vand.u32 4294901760, %v1100_v23 }
 0x1a3   :  { %v1266_v61 = vand.u32 4294901760, %v654_v35 }
 0x1a4   :  { %v1120_v15 = vsub.f32 %v1100_v23, %v1119_v43 }
 0x1a5   :  { %v1293_v2 = vsub.f32 %v654_v35, %v1266_v61 }
 0x1a6   :  { %v1121_v34 = vand.u32 4294901760, %v1120_v15 }
 0x1a7   :  { %v1294_v16 = vand.u32 4294901760, %v1293_v2 }
 0x1a8   :  { %975 = vmatmul.f32.vlgmr.msrb.gmra.mxu2 %v974_v4  ;;  %1049 = vmatmul.f32.vlgmr.msra.gmra.mxu3 %v972_v55  ;;  %v1122_v55 = vsub.f32 %v1120_v15, %v1121_v34  ;;  %v5577_v50 = vpop.f32.mrf.mxu2 }
 0x1a9   :  { %1071 = vmatpush.msrb.mxu2 %v996_v60  ;;  %1148 = vmatpush.msra.mxu3 %v1147_v32  ;;  %v1295_v60 = vsub.f32 %v1293_v2, %v1294_v16 }
 0x1aa   :  { %v1123_v29 = vand.u32 4294901760, %v1122_v55 }
 0x1ab   :  { %v1296_v1 = vand.u32 4294901760, %v1295_v60 }
 0x1b0   :  { %1025 = vmatmul.f32.vlgmr.msra.gmra.mxu2 %v971_v5  ;;  %1095 = vmatmul.f32.vlgmr.msrb.gmra.mxu3 %v970_v41  ;;  %v1249_v5 = vsel %vm800_vm8, %v784_v33, 0  ;;  %v5581_v31 = vpop.f32.mrf.mxu2 }
 0x1b1   :  { %1118 = vmatpush.msra.mxu2 %v1117_v59  ;;  %1194 = vmatpush.msrb.mxu3 %v1117_v59  ;;  %v1268_v22 = vand.u32 4294901760, %v1249_v5 }
 0x1b8   :  { %1073 = vmatmul.f32.vlgmr.msrb.gmra.mxu2 %v970_v41  ;;  %1150 = vmatmul.f32.vlgmr.msra.gmra.mxu3 %v1119_v43  ;;  %v1269_v41 = vsub.f32 %v1249_v5, %v1268_v22  ;;  %v5585_v14 = vpop.f32.mrf.mxu2 }
 0x1b9   :  { %1171 = vmatpush.msrb.mxu2 %v1144_v42  ;;  %1242 = vmatpush.msra.mxu3 %v1117_v59 }
 0x1ba   :  { %v1270_v7 = vand.u32 4294901760, %v1269_v41 }
 0x1bc   :  { %v1271_v59 = vsub.f32 %v1269_v41, %v1270_v7 }
 0x1be   :  { %v1272_v42 = vand.u32 4294901760, %v1271_v59 }
 0x1c0   :  { %1124 = vmatmul.f32.vlgmr.msra.gmra.mxu2 %v1123_v29  ;;  %1198 = vmatmul.f32.vlgmr.msrb.gmra.mxu3 %v1121_v34 }
 0x1c1   :  { %1220 = vmatpush.msra.mxu2 %v1145_v10  ;;  %1297 = vmatpush.msrb.mxu3 %v1296_v1  ;;  %v5571_v10 = vpop.f32.mrf.mxu3 }
 0x1c8   :  { %1174 = vmatmul.f32.vlgmr.msrb.gmra.mxu2 %v1120_v15  ;;  %1244 = vmatmul.f32.vlgmr.msra.gmra.mxu3 %v1119_v43 }
 0x1c9   :  { %1267 = vmatpush.msrb.mxu2 %v1266_v61  ;;  %1343 = vmatpush.msra.mxu3 %v1266_v61  ;;  %v5575_v26 = vpop.f32.mrf.mxu3 }
 0x1d0   :  { %1222 = vmatmul.f32.vlgmr.msra.gmra.mxu2 %v1119_v43  ;;  %1299 = vmatmul.f32.vlgmr.msrb.gmra.mxu3 %v1268_v22 }
 0x1d1   :  { %1320 = vmatpush.msra.mxu2 %v1293_v2  ;;  %1391 = vmatpush.msrb.mxu3 %v1266_v61  ;;  %v5579_v4 = vpop.f32.mrf.mxu3 }
 0x1d8   :  { %1273 = vmatmul.f32.vlgmr.msrb.gmra.mxu2 %v1272_v42  ;;  %1347 = vmatmul.f32.vlgmr.msra.gmra.mxu3 %v1270_v7 }
 0x1d9   :  { %1369 = vmatpush.msrb.mxu2 %v1294_v16  ;;  %v5583_v32 = vpop.f32.mrf.mxu3 }
 0x1e0   :  { %1323 = vmatmul.f32.vlgmr.msra.gmra.mxu2 %v1269_v41  ;;  %1393 = vmatmul.f32.vlgmr.msrb.gmra.mxu3 %v1268_v22 }
 0x1e8   :  { %1371 = vmatmul.f32.vlgmr.msrb.gmra.mxu2 %v1268_v22 }
 0x20b   :  { %v853_v52 = vpop.f32.mrf.mxu3 }
 0x213   :  { %v827_v20 = vpop.f32.mrf.mxu2  ;;  %v901_v35 = vpop.f32.mrf.mxu3 }
 0x214   :  { %v854_v61 = vadd.f32 %v853_v52, %v827_v20 }
 0x21b   :  { %v877_v23 = vpop.f32.mrf.mxu2  ;;  %v947_v43 = vpop.f32.mrf.mxu3 }
 0x21c   :  { %v878_v15 = vadd.f32 %v877_v23, %v854_v61 }
 0x21e   :  { %v902_v2 = vadd.f32 %v901_v35, %v878_v15 }
 0x223   :  { %v925_v34 = vpop.f32.mrf.mxu2  ;;  %v1002_v16 = vpop.f32.mrf.mxu3 }
 0x224   :  { %v926_v55 = vadd.f32 %v925_v34, %v902_v2 }
 0x226   :  { %v948_v60 = vadd.f32 %v947_v43, %v926_v55 }
 0x228   :  { %v1397_v29 = vsel %vm800_vm8, %v948_v60, -inf }
 0x229   :  { %1398 = vmax.xlane.f32.xlu2 %v1397_v29 }
 0x22b   :  { %v976_v1 = vpop.f32.mrf.mxu2  ;;  %v1050_v33 = vpop.f32.mrf.mxu3 }
 0x22c   :  { %v1003_v41 = vadd.f32 %v1002_v16, %v976_v1  ;;  %v42_v16 = vld [vmem:[%s6423_s2 + $0x40] sm:$0xff] }
 0x233   :  { %v1026_v5 = vpop.f32.mrf.mxu2  ;;  %v1096_v22 = vpop.f32.mrf.mxu3 }
 0x234   :  { %v1027_v7 = vadd.f32 %v1026_v5, %v1003_v41 }
 0x236   :  { %v1051_v59 = vadd.f32 %v1050_v33, %v1027_v7 }
 0x23b   :  { %v1074_v42 = vpop.f32.mrf.mxu2  ;;  %v1151_v24 = vpop.f32.mrf.mxu3 }
 0x23c   :  { %v1075_v54 = vadd.f32 %v1074_v42, %v1051_v59 }
 0x23e   :  { %v1097_v52 = vadd.f32 %v1096_v22, %v1075_v54 }
 0x240   :  { %v1400_v20 = vsel %vm800_vm8, %v1097_v52, -inf }
 0x241   :  { %1401 = vmax.xlane.f32.xlu0 %v1400_v20 }
 0x243   :  { %v1125_v35 = vpop.f32.mrf.mxu2  ;;  %v1199_v23 = vpop.f32.mrf.mxu3 }
 0x244   :  { %v1152_v61 = vadd.f32 %v1151_v24, %v1125_v35 }
 0x24b   :  { %v1175_v43 = vpop.f32.mrf.mxu2  ;;  %v1245_v2 = vpop.f32.mrf.mxu3 }
 0x24c   :  { %v1176_v15 = vadd.f32 %v1175_v43, %v1152_v61  ;;  %v43_v43 = vld [vmem:[%s6423_s2 + $0x48] sm:$0xff] }
 0x24e   :  { %v1200_v34 = vadd.f32 %v1199_v23, %v1176_v15 }
 0x253   :  { %v1223_v55 = vpop.f32.mrf.mxu2  ;;  %v1300_v33 = vpop.f32.mrf.mxu3 }
 0x254   :  { %v1224_v29 = vadd.f32 %v1223_v55, %v1200_v34 }
 0x255   :  { %99 = vperm.xlu0 %5065, %v42_v16  }
 0x256   :  { %v1246_v1 = vadd.f32 %v1245_v2, %v1224_v29 }
 0x258   :  { %v1403_v54 = vsel %vm800_vm8, %v1246_v1, -inf }
 0x259   :  { %1404 = vmax.xlane.f32.xlu1 %v1403_v54 }
 0x25b   :  { %v1274_v5 = vpop.f32.mrf.mxu2  ;;  %v1348_v41 = vpop.f32.mrf.mxu3 }
 0x25c   :  { %v1301_v7 = vadd.f32 %v1300_v33, %v1274_v5  ;;  %v44_v5 = vld [vmem:[%s6423_s2 + $0x50] sm:$0xff] }
 0x263   :  { %v1324_v22 = vpop.f32.mrf.mxu2  ;;  %v1394_v35 = vpop.f32.mrf.mxu3 }
 0x264   :  { %v1325_v24 = vadd.f32 %v1324_v22, %v1301_v7 }
 0x266   :  { %v1349_v59 = vadd.f32 %v1348_v41, %v1325_v24 }
 0x26b   :  { %v1372_v42 = vpop.f32.mrf.mxu2 }
 0x26c   :  { %v1373_v20 = vadd.f32 %v1372_v42, %v1349_v59 }
 0x26e   :  { %v1395_v23 = vadd.f32 %v1394_v35, %v1373_v20 }
 0x270   :  { %v1406_v61 = vsel %vm800_vm8, %v1395_v23, -inf }
 0x271   :  { %1407 = vmax.xlane.f32.xlu2 %v1406_v61 }
 0x272   :  { %104 = vperm.xlu1 %5066, %v43_v43  }
 0x29c   :  { %v1399_v15 = vpop.xlane.xlu2 %1398 }
 0x29d   :  { %v1409_v2 = vsub.f32 %v948_v60, %v1399_v15 }
 0x29f   :  { %v1413_v34 = vmul.f32 1.442695, %v1409_v2 }
 0x2a1   :  { %5071 = vpow2.f32 %v1413_v34 }
 0x2a7   :  { %v5597_v16 = vpop.eup %5071 }
 0x2a8   :  { %v1421_v55 = vsel %vm800_vm8, %v5597_v16, 0.0 }
 0x2a9   :  { %1422 = vadd.xlane.f32.xlu0 %v1421_v55 }
 0x2b4   :  { %v1402_v29 = vpop.xlane.xlu0 %1401 }
 0x2b5   :  { %v1410_v54 = vsub.f32 %v1097_v52, %v1402_v29  ;;  %v591_v29 = vpop.f32.mrf.mxu0 }
 0x2b7   :  { %v1415_v33 = vmul.f32 1.442695, %v1410_v54 }
 0x2b9   :  { %5073 = vpow2.f32 %v1415_v33  ;;  %v657_v33 = vpop.f32.mrf.mxu1 }
 0x2bd   :  { %109 = vperm.xlu0 %5065, %v44_v5  }
 0x2bf   :  { %v5604_v22 = vpop.eup %5073 }
 0x2c0   :  { %v1424_v60 = vsel %vm800_vm8, %v5604_v22, 0.0 }
 0x2c1   :  { %1425 = vadd.xlane.f32.xlu2 %v1424_v60 }
 0x2c7   :  { %v5616_v15 = vpop.permute.xlu0 %99 }
 0x2c8   :  { %v273_v2 = vadd.f32 %v5527_v37, %v5616_v15 }
 0x2cc   :  { %v1405_v41 = vpop.xlane.xlu1 %1404 }
 0x2cd   :  { %v1411_v7 = vsub.f32 %v1246_v1, %v1405_v41  ;;  %v45_v1 = vld [vmem:[%s6423_s2 + $0x58] sm:$0xff] }
 0x2cf   :  { %v1417_v24 = vmul.f32 1.442695, %v1411_v7 }
 0x2d1   :  { %5075 = vpow2.f32 %v1417_v24 }
 0x2d7   :  { %v5608_v59 = vpop.eup %5075 }
 0x2d8   :  { %v1427_v52 = vsel %vm800_vm8, %v5608_v59, 0.0 }
 0x2d9   :  { %1428 = vadd.xlane.f32.xlu2 %v1427_v52 }
 0x2e4   :  { %v1408_v42 = vpop.xlane.xlu2 %1407  ;;  %v5626_v41 = vpop.permute.xlu1 %104 }
 0x2e5   :  { %v1412_v20 = vsub.f32 %v1395_v23, %v1408_v42  ;;  %v355_v23 = vadd.f32 %v5529_v12, %v273_v2  ;;  %v281_v37 = vadd.f32 %v5531_v58, %v5626_v41 }
 0x2e7   :  { %v1419_v35 = vmul.f32 1.442695, %v1412_v20  ;;  %v431_v34 = vadd.f32 %v5573_v48, %v355_v23  ;;  %v359_v48 = vadd.f32 %v5538_v49, %v281_v37  ;;  %v595_v49 = vpop.f32.mrf.mxu0 }
 0x2e9   :  { %5077 = vpow2.f32 %v1419_v35  ;;  %v518_v55 = vadd.f32 %v5571_v10, %v431_v34 }
 0x2eb   :  { %v592_v54 = vadd.f32 %v591_v29, %v518_v55 }
 0x2ed   :  { %v658_v60 = vadd.f32 %v657_v33, %v592_v54 }
 0x2ef   :  { %v5612_v43 = vpop.eup %5077  ;;  %v1494_v7 = vsel %vm800_vm8, %v658_v60, 0 }
 0x2f0   :  { %v1430_v61 = vsel %vm800_vm8, %v5612_v43, 0.0  ;;  %v5631_v52 = vand.u32 4294901760, %v1494_v7 }
 0x2f1   :  { %1431 = vadd.xlane.f32.xlu2 %v1430_v61 }
 0x2f2   :  { %v1517_v20 = vsub.f32 %v1494_v7, %v5631_v52 }
 0x2f4   :  { %v1518_v58 = vand.u32 4294901760, %v1517_v20 }
 0x2f6   :  { %v1519_v60 = vsub.f32 %v1517_v20, %v1518_v58 }
 0x309   :  { %114 = vperm.xlu2 %5067, %v45_v1   ;;  %v436_v1 = vadd.f32 %v5577_v50, %v359_v48  ;;  %v1520_v48 = vand.u32 4294901760, %v1519_v60 }
 0x30b   :  { %v524_v55 = vadd.f32 %v5575_v26, %v436_v1 }
 0x30d   :  { %v596_v7 = vadd.f32 %v595_v49, %v524_v55 }
 0x31c   :  { %v1423_v5 = vpop.xlane.xlu0 %1422 }
 0x31d   :  { %5079 = vrcp.f32 %v1423_v5  ;;  %v1444_v42 = vand.u32 2147483648, %v1423_v5  ;;  %v1442_v61 = vand.u32 2147483647, %v1423_v5  ;;  %vm1438_vm10 = vweird.f32 %v1423_v5 }
 0x31f   :  { %v1445_v23 = vor.u32 1.1754944e-38, %v1444_v42  ;;  %vm1443_vm12 = vcmp.eq.f32.partialorder %v1442_v61, 8.507059e+37 }
 0x323   :  { %v5080_v24 = vpop.eup %5079 }
 0x324   :  { %v1434_v12 = vmul.f32 %v5080_v24, %v1423_v5  ;;  %vm1439_vm9 = vweird.f32 %v5080_v24 }
 0x325   :  { %vm1440_vm11 = vmor %vm1438_vm10, %vm1439_vm9 }
 0x326   :  { %v1435_v10 = vsub.f32 1.0, %v1434_v12  ;;  %v661_v12 = vpop.f32.mrf.mxu1 }
 0x328   :  { %v1436_v35 = vmul.f32 %v5080_v24, %v1435_v10  ;;  %v662_v10 = vadd.f32 %v661_v12, %v596_v7  ;;  %v599_v12 = vpop.f32.mrf.mxu0 }
 0x32a   :  { %v1437_v2 = vadd.f32 %v5080_v24, %v1436_v35  ;;  %v1646_v42 = vsel %vm800_vm8, %v662_v10, 0 }
 0x32c   :  { %v1441_v34 = vsel %vm1440_vm11, %v5080_v24, %v1437_v2  ;;  %v5644_v2 = vand.u32 4294901760, %v1646_v42 }
 0x32d   :  { %v1446_v29 = vsel %vm1443_vm12, %v1445_v23, %v1441_v34 }
 0x32e   :  { %v1447_v54 = vmul.f32 %v5597_v16, %v1446_v29 }
 0x32f   :  { %v5639_v24 = vpop.permute.xlu0 %109 }
 0x330   :  { %v1497_v33 = vsel %vm800_vm8, %v1447_v54, 0  ;;  %v289_v35 = vadd.f32 %v5513_v63, %v5639_v24 }
 0x331   :  { %v1514_v37 = vand.u32 4294901760, %v1497_v33 }
 0x332   :  { %v363_v34 = vadd.f32 %v5515_v8, %v289_v35 }
 0x333   :  { %1515 = vmatpush.xpose.msra.mxu0 %v1514_v37  ;;  %1591 = vmatpush.xpose.msra.mxu3 %v1514_v37  ;;  %v1541_v50 = vsub.f32 %v1497_v33, %v1514_v37 }
 0x334   :  { %v1426_v5 = vpop.xlane.xlu2 %1425  ;;  %v441_v49 = vadd.f32 %v5581_v31, %v363_v34 }
 0x335   :  { %5081 = vrcp.f32 %v1426_v5  ;;  %1568 = vmatpush.xpose.msra.mxu2 %v1541_v50  ;;  %v1542_v26 = vand.u32 4294901760, %v1541_v50  ;;  %v1457_v63 = vand.u32 2147483647, %v1426_v5  ;;  %vm1453_vm14 = vweird.f32 %v1426_v5 }
 0x336   :  { %1521 = vmatmul.f32.vlgmr.msra.gmra.mxu0 %v1520_v48  ;;  %1595 = vmatmul.f32.vlgmr.msra.gmra.mxu3 %v1518_v58  ;;  %v1459_v58 = vand.u32 2147483648, %v1426_v5 }
 0x337   :  { %1617 = vmatpush.xpose.msrb.mxu0 %v1542_v26  ;;  %v1543_v16 = vsub.f32 %v1541_v50, %v1542_v26  ;;  %vm1458_vm9 = vcmp.eq.f32.partialorder %v1457_v63, 8.507059e+37 }
 0x338   :  { %1571 = vmatmul.f32.vlgmr.msra.gmra.mxu2 %v1517_v20  ;;  %v1669_v20 = vsub.f32 %v1646_v42, %v5644_v2  ;;  %v1460_v33 = vor.u32 1.1754944e-38, %v1459_v58 }
 0x339   :  { %v1544_v61 = vand.u32 4294901760, %v1543_v16  ;;  %v665_v16 = vpop.f32.mrf.mxu1 }
 0x33a   :  { %v1670_v60 = vand.u32 4294901760, %v1669_v20 }
 0x33b   :  { %v5082_v1 = vpop.eup %5081  ;;  %1545 = vmatpush.xpose.msra.mxu1 %v1544_v61 }
 0x33c   :  { %v1449_v23 = vmul.f32 %v5082_v1, %v1426_v5  ;;  %vm1454_vm13 = vweird.f32 %v5082_v1  ;;  %v1671_v48 = vsub.f32 %v1669_v20, %v1670_v60 }
 0x33d   :  { %vm1455_vm15 = vmor %vm1453_vm14, %vm1454_vm13 }
 0x33e   :  { %v1450_v55 = vsub.f32 1.0, %v1449_v23  ;;  %1619 = vmatmul.f32.vlgmr.msrb.gmra.mxu0 %v5631_v52  ;;  %1547 = vmatmul.f32.vlgmr.msra.gmra.mxu1 %v5631_v52  ;;  %v1672_v42 = vand.u32 4294901760, %v1671_v48 }
 0x33f   :  { %1639 = vmatpush.xpose.msrb.mxu1 %v1514_v37  ;;  %v530_v37 = vadd.f32 %v5579_v4, %v441_v49 }
 0x340   :  { %v1451_v29 = vmul.f32 %v5082_v1, %v1450_v55 }
 0x341   :  { %v600_v26 = vadd.f32 %v599_v12, %v530_v37 }
 0x342   :  { %v1452_v54 = vadd.f32 %v5082_v1, %v1451_v29 }
 0x343   :  { %v666_v61 = vadd.f32 %v665_v16, %v600_v26 }
 0x344   :  { %v1456_v8 = vsel %vm1455_vm15, %v5082_v1, %v1452_v54 }
 0x345   :  { %v1461_v7 = vsel %vm1458_vm9, %v1460_v33, %v1456_v8 }
 0x346   :  { %v1462_v50 = vmul.f32 %v5604_v22, %v1461_v7  ;;  %1641 = vmatmul.f32.vlgmr.msrb.gmra.mxu1 %v5631_v52  ;;  %v1798_v52 = vsel %vm800_vm8, %v666_v61, 0 }
 0x347   :  { %v5656_v34 = vand.u32 4294901760, %v1798_v52 }
 0x348   :  { %v1649_v10 = vsel %vm800_vm8, %v1462_v50, 0 }
 0x349   :  { %v1666_v31 = vand.u32 4294901760, %v1649_v10  ;;  %v1821_v63 = vsub.f32 %v1798_v52, %v5656_v34 }
 0x34b   :  { %1667 = vmatpush.xpose.msrb.mxu2 %v1666_v31  ;;  %1743 = vmatpush.xpose.msra.mxu1 %v1666_v31  ;;  %v1693_v5 = vsub.f32 %v1649_v10, %v1666_v31 }
 0x34c   :  { %v1429_v35 = vpop.xlane.xlu2 %1428 }
 0x34d   :  { %5083 = vrcp.f32 %v1429_v35  ;;  %1720 = vmatpush.xpose.msra.mxu0 %v1693_v5  ;;  %v1694_v4 = vand.u32 4294901760, %v1693_v5  ;;  %v1474_v29 = vand.u32 2147483648, %v1429_v35  ;;  %vm1468_vm11 = vweird.f32 %v1429_v35 }
 0x34e   :  { %1673 = vmatmul.f32.vlgmr.msrb.gmra.mxu2 %v1672_v42  ;;  %1747 = vmatmul.f32.vlgmr.msra.gmra.mxu1 %v1670_v60  ;;  %v1822_v60 = vand.u32 4294901760, %v1821_v63 }
 0x34f   :  { %1769 = vmatpush.xpose.msra.mxu2 %v1694_v4  ;;  %v1695_v22 = vsub.f32 %v1693_v5, %v1694_v4  ;;  %v1475_v33 = vor.u32 1.1754944e-38, %v1474_v29  ;;  %v603_v29 = vpop.f32.mrf.mxu0 }
 0x350   :  { %1723 = vmatmul.f32.vlgmr.msra.gmra.mxu0 %v1669_v20  ;;  %v1472_v20 = vand.u32 2147483647, %v1429_v35  ;;  %v1823_v12 = vsub.f32 %v1821_v63, %v1822_v60 }
 0x351   :  { %v1696_v1 = vand.u32 4294901760, %v1695_v22 }
 0x352   :  { %vm1473_vm13 = vcmp.eq.f32.partialorder %v1472_v20, 8.507059e+37  ;;  %v1824_v26 = vand.u32 4294901760, %v1823_v12  ;;  %v669_v20 = vpop.f32.mrf.mxu1 }
 0x353   :  { %v5084_v23 = vpop.eup %5083  ;;  %1697 = vmatpush.xpose.msrb.mxu3 %v1696_v1 }
 0x354   :  { %v1464_v55 = vmul.f32 %v5084_v23, %v1429_v35  ;;  %vm1469_vm10 = vweird.f32 %v5084_v23 }
 0x355   :  { %vm1470_vm12 = vmor %vm1468_vm11, %vm1469_vm10 }
 0x356   :  { %v1465_v58 = vsub.f32 1.0, %v1464_v55  ;;  %1771 = vmatmul.f32.vlgmr.msra.gmra.mxu2 %v5644_v2  ;;  %1699 = vmatmul.f32.vlgmr.msrb.gmra.mxu3 %v5644_v2 }
 0x357   :  { %1791 = vmatpush.xpose.msra.mxu3 %v1666_v31 }
 0x358   :  { %v1466_v49 = vmul.f32 %v5084_v23, %v1465_v58 }
 0x35a   :  { %v1467_v54 = vadd.f32 %v5084_v23, %v1466_v49 }
 0x35c   :  { %v1471_v8 = vsel %vm1470_vm12, %v5084_v23, %v1467_v54 }
 0x35d   :  { %v1476_v7 = vsel %vm1473_vm13, %v1475_v33, %v1471_v8 }
 0x35e   :  { %v1477_v37 = vmul.f32 %v5608_v59, %v1476_v7  ;;  %1793 = vmatmul.f32.vlgmr.msra.gmra.mxu3 %v5644_v2 }
 0x360   :  { %v1801_v50 = vsel %vm800_vm8, %v1477_v37, 0 }
 0x361   :  { %v1818_v48 = vand.u32 4294901760, %v1801_v50 }
 0x363   :  { %1819 = vmatpush.xpose.msrb.mxu0 %v1818_v48  ;;  %1895 = vmatpush.xpose.msrb.mxu3 %v1818_v48  ;;  %v1845_v10 = vsub.f32 %v1801_v50, %v1818_v48 }
 0x364   :  { %v1432_v31 = vpop.xlane.xlu2 %1431 }
 0x365   :  { %5085 = vrcp.f32 %v1432_v31  ;;  %1872 = vmatpush.xpose.msrb.mxu2 %v1845_v10  ;;  %v1846_v16 = vand.u32 4294901760, %v1845_v10  ;;  %v1489_v22 = vand.u32 2147483648, %v1432_v31  ;;  %v1487_v23 = vand.u32 2147483647, %v1432_v31 }
 0x366   :  { %1825 = vmatmul.f32.vlgmr.msrb.gmra.mxu0 %v1824_v26  ;;  %1899 = vmatmul.f32.vlgmr.msrb.gmra.mxu3 %v1822_v60  ;;  %vm1483_vm15 = vweird.f32 %v1432_v31 }
 0x367   :  { %1921 = vmatpush.xpose.msra.mxu0 %v1846_v16  ;;  %v1847_v5 = vsub.f32 %v1845_v10, %v1846_v16  ;;  %vm1488_vm10 = vcmp.eq.f32.partialorder %v1487_v23, 8.507059e+37 }
 0x368   :  { %1875 = vmatmul.f32.vlgmr.msrb.gmra.mxu2 %v1821_v63  ;;  %v1490_v63 = vor.u32 1.1754944e-38, %v1489_v22 }
 0x369   :  { %v1848_v59 = vand.u32 4294901760, %v1847_v5 }
 0x36b   :  { %v5086_v42 = vpop.eup %5085  ;;  %1849 = vmatpush.xpose.msrb.mxu1 %v1848_v59 }
 0x36c   :  { %v1479_v2 = vmul.f32 %v5086_v42, %v1432_v31  ;;  %v5664_v35 = vpop.permute.xlu2 %114  ;;  %vm1484_vm14 = vweird.f32 %v5086_v42 }
 0x36d   :  { %6514 = vst [vmem:[#allocation36_spill] sm:$0xff] %v5664_v35  ;;  %v297_v61 = vadd.f32 %v5521_v45, %v5664_v35  ;;  %vm1485_vm9 = vmor %vm1483_vm15, %vm1484_vm14 }
 0x36e   :  { %v1480_v4 = vsub.f32 1.0, %v1479_v2  ;;  %1923 = vmatmul.f32.vlgmr.msra.gmra.mxu0 %v5656_v34  ;;  %1851 = vmatmul.f32.vlgmr.msrb.gmra.mxu1 %v5656_v34 }
 0x36f   :  { %1943 = vmatpush.xpose.msra.mxu1 %v1818_v48  ;;  %v367_v52 = vadd.f32 %v5523_v46, %v297_v61 }
 0x370   :  { %v1481_v1 = vmul.f32 %v5086_v42, %v1480_v4 }
 0x371   :  { %v446_v55 = vadd.f32 %v5585_v14, %v367_v52 }
 0x372   :  { %v1482_v58 = vadd.f32 %v5086_v42, %v1481_v1 }
 0x373   :  { %v536_v45 = vadd.f32 %v5583_v32, %v446_v55 }
 0x374   :  { %v1486_v49 = vsel %vm1485_vm9, %v5086_v42, %v1482_v58 }
 0x375   :  { %v1491_v54 = vsel %vm1488_vm10, %v1490_v63, %v1486_v49  ;;  %v604_v33 = vadd.f32 %v603_v29, %v536_v45 }
 0x376   :  { %v1492_v46 = vmul.f32 %v5612_v43, %v1491_v54  ;;  %1945 = vmatmul.f32.vlgmr.msra.gmra.mxu1 %v5656_v34 }
 0x377   :  { %v670_v60 = vadd.f32 %v669_v20, %v604_v33 }
 0x378   :  { %v1953_v8 = vsel %vm800_vm8, %v1492_v46, 0 }
 0x379   :  { %v1950_v14 = vsel %vm800_vm8, %v670_v60, 0  ;;  %v1970_v7 = vand.u32 4294901760, %v1953_v8 }
 0x37a   :  { %v1972_v37 = vand.u32 4294901760, %v1950_v14 }
 0x37b   :  { %1971 = vmatpush.xpose.msra.mxu2 %v1970_v7  ;;  %2047 = vmatpush.xpose.msrb.mxu1 %v1970_v7  ;;  %v1997_v12 = vsub.f32 %v1953_v8, %v1970_v7 }
 0x37c   :  { %v1973_v32 = vsub.f32 %v1950_v14, %v1972_v37  ;;  %v30_v14 = vld [vmem:[%s6422_s1 + $0x60] sm:$0xff] }
 0x37d   :  { %2024 = vmatpush.xpose.msrb.mxu0 %v1997_v12  ;;  %v1998_v50 = vand.u32 4294901760, %v1997_v12 }
 0x37e   :  { %v1974_v48 = vand.u32 4294901760, %v1973_v32 }
 0x37f   :  { %2073 = vmatpush.xpose.msrb.mxu2 %v1998_v50  ;;  %v1999_v10 = vsub.f32 %v1997_v12, %v1998_v50  ;;  %v2102_v12 = vsel %vm146_vm7, %v30_v14, 0 }
 0x380   :  { %v1975_v26 = vsub.f32 %v1973_v32, %v1974_v48  ;;  %2027 = vmatmul.f32.vlgmr.msrb.gmra.mxu0 %v1973_v32  ;;  %2051 = vmatmul.f32.vlgmr.msrb.gmra.mxu1 %v1974_v48 }
 0x381   :  { %v2000_v43 = vand.u32 4294901760, %v1999_v10 }
 0x382   :  { %v1976_v34 = vand.u32 4294901760, %v1975_v26 }
 0x383   :  { %2001 = vmatpush.xpose.msra.mxu3 %v2000_v43  ;;  %v5681_v43 = vand.u32 4294901760, %v2102_v12 }
 0x384   :  { %1977 = vmatmul.f32.vlgmr.msra.gmra.mxu2 %v1976_v34 }
 0x385   :  { %6515 = vst [vmem:[#allocation37_spill] sm:$0xff] %v5681_v43 }
 0x386   :  { %2003 = vmatmul.f32.vlgmr.msra.gmra.mxu3 %v1972_v37 }
 0x387   :  { %2095 = vmatpush.xpose.msrb.mxu3 %v1970_v7 }
 0x38c   :  { %2075 = vmatmul.f32.vlgmr.msrb.gmra.mxu2 %v1972_v37 }
 0x38e   :  { %2097 = vmatmul.f32.vlgmr.msrb.gmra.mxu3 %v1972_v37 }
 0x3b3   :  { %v1522_v16 = vpop.f32.mrf.mxu0 }
 0x3b9   :  { %v1596_v59 = vpop.f32.mrf.mxu3 }
 0x3bb   :  { %v1548_v31 = vpop.f32.mrf.mxu1  ;;  %v1572_v5 = vpop.f32.mrf.mxu2 }
 0x3bc   :  { %v1620_v2 = vpop.f32.mrf.mxu0  ;;  %v1549_v49 = vadd.f32 %v1548_v31, %v1522_v16 }
 0x3be   :  { %v1573_v46 = vadd.f32 %v1572_v5, %v1549_v49  ;;  %v5114_v49 = vld [vmem:[%s6421_s0 + $0x6] sm:$0x3] }
 0x3c0   :  { %v1597_v32 = vadd.f32 %v1596_v59, %v1573_v46  ;;  %v5111_v59 = vld [vmem:[%s6421_s0] sm:$0x3] }
 0x3c2   :  { %v1621_v31 = vadd.f32 %v1620_v2, %v1597_v32  ;;  %v5112_v2 = vld [vmem:[%s6421_s0 + $0x4] sm:$0x3]  ;;  %v5116_v32 = vld [vmem:[%s6421_s0 + $0xa] sm:$0x3] }
 0x3c3   :  { %v1642_v42 = vpop.f32.mrf.mxu1 }
 0x3cb   :  { %v1748_v22 = vpop.f32.mrf.mxu1 }
 0x3cd   :  { %v1724_v52 = vpop.f32.mrf.mxu0 }
 0x3d1   :  { %v1674_v61 = vpop.f32.mrf.mxu2 }
 0x3d9   :  { %v1700_v4 = vpop.f32.mrf.mxu3  ;;  %v1772_v1 = vpop.f32.mrf.mxu2 }
 0x3da   :  { %v1701_v63 = vadd.f32 %v1700_v4, %v1674_v61  ;;  %v31_v61 = vld [vmem:[%s6422_s1 + $0x68] sm:$0xff] }
 0x3dc   :  { %v1725_v54 = vadd.f32 %v1724_v52, %v1701_v63  ;;  %v2595_v52 = vrot.slane %v5111_v59, 1  ;;  %v2105_v63 = vsel %vm146_vm7, %v31_v61, 0 }
 0x3de   :  { %v1749_v7 = vadd.f32 %v1748_v22, %v1725_v54  ;;  %v1643_v54 = vadd.f32 %v1642_v42, %v1621_v31  ;;  %v2603_v42 = vrot.slane %v5116_v32, 4 }
 0x3e0   :  { %v1773_v10 = vadd.f32 %v1772_v1, %v1749_v7  ;;  %v5690_v1 = vsub.f32 %v2102_v12, %v5681_v43 }
 0x3e1   :  { %v1794_v23 = vpop.f32.mrf.mxu3 }
 0x3e2   :  { %v1795_v4 = vadd.f32 %v1794_v23, %v1773_v10  ;;  %6516 = vst [vmem:[#allocation38_spill] sm:$0xff] %v5690_v1  ;;  %v5113_v23 = vld [vmem:[%s6421_s0 + $0x2] sm:$0x3]  ;;  %v5718_v10 = vand.u32 4294901760, %v2105_v63 }
 0x3e3   :  { %v1826_v58 = vpop.f32.mrf.mxu0 }
 0x3e4   :  { %v5709_v7 = vand.u32 4294901760, %v1795_v4  ;;  %6518 = vst [vmem:[#allocation40_spill] sm:$0xff] %v5718_v10 }
 0x3e9   :  { %v1900_v33 = vpop.f32.mrf.mxu3 }
 0x3eb   :  { %v1852_v55 = vpop.f32.mrf.mxu1  ;;  %v1876_v45 = vpop.f32.mrf.mxu2 }
 0x3ec   :  { %v1853_v29 = vadd.f32 %v1852_v55, %v1826_v58  ;;  %v1924_v8 = vpop.f32.mrf.mxu0  ;;  %v2597_v58 = vrot.slane %v5112_v2, 7  ;;  %v32_v2 = vld [vmem:[%s6422_s1 + $0x70] sm:$0xff] }
 0x3ee   :  { %v1877_v20 = vadd.f32 %v1876_v45, %v1853_v29  ;;  %v2596_v45 = vsel %vm126_vm0, %v5113_v23, %v2595_v52  ;;  %v5728_v52 = vand.u32 4294901760, %v1643_v54 }
 0x3f0   :  { %v1901_v60 = vadd.f32 %v1900_v33, %v1877_v20  ;;  %v2599_v20 = vrot.slane %v5114_v49, 6 }
 0x3f2   :  { %v1925_v50 = vadd.f32 %v1924_v8, %v1901_v60  ;;  %v2598_v60 = vsel %vm129_vm1, %v2597_v58, %v2596_v45  ;;  %v5115_v8 = vld [vmem:[%s6421_s0 + $0x8] sm:$0x3]  ;;  %v2191_v45 = vsub.f32 %v1795_v4, %v5709_v7  ;;  %v2197_v4 = vsub.f32 %v1643_v54, %v5728_v52 }
 0x3f3   :  { %v1946_v37 = vpop.f32.mrf.mxu1  ;;  %v2601_v14 = vrot.slane %v5115_v8, 5  ;;  %v2600_v12 = vsel %vm132_vm2, %v2599_v20, %v2598_v60  ;;  %v5742_v20 = vsub.f32 %v2105_v63, %v5718_v10  ;;  %v2108_v60 = vsel %vm146_vm7, %v32_v2, 0 }
 0x3f4   :  { %v1947_v16 = vadd.f32 %v1946_v37, %v1925_v50  ;;  %v2192_v32 = vand.u32 4294901760, %v2191_v45 }
 0x3f5   :  { %6519 = vst [vmem:[#allocation41_spill] sm:$0xff] %v5742_v20 }
 0x3f6   :  { %v5703_v33 = vand.u32 4294901760, %v1947_v16 }
 0x3fd   :  { %v2028_v5 = vpop.f32.mrf.mxu0  ;;  %v2052_v55 = vpop.f32.mrf.mxu1 }
 0x407   :  { %v1978_v48 = vpop.f32.mrf.mxu2 }
 0x409   :  { %v2004_v26 = vpop.f32.mrf.mxu3 }
 0x40a   :  { %v2005_v34 = vadd.f32 %v2004_v26, %v1978_v48  ;;  %v5716_v48 = vand.u32 4294901760, %v5690_v1  ;;  %v2602_v26 = vsel %vm135_vm3, %v2601_v14, %v2600_v12 }
 0x40b   :  { %v2604_v61 = vsel %vm138_vm4, %v2603_v42, %v2602_v26  ;;  %v5758_v42 = vand.u32 4294901760, %v5742_v20 }
 0x40c   :  { %v2029_v22 = vadd.f32 %v2028_v5, %v2005_v34  ;;  %6517 = vst [vmem:[#allocation39_spill] sm:$0xff] %v5716_v48  ;;  %v5117_v34 = vld [vmem:[%s6421_s0 + $0xc] sm:$0x3]  ;;  %v2136_v49 = vsub.f32 %v5690_v1, %v5716_v48 }
 0x40d   :  { %v2605_v31 = vrot.slane %v5117_v34, 3  ;;  %6521 = vst [vmem:[#allocation43_spill] sm:$0xff] %v5758_v42  ;;  %v2144_v2 = vsub.f32 %v5742_v20, %v5758_v42 }
 0x40e   :  { %v2053_v29 = vadd.f32 %v2052_v55, %v2029_v22  ;;  %v5118_v22 = vld [vmem:[%s6421_s0 + $0xe] sm:$0x3]  ;;  %v2185_v55 = vsub.f32 %v1947_v16, %v5703_v33  ;;  %v5755_v12 = vand.u32 4294901760, %v2136_v49 }
 0x40f   :  { %v2076_v46 = vpop.f32.mrf.mxu2  ;;  %v2607_v59 = vrot.slane %v5118_v22, 2  ;;  %v2606_v58 = vsel %vm141_vm5, %v2605_v31, %v2604_v61  ;;  %v2198_v31 = vand.u32 4294901760, %v2197_v4 }
 0x410   :  { %v2077_v37 = vadd.f32 %v2076_v46, %v2053_v29  ;;  %v2186_v14 = vand.u32 4294901760, %v2185_v55  ;;  %6520 = vst [vmem:[#allocation42_spill] sm:$0xff] %v5755_v12 }
 0x411   :  { %v2098_v50 = vpop.f32.mrf.mxu3  ;;  %v2608_v23 = vsel %vm144_vm6, %v2607_v59, %v2606_v58  ;;  %v2193_v59 = vsub.f32 %v2191_v45, %v2192_v32 }
 0x412   :  { %v2099_v5 = vadd.f32 %v2098_v50, %v2077_v37  ;;  %v2609_v16 = vsel %vm146_vm7, %v2608_v23, 0  ;;  %v5760_v50 = vand.u32 4294901760, %v2108_v60  ;;  %v2187_v34 = vsub.f32 %v2185_v55, %v2186_v14 }
 0x413   :  { %v5749_v8 = vand.u32 4294901760, %v2609_v16 }
 0x414   :  { %v5735_v29 = vand.u32 4294901760, %v2099_v5  ;;  %6522 = vst [vmem:[#allocation44_spill] sm:$0xff] %v5760_v50  ;;  %v2188_v49 = vand.u32 4294901760, %v2187_v34  ;;  %v6548_v34 = vld [vmem:[#allocation7_spill] sm:$0xff] }
 0x415   :  { %v2741_v37 = vsub.f32 %v2609_v16, %v5749_v8  ;;  %v2199_v16 = vsub.f32 %v2197_v4, %v2198_v31 }
 0x416   :  { %v2179_v46 = vsub.f32 %v2099_v5, %v5735_v29  ;;  %2126 = vmatpush.msra.mxu0 %v5735_v29  ;;  %2277 = vmatpush.msra.mxu3 %v5735_v29  ;;  %v33_v5 = vld [vmem:[%s6422_s1 + $0x78] sm:$0xff] }
 0x417   :  { %v2742_v26 = vand.u32 4294901760, %v2741_v37  ;;  %v2111_v58 = vsel %vm146_vm7, %v33_v5, 0 }
 0x418   :  { %2128 = vmatpush.msra.mxu0 %v5703_v33  ;;  %2233 = vmatpush.msra.mxu2 %v2179_v46  ;;  %v2180_v63 = vand.u32 4294901760, %v2179_v46 }
 0x419   :  { %2279 = vmatpush.msra.mxu3 %v5703_v33  ;;  %v2743_v22 = vsub.f32 %v2741_v37, %v2742_v26 }
 0x41a   :  { %2130 = vmatpush.msra.mxu0 %v5709_v7  ;;  %2236 = vmatpush.msra.mxu2 %v2185_v55  ;;  %v2181_v54 = vsub.f32 %v2179_v46, %v2180_v63  ;;  %v5773_v55 = vsub.f32 %v2108_v60, %v5760_v50  ;;  %v5778_v46 = vand.u32 4294901760, %v2144_v2 }
 0x41b   :  { %2281 = vmatpush.msra.mxu3 %v5709_v7  ;;  %v2744_v23 = vand.u32 4294901760, %v2743_v22  ;;  %v6551_v22 = vld [vmem:[#allocation23_spill] sm:$0xff] }
 0x41c   :  { %2132 = vmatpush.msra.mxu0 %v5728_v52  ;;  %2239 = vmatpush.msra.mxu2 %v2191_v45  ;;  %v2182_v61 = vand.u32 4294901760, %v2181_v54  ;;  %6523 = vst [vmem:[#allocation45_spill] sm:$0xff] %v5773_v55  ;;  %v2194_v45 = vand.u32 4294901760, %v2193_v59  ;;  %v5781_v60 = vand.u32 4294901760, %v5773_v55  ;;  %v2200_v54 = vand.u32 4294901760, %v2199_v16 }
 0x41d   :  { %2283 = vmatpush.msra.mxu3 %v5728_v52  ;;  %2138 = vmatmul.f32.vlgmr.msra.gmra.mxu0 %v5755_v12  ;;  %6524 = vst [vmem:[#allocation46_spill] sm:$0xff] %v5778_v46 }
 0x41e   :  { %2324 = vmatpush.msrb.mxu0 %v2180_v63  ;;  %2183 = vmatpush.msra.mxu1 %v2182_v61  ;;  %6525 = vst [vmem:[#allocation47_spill] sm:$0xff] %v5781_v60  ;;  %v5783_v63 = vand.u32 4294901760, %v2111_v58  ;;  %v6550_v61 = vld [vmem:[#allocation25_spill] sm:$0xff] }
 0x41f   :  { %2242 = vmatpush.msra.mxu2 %v2197_v4  ;;  %2287 = vmatmul.f32.vlgmr.msra.gmra.mxu3 %v5716_v48  ;;  %v2152_v4 = vsub.f32 %v5773_v55, %v5781_v60 }
 0x420   :  { %2245 = vmatmul.f32.vlgmr.msra.gmra.mxu2 %v5690_v1  ;;  %2328 = vmatpush.msrb.mxu0 %v2186_v14  ;;  %6526 = vst [vmem:[#allocation48_spill] sm:$0xff] %v5783_v63  ;;  %v5791_v14 = vsub.f32 %v2111_v58, %v5783_v63 }
 0x421   :  { %2189 = vmatpush.msra.mxu1 %v2188_v49  ;;  %2627 = vmatpush.xpose.msrb.mxu2 %v5749_v8  ;;  %v6552_v49 = vld [vmem:[#allocation29_spill] sm:$0xff] }
 0x422   :  { %2332 = vmatpush.msrb.mxu0 %v2192_v32  ;;  %2745 = vmatpush.xpose.msrb.mxu3 %v2744_v23  ;;  %6527 = vst [vmem:[#allocation49_spill] sm:$0xff] %v5791_v14  ;;  %v5798_v32 = vand.u32 4294901760, %v2152_v4 }
 0x423   :  { %2195 = vmatpush.msra.mxu1 %v2194_v45 }
 0x424   :  { %2336 = vmatpush.msrb.mxu0 %v2198_v31  ;;  %6528 = vst [vmem:[#allocation50_spill] sm:$0xff] %v5798_v32  ;;  %v6549_v31 = vld [vmem:[#allocation12_spill] sm:$0xff] }
 0x425   :  { %2982 = vmatpush.xpose.msra.mxu2 %v2742_v26  ;;  %2201 = vmatpush.msra.mxu1 %v2200_v54  ;;  %v5801_v26 = vand.u32 4294901760, %v5791_v14  ;;  %v6553_v54 = vld [vmem:[#allocation27_spill] sm:$0xff] }
 0x426   :  { %3048 = vmatpush.xpose.msra.mxu3 %v5749_v8  ;;  %2146 = vmatmul.f32.gmra.mxu0 %v5778_v46 }
 0x427   :  { %2203 = vmatmul.f32.vlgmr.msra.gmra.mxu1 %v5681_v43  ;;  %2812 = vmatpush.xpose.msra.mxu0 %v2741_v37  ;;  %6529 = vst [vmem:[#allocation51_spill] sm:$0xff] %v5801_v26  ;;  %v6547_v37 = vld [vmem:[#allocation20_spill] sm:$0xff] }
 0x428   :  { %2367 = vmatpush.msrb.mxu1 %v5735_v29  ;;  %2293 = vmatmul.f32.gmra.mxu3 %v5758_v42  ;;  %v2160_v29 = vsub.f32 %v5791_v14, %v5801_v26 }
 0x429   :  { %2250 = vmatmul.f32.gmra.mxu2 %v5742_v20 }
 0x42a   :  { %2369 = vmatpush.msrb.mxu1 %v5703_v33  ;;  %v5812_v33 = vand.u32 4294901760, %v2160_v29 }
 0x42c   :  { %2371 = vmatpush.msrb.mxu1 %v5709_v7  ;;  %6530 = vst [vmem:[#allocation52_spill] sm:$0xff] %v5812_v33  ;;  %v6544_v7 = vld [vmem:[#allocation5_spill] sm:$0xff] }
 0x42e   :  { %2373 = vmatpush.msrb.mxu1 %v5728_v52  ;;  %2154 = vmatmul.f32.gmra.mxu0 %v5798_v32  ;;  %v6545_v52 = vld [vmem:[#allocation11_spill] sm:$0xff] }
 0x42f   :  { %2207 = vmatmul.f32.gmra.mxu1 %v5718_v10 }
 0x430   :  { %2299 = vmatmul.f32.gmra.mxu3 %v5781_v60  ;;  %2890 = vmatpush.xpose.msra.mxu1 %v5749_v8  ;;  %v6546_v8 = vld [vmem:[#allocation22_spill] sm:$0xff] }
 0x431   :  { %2255 = vmatmul.f32.gmra.mxu2 %v5773_v55 }
 0x436   :  { %2162 = vmatmul.f32.gmra.mxu0 %v5812_v33 }
 0x437   :  { %2211 = vmatmul.f32.gmra.mxu1 %v5760_v50 }
 0x438   :  { %2305 = vmatmul.f32.gmra.mxu3 %v5801_v26 }
 0x439   :  { %2260 = vmatmul.f32.gmra.mxu2 %v5791_v14 }
 0x43e   :  { %2338 = vmatmul.f32.vlgmr.msrb.gmra.mxu0 %v5681_v43 }
 0x43f   :  { %2215 = vmatmul.f32.gmra.mxu1 %v5783_v63 }
 0x440   :  { %2747 = vmatmul.f32.vlgmr.msrb.gmra.mxu3 %v5230_v28 }
 0x441   :  { %2633 = vmatmul.f32.vlgmr.msrb.gmra.mxu2 %v5279_v53  ;;  %v6532_v53 = vld [vmem:[#allocation21_spill] sm:$0xff] }
 0x446   :  { %2342 = vmatmul.f32.gmra.mxu0 %v5718_v10 }
 0x447   :  { %2375 = vmatmul.f32.vlgmr.msrb.gmra.mxu1 %v5681_v43 }
 0x448   :  { %2751 = vmatmul.f32.gmra.mxu3 %v5234_v30 }
 0x449   :  { %2641 = vmatmul.f32.gmra.mxu2 %v5299_v0  ;;  %v6535_v0 = vld [vmem:[#allocation14_spill] sm:$0xff] }
 0x44e   :  { %2346 = vmatmul.f32.gmra.mxu0 %v5760_v50 }
 0x44f   :  { %2379 = vmatmul.f32.gmra.mxu1 %v5718_v10 }
 0x450   :  { %2755 = vmatmul.f32.gmra.mxu3 %v5267_v47 }
 0x451   :  { %2649 = vmatmul.f32.gmra.mxu2 %v5324_v9  ;;  %v6536_v9 = vld [vmem:[#allocation24_spill] sm:$0xff] }
 0x456   :  { %2350 = vmatmul.f32.gmra.mxu0 %v5783_v63 }
 0x457   :  { %2383 = vmatmul.f32.gmra.mxu1 %v5760_v50 }
 0x458   :  { %2759 = vmatmul.f32.gmra.mxu3 %v5306_v3 }
 0x459   :  { %2657 = vmatmul.f32.gmra.mxu2 %v5347_v17  ;;  %v6539_v17 = vld [vmem:[#allocation16_spill] sm:$0xff] }
 0x45e   :  { %2815 = vmatmul.f32.vlgmr.msra.gmra.mxu0 %v5244_v36  ;;  %v6531_v36 = vld [vmem:[#allocation13_spill] sm:$0xff] }
 0x45f   :  { %2387 = vmatmul.f32.gmra.mxu1 %v5783_v63 }
 0x460   :  { %2763 = vmatmul.f32.gmra.mxu3 %v5329_v11 }
 0x461   :  { %2665 = vmatmul.f32.gmra.mxu2 %v5370_v25  ;;  %v6540_v25 = vld [vmem:[#allocation28_spill] sm:$0xff] }
 0x466   :  { %2820 = vmatmul.f32.gmra.mxu0 %v5250_v38  ;;  %v6533_v38 = vld [vmem:[#allocation26_spill] sm:$0xff] }
 0x467   :  { %2894 = vmatmul.f32.vlgmr.msra.gmra.mxu1 %v5259_v44  ;;  %v6534_v44 = vld [vmem:[#allocation15_spill] sm:$0xff] }
 0x468   :  { %2767 = vmatmul.f32.gmra.mxu3 %v5352_v19 }
 0x469   :  { %2673 = vmatmul.f32.gmra.mxu2 %v5393_v39  ;;  %v6542_v39 = vld [vmem:[#allocation19_spill] sm:$0xff] }
 0x46e   :  { %2825 = vmatmul.f32.gmra.mxu0 %v5287_v57  ;;  %v6537_v57 = vld [vmem:[#allocation30_spill] sm:$0xff] }
 0x46f   :  { %2900 = vmatmul.f32.gmra.mxu1 %v5274_v51  ;;  %v6538_v51 = vld [vmem:[#allocation17_spill] sm:$0xff] }
 0x470   :  { %2771 = vmatmul.f32.gmra.mxu3 %v5375_v27 }
 0x471   :  { %2681 = vmatmul.f32.gmra.mxu2 %v5416_v56  ;;  %v6543_v56 = vld [vmem:[#allocation18_spill] sm:$0xff] }
 0x476   :  { %2830 = vmatmul.f32.gmra.mxu0 %v5318_v6  ;;  %v6541_v6 = vld [vmem:[#allocation32_spill] sm:$0xff] }
 0x477   :  { %2906 = vmatmul.f32.gmra.mxu1 %v6531_v36 }
 0x478   :  { %2775 = vmatmul.f32.gmra.mxu3 %v6532_v53 }
 0x479   :  { %2689 = vmatmul.f32.gmra.mxu2 %v6533_v38 }
 0x47e   :  { %2835 = vmatmul.f32.gmra.mxu0 %v6534_v44  ;;  %v6554_v44 = vld [vmem:[#allocation6_spill] sm:$0xff] }
 0x47f   :  { %2912 = vmatmul.f32.gmra.mxu1 %v6535_v0 }
 0x480   :  { %2779 = vmatmul.f32.gmra.mxu3 %v6536_v9 }
 0x481   :  { %2697 = vmatmul.f32.gmra.mxu2 %v6537_v57  ;;  %v6555_v57 = vld [vmem:[#allocation31_spill] sm:$0xff] }
 0x486   :  { %2840 = vmatmul.f32.gmra.mxu0 %v6538_v51 }
 0x487   :  { %2918 = vmatmul.f32.gmra.mxu1 %v6539_v17 }
 0x488   :  { %2783 = vmatmul.f32.gmra.mxu3 %v6540_v25 }
 0x489   :  { %2705 = vmatmul.f32.gmra.mxu2 %v6541_v6 }
 0x48e   :  { %2845 = vmatmul.f32.gmra.mxu0 %v6542_v39 }
 0x48f   :  { %2924 = vmatmul.f32.gmra.mxu1 %v6543_v56 }
 0x490   :  { %2787 = vmatmul.f32.gmra.mxu3 %v6544_v7 }
 0x491   :  { %2713 = vmatmul.f32.gmra.mxu2 %v6545_v52  ;;  %v6556_v52 = vld [vmem:[#allocation9_spill] sm:$0xff] }
 0x496   :  { %2850 = vmatmul.f32.gmra.mxu0 %v6546_v8 }
 0x497   :  { %2930 = vmatmul.f32.gmra.mxu1 %v6547_v37  ;;  %v6557_v37 = vld [vmem:[#allocation8_spill] sm:$0xff] }
 0x498   :  { %2791 = vmatmul.f32.gmra.mxu3 %v6548_v34 }
 0x499   :  { %2721 = vmatmul.f32.gmra.mxu2 %v6549_v31 }
 0x49a   :  { %v2139_v5 = vpop.f32.mrf.mxu0 }
 0x49e   :  { %2855 = vmatmul.f32.gmra.mxu0 %v6550_v61 }
 0x49f   :  { %2936 = vmatmul.f32.gmra.mxu1 %v6551_v22 }
 0x4a0   :  { %3050 = vmatmul.f32.vlgmr.msra.gmra.mxu3 %v5230_v28 }
 0x4a1   :  { %2984 = vmatmul.f32.vlgmr.msra.gmra.mxu2 %v5230_v28 }
 0x4a2   :  { %v2288_v59 = vpop.f32.mrf.mxu3 }
 0x4a3   :  { %v2246_v58 = vpop.f32.mrf.mxu2  ;;  %v2147_v16 = vpop.f32.mrf.mxu0 }
 0x4a4   :  { %v2204_v2 = vpop.f32.mrf.mxu1 }
 0x4a5   :  { %v2205_v23 = vadd.f32 %v2204_v2, %v2139_v5 }
 0x4a6   :  { %2860 = vmatmul.f32.gmra.mxu0 %v6552_v49 }
 0x4a7   :  { %v2247_v45 = vadd.f32 %v2246_v58, %v2205_v23  ;;  %2942 = vmatmul.f32.gmra.mxu1 %v6553_v54  ;;  %v6558_v58 = vld [vmem:[#allocation10_spill] sm:$0xff] }
 0x4a8   :  { %3054 = vmatmul.f32.gmra.mxu3 %v5234_v30 }
 0x4a9   :  { %v5873_v4 = vadd.f32 %v2288_v59, %v2247_v45  ;;  %2988 = vmatmul.f32.gmra.mxu2 %v5234_v30 }
 0x4ab   :  { %v2294_v29 = vpop.f32.mrf.mxu3  ;;  %v2155_v51 = vpop.f32.mrf.mxu0 }
 0x4ac   :  { %v2208_v36 = vpop.f32.mrf.mxu1  ;;  %v2251_v38 = vpop.f32.mrf.mxu2 }
 0x4ad   :  { %v2209_v28 = vadd.f32 %v2208_v36, %v2147_v16 }
 0x4ae   :  { %2865 = vmatmul.f32.gmra.mxu0 %v6554_v44 }
 0x4af   :  { %v2252_v0 = vadd.f32 %v2251_v38, %v2209_v28  ;;  %2948 = vmatmul.f32.gmra.mxu1 %v6555_v57 }
 0x4b0   :  { %3058 = vmatmul.f32.gmra.mxu3 %v5267_v47 }
 0x4b1   :  { %v5879_v17 = vadd.f32 %v2294_v29, %v2252_v0  ;;  %2992 = vmatmul.f32.gmra.mxu2 %v5267_v47 }
 0x4b3   :  { %v2300_v6 = vpop.f32.mrf.mxu3  ;;  %v2163_v5 = vpop.f32.mrf.mxu0 }
 0x4b4   :  { %v2212_v39 = vpop.f32.mrf.mxu1  ;;  %v2256_v56 = vpop.f32.mrf.mxu2 }
 0x4b5   :  { %v2213_v30 = vadd.f32 %v2212_v39, %v2155_v51 }
 0x4b6   :  { %2870 = vmatmul.f32.gmra.mxu0 %v6556_v52 }
 0x4b7   :  { %v2257_v8 = vadd.f32 %v2256_v56, %v2213_v30  ;;  %2954 = vmatmul.f32.gmra.mxu1 %v6557_v37 }
 0x4b8   :  { %3062 = vmatmul.f32.gmra.mxu3 %v5306_v3 }
 0x4b9   :  { %v5885_v31 = vadd.f32 %v2300_v6, %v2257_v8  ;;  %2996 = vmatmul.f32.gmra.mxu2 %v5306_v3 }
 0x4bb   :  { %v2306_v61 = vpop.f32.mrf.mxu3 }
 0x4bc   :  { %v2216_v22 = vpop.f32.mrf.mxu1  ;;  %v2261_v59 = vpop.f32.mrf.mxu2 }
 0x4bd   :  { %v2217_v47 = vadd.f32 %v2216_v22, %v2163_v5 }
 0x4bf   :  { %v2262_v2 = vadd.f32 %v2261_v59, %v2217_v47  ;;  %2960 = vmatmul.f32.gmra.mxu1 %v6558_v58  ;;  %v6559_v58 = vld [vmem:[#allocation33_spill] sm:$0xff] }
 0x4c0   :  { %3066 = vmatmul.f32.gmra.mxu3 %v5329_v11 }
 0x4c1   :  { %v5890_v23 = vadd.f32 %v2306_v61, %v2262_v2  ;;  %3000 = vmatmul.f32.gmra.mxu2 %v5329_v11 }
 0x4c3   :  { %v2748_v49 = vpop.f32.mrf.mxu3 }
 0x4c4   :  { %v2634_v16 = vpop.f32.mrf.mxu2 }
 0x4c5   :  { %v2635_v63 = vadd.f32 %v2634_v16, %v6559_v58 }
 0x4c7   :  { %v2749_v50 = vadd.f32 %v2748_v49, %v2635_v63 }
 0x4c8   :  { %3070 = vmatmul.f32.gmra.mxu3 %v5352_v19 }
 0x4c9   :  { %3004 = vmatmul.f32.gmra.mxu2 %v5352_v19  ;;  %v5907_v19 = vpop.f32.mrf.mxu0 }
 0x4cb   :  { %v2752_v3 = vpop.f32.mrf.mxu3 }
 0x4cc   :  { %v2642_v45 = vpop.f32.mrf.mxu2 }
 0x4cd   :  { %v2643_v55 = vadd.f32 %v2642_v45, %v5536_v40 }
 0x4cf   :  { %v2753_v43 = vadd.f32 %v2752_v3, %v2643_v55 }
 0x4d0   :  { %3074 = vmatmul.f32.gmra.mxu3 %v5375_v27 }
 0x4d1   :  { %3008 = vmatmul.f32.gmra.mxu2 %v5375_v27  ;;  %v5911_v27 = vpop.f32.mrf.mxu1  ;;  %v5919_v44 = vpop.f32.mrf.mxu0 }
 0x4d3   :  { %v5897_v54 = vpop.f32.mrf.mxu3 }
 0x4d4   :  { %v2650_v29 = vpop.f32.mrf.mxu2 }
 0x4d5   :  { %v2651_v58 = vadd.f32 %v2650_v29, %v5543_v21 }
 0x4d8   :  { %3078 = vmatmul.f32.gmra.mxu3 %v6532_v53 }
 0x4d9   :  { %3012 = vmatmul.f32.gmra.mxu2 %v6532_v53  ;;  %v5923_v57 = vpop.f32.mrf.mxu1  ;;  %v5931_v6 = vpop.f32.mrf.mxu0 }
 0x4db   :  { %v5901_v11 = vpop.f32.mrf.mxu3 }
 0x4dc   :  { %v5903_v36 = vpop.f32.mrf.mxu2 }
 0x4e0   :  { %3082 = vmatmul.f32.gmra.mxu3 %v6536_v9 }
 0x4e1   :  { %3016 = vmatmul.f32.gmra.mxu2 %v6536_v9  ;;  %v5933_v39 = vpop.f32.mrf.mxu1  ;;  %v5941_v30 = vpop.f32.mrf.mxu0 }
 0x4e3   :  { %v5909_v38 = vpop.f32.mrf.mxu3 }
 0x4e4   :  { %v5913_v28 = vpop.f32.mrf.mxu2 }
 0x4e8   :  { %3086 = vmatmul.f32.gmra.mxu3 %v6540_v25 }
 0x4e9   :  { %3020 = vmatmul.f32.gmra.mxu2 %v6540_v25  ;;  %v5943_v52 = vpop.f32.mrf.mxu1  ;;  %v2816_v37 = vpop.f32.mrf.mxu0 }
 0x4ea   :  { %v2817_v32 = vadd.f32 %v2816_v37, %v2749_v50  ;;  %v2757_v50 = vadd.f32 %v5897_v54, %v2651_v58 }
 0x4eb   :  { %v5917_v53 = vpop.f32.mrf.mxu3 }
 0x4ec   :  { %v5921_v0 = vpop.f32.mrf.mxu2 }
 0x4f0   :  { %3090 = vmatmul.f32.gmra.mxu3 %v6544_v7 }
 0x4f1   :  { %3024 = vmatmul.f32.gmra.mxu2 %v6544_v7  ;;  %v2895_v61 = vpop.f32.mrf.mxu1 }
 0x4f2   :  { %v2896_v10 = vadd.f32 %v2895_v61, %v2817_v32 }
 0x4f3   :  { %v5927_v9 = vpop.f32.mrf.mxu3 }
 0x4f4   :  { %v5929_v51 = vpop.f32.mrf.mxu2 }
 0x4f8   :  { %3094 = vmatmul.f32.gmra.mxu3 %v6548_v34 }
 0x4f9   :  { %3028 = vmatmul.f32.gmra.mxu2 %v6548_v34  ;;  %v2821_v34 = vpop.f32.mrf.mxu0  ;;  %v2901_v2 = vpop.f32.mrf.mxu1 }
 0x4fa   :  { %v2822_v1 = vadd.f32 %v2821_v34, %v2753_v43 }
 0x4fb   :  { %v5937_v25 = vpop.f32.mrf.mxu3 }
 0x4fc   :  { %v5939_v56 = vpop.f32.mrf.mxu2 }
 0x501   :  { %v2826_v14 = vpop.f32.mrf.mxu0  ;;  %v2907_v60 = vpop.f32.mrf.mxu1 }
 0x502   :  { %v2827_v40 = vadd.f32 %v2826_v14, %v2757_v50 }
 0x503   :  { %v5945_v7 = vpop.f32.mrf.mxu3 }
 0x504   :  { %v5947_v8 = vpop.f32.mrf.mxu2 }
 0x509   :  { %v2831_v12 = vpop.f32.mrf.mxu0  ;;  %v2913_v16 = vpop.f32.mrf.mxu1 }
 0x50b   :  { %v5949_v5 = vpop.f32.mrf.mxu3 }
 0x50c   :  { %v5951_v22 = vpop.f32.mrf.mxu2 }
 0x511   :  { %v2836_v32 = vpop.f32.mrf.mxu0  ;;  %v2919_v43 = vpop.f32.mrf.mxu1 }
 0x513   :  { %v5953_v59 = vpop.f32.mrf.mxu3 }
 0x514   :  { %v5955_v47 = vpop.f32.mrf.mxu2 }
 0x519   :  { %v2925_v54 = vpop.f32.mrf.mxu1 }
 0x51b   :  { %v5958_v26 = vpop.f32.mrf.mxu3 }
 0x51c   :  { %6560 = vst [vmem:[#allocation13_spill] sm:$0xff] %v5958_v26  ;;  %v5960_v33 = vpop.f32.mrf.mxu2  ;;  %v2902_v26 = vadd.f32 %v2901_v2, %v2822_v1 }
 0x51d   :  { %6561 = vst [vmem:[#allocation21_spill] sm:$0xff] %v5960_v33 }
 0x521   :  { %v2931_v2 = vpop.f32.mrf.mxu1 }
 0x523   :  { %v3051_v42 = vpop.f32.mrf.mxu3 }
 0x524   :  { %v2985_v46 = vpop.f32.mrf.mxu2 }
 0x525   :  { %v2986_v20 = vadd.f32 %v2985_v46, %v2896_v10  ;;  %v2659_v10 = vadd.f32 %v5903_v36, %v5546_v18 }
 0x527   :  { %v3052_v48 = vadd.f32 %v3051_v42, %v2986_v20  ;;  %v2908_v20 = vadd.f32 %v2907_v60, %v2827_v40  ;;  %v2761_v21 = vadd.f32 %v5901_v11, %v2659_v10  ;;  %v2675_v11 = vadd.f32 %v5921_v0, %v5541_v13 }
 0x529   :  { %3098 = vxpose.xlu1.b32.start.end [1/1] (short) (narrow) %v3052_v48, 8  ;;  %v2832_v46 = vadd.f32 %v2831_v12, %v2761_v21 }
 0x52b   :  { %v3055_v33 = vpop.f32.mrf.mxu3 }
 0x52c   :  { %v2989_v35 = vpop.f32.mrf.mxu2 }
 0x52d   :  { %v2990_v63 = vadd.f32 %v2989_v35, %v2902_v26  ;;  %v2667_v35 = vadd.f32 %v5913_v28, %v5549_v62  ;;  %v2914_v26 = vadd.f32 %v2913_v16, %v2832_v46  ;;  %v2769_v62 = vadd.f32 %v5917_v53, %v2675_v11 }
 0x52f   :  { %v3056_v49 = vadd.f32 %v3055_v33, %v2990_v63  ;;  %v2841_v33 = vpop.f32.mrf.mxu0  ;;  %v2765_v18 = vadd.f32 %v5909_v38, %v2667_v35  ;;  %v6562_v63 = vld [vmem:[#allocation34_spill] sm:$0xff] }
 0x530   :  { %v2842_v16 = vadd.f32 %v2841_v33, %v2769_v62  ;;  %v2683_v38 = vadd.f32 %v5929_v51, %v6562_v63 }
 0x531   :  { %3130 = vxpose.xlu0.b32.start.end [1/1] (short) (narrow) %v3056_v49, 8  ;;  %v2837_v29 = vadd.f32 %v2836_v32, %v2765_v18 }
 0x532   :  { %v2926_v50 = vadd.f32 %v2925_v54, %v2842_v16  ;;  %v2773_v53 = vadd.f32 %v5927_v9, %v2683_v38 }
 0x533   :  { %v3059_v42 = vpop.f32.mrf.mxu3  ;;  %v2920_v36 = vadd.f32 %v2919_v43, %v2837_v29 }
 0x534   :  { %v2993_v48 = vpop.f32.mrf.mxu2 }
 0x535   :  { %v2994_v55 = vadd.f32 %v2993_v48, %v2908_v20  ;;  %v2937_v48 = vpop.f32.mrf.mxu1 }
 0x537   :  { %v3060_v1 = vadd.f32 %v3059_v42, %v2994_v55  ;;  %v2846_v34 = vpop.f32.mrf.mxu0  ;;  %v6563_v55 = vld [vmem:[#allocation35_spill] sm:$0xff] }
 0x538   :  { %v2847_v42 = vadd.f32 %v2846_v34, %v2773_v53  ;;  %v2691_v21 = vadd.f32 %v5939_v56, %v6563_v55 }
 0x539   :  { %3162 = vxpose.xlu2.b32.start.end [1/1] (short) (narrow) %v3060_v1, 8 }
 0x53a   :  { %v2932_v1 = vadd.f32 %v2931_v2, %v2847_v42  ;;  %v2777_v9 = vadd.f32 %v5937_v25, %v2691_v21  ;;  %v2707_v25 = vadd.f32 %v5951_v22, %v5626_v41 }
 0x53b   :  { %v3063_v14 = vpop.f32.mrf.mxu3 }
 0x53c   :  { %v2997_v3 = vpop.f32.mrf.mxu2  ;;  %v2785_v16 = vadd.f32 %v5949_v5, %v2707_v25 }
 0x53d   :  { %v2998_v45 = vadd.f32 %v2997_v3, %v2914_v26 }
 0x53f   :  { %v3064_v60 = vadd.f32 %v3063_v14, %v2998_v45  ;;  %v2851_v20 = vpop.f32.mrf.mxu0  ;;  %v2699_v45 = vadd.f32 %v5947_v8, %v5616_v15 }
 0x540   :  { %v2852_v33 = vadd.f32 %v2851_v20, %v2777_v9 }
 0x541   :  { %3194 = vxpose.xlu0.b32.start.end [1/1] (short) (narrow) %v3064_v60, 8  ;;  %v2943_v60 = vpop.f32.mrf.mxu1  ;;  %v2781_v11 = vadd.f32 %v5945_v7, %v2699_v45 }
 0x542   :  { %v2938_v54 = vadd.f32 %v2937_v48, %v2852_v33 }
 0x543   :  { %v3067_v12 = vpop.f32.mrf.mxu3 }
 0x544   :  { %v3001_v37 = vpop.f32.mrf.mxu2 }
 0x545   :  { %v3002_v61 = vadd.f32 %v3001_v37, %v2920_v36 }
 0x547   :  { %v3068_v28 = vadd.f32 %v3067_v12, %v3002_v61  ;;  %v2856_v3 = vpop.f32.mrf.mxu0 }
 0x548   :  { %v2857_v12 = vadd.f32 %v2856_v3, %v2781_v11 }
 0x549   :  { %v5974_v58 = vand.u32 4294901760, %v3068_v28  ;;  %v2949_v7 = vpop.f32.mrf.mxu1 }
 0x54a   :  { %v2944_v61 = vadd.f32 %v2943_v60, %v2857_v12 }
 0x54b   :  { %v5979_v49 = vsub.f32 %v3068_v28, %v5974_v58  ;;  %3245 = vmatpush.msrb.mxu0 %v5974_v58  ;;  %v3071_v13 = vpop.f32.mrf.mxu3 }
 0x54c   :  { %v3005_v0 = vpop.f32.mrf.mxu2 }
 0x54d   :  { %v3272_v40 = vand.u32 4294901760, %v5979_v49  ;;  %v3006_v32 = vadd.f32 %v3005_v0, %v2926_v50  ;;  %3298 = vmatpush.msra.mxu0 %v5979_v49  ;;  %v2715_v50 = vadd.f32 %v5955_v47, %v5639_v24 }
 0x54f   :  { %v3273_v10 = vsub.f32 %v5979_v49, %v3272_v40  ;;  %v3072_v51 = vadd.f32 %v3071_v13, %v3006_v32  ;;  %v2861_v8 = vpop.f32.mrf.mxu0  ;;  %v2789_v5 = vadd.f32 %v5953_v59, %v2715_v50 }
 0x550   :  { %v2862_v41 = vadd.f32 %v2861_v8, %v2785_v16 }
 0x551   :  { %v3274_v43 = vand.u32 4294901760, %v3273_v10  ;;  %v2955_v42 = vpop.f32.mrf.mxu1  ;;  %v3393_v24 = vand.u32 4294901760, %v3072_v51 }
 0x552   :  { %v2950_v13 = vadd.f32 %v2949_v7, %v2862_v41 }
 0x553   :  { %3275 = vmatpush.msrb.mxu1 %v3274_v43  ;;  %v3075_v46 = vpop.f32.mrf.mxu3  ;;  %v3420_v47 = vsub.f32 %v3072_v51, %v3393_v24 }
 0x554   :  { %v3009_v35 = vpop.f32.mrf.mxu2 }
 0x555   :  { %3321 = vmatpush.msra.mxu1 %v5974_v58  ;;  %v3010_v26 = vadd.f32 %v3009_v35, %v2932_v1  ;;  %v3421_v33 = vand.u32 4294901760, %v3420_v47 }
 0x557   :  { %v5992_v14 = vadd.f32 %v3075_v46, %v3010_v26  ;;  %v2866_v10 = vpop.f32.mrf.mxu0  ;;  %v3422_v45 = vsub.f32 %v3420_v47, %v3421_v33 }
 0x558   :  { %v2867_v43 = vadd.f32 %v2866_v10, %v2789_v5 }
 0x559   :  { %v3423_v60 = vand.u32 4294901760, %v3422_v45  ;;  %v3542_v11 = vand.u32 4294901760, %v5992_v14 }
 0x55a   :  { %v2956_v48 = vadd.f32 %v2955_v42, %v2867_v43 }
 0x55b   :  { %v3079_v18 = vpop.f32.mrf.mxu3 }
 0x55c   :  { %v3013_v56 = vpop.f32.mrf.mxu2 }
 0x55d   :  { %v3014_v29 = vadd.f32 %v3013_v56, %v2938_v54 }
 0x55f   :  { %v3080_v36 = vadd.f32 %v3079_v18, %v3014_v29  ;;  %v6031_v10 = vpop.f32.mrf.mxu0 }
 0x561   :  { %v5997_v37 = vand.u32 4294901760, %v3080_v36 }
 0x563   :  { %v6002_v34 = vsub.f32 %v3080_v36, %v5997_v37  ;;  %3692 = vmatpush.msrb.mxu2 %v5997_v37  ;;  %v3083_v15 = vpop.f32.mrf.mxu3  ;;  %v3569_v36 = vsub.f32 %v5992_v14, %v3542_v11 }
 0x564   :  { %v3017_v62 = vpop.f32.mrf.mxu2 }
 0x565   :  { %v3719_v28 = vand.u32 4294901760, %v6002_v34  ;;  %v3018_v2 = vadd.f32 %v3017_v62, %v2944_v61  ;;  %v3570_v49 = vand.u32 4294901760, %v3569_v36 }
 0x567   :  { %v3720_v63 = vsub.f32 %v6002_v34, %v3719_v28  ;;  %v6008_v38 = vadd.f32 %v3083_v15, %v3018_v2  ;;  %3794 = vmatpush.msra.mxu2 %v3719_v28  ;;  %v3571_v28 = vsub.f32 %v3569_v36, %v3570_v49 }
 0x569   :  { %v3721_v22 = vand.u32 4294901760, %v3720_v63  ;;  %v3572_v63 = vand.u32 4294901760, %v3571_v28 }
 0x56b   :  { %3722 = vmatpush.msrb.mxu3 %v3721_v22  ;;  %v3087_v0 = vpop.f32.mrf.mxu3 }
 0x56c   :  { %v3021_v32 = vpop.f32.mrf.mxu2 }
 0x56d   :  { %3816 = vmatpush.msra.mxu3 %v5997_v37  ;;  %v3022_v53 = vadd.f32 %v3021_v32, %v2950_v13 }
 0x56f   :  { %v6014_v20 = vadd.f32 %v3087_v0, %v3022_v53  ;;  %v6029_v53 = vpop.f32.mrf.mxu1 }
 0x573   :  { %v3091_v21 = vpop.f32.mrf.mxu3 }
 0x574   :  { %v3025_v55 = vpop.f32.mrf.mxu2 }
 0x575   :  { %v3026_v1 = vadd.f32 %v3025_v55, %v2956_v48 }
 0x577   :  { %v6016_v46 = vadd.f32 %v3091_v21, %v3026_v1 }
 0x5cd   :  { %v3114_v35 = vpop.trf.xlu1 }
 0x5ce   :  { %v3227_v26 = vsel %vm800_vm8, %v3114_v35, 0 }
 0x5cf   :  { %v3246_v9 = vand.u32 4294901760, %v3227_v26 }
 0x5d1   :  { %v3247_v3 = vsub.f32 %v3227_v26, %v3246_v9  ;;  %3277 = vmatmul.f32.vlgmr.msrb.gmra.mxu1 %v3246_v9 }
 0x5d2   :  { %3369 = vmatpush.msrb.mxu1 %v5974_v58  ;;  %v3178_v14 = vpop.trf.xlu2 }
 0x5d3   :  { %v3248_v59 = vand.u32 4294901760, %v3247_v3  ;;  %v3525_v41 = vsel %vm800_vm8, %v3178_v14, 0 }
 0x5d4   :  { %v3544_v22 = vand.u32 4294901760, %v3525_v41 }
 0x5d5   :  { %v3249_v54 = vsub.f32 %v3247_v3, %v3248_v59  ;;  %v3146_v56 = vpop.trf.xlu0 }
 0x5d6   :  { %v3376_v51 = vsel %vm800_vm8, %v3146_v56, 0  ;;  %v3545_v50 = vsub.f32 %v3525_v41, %v3544_v22 }
 0x5d7   :  { %v3250_v18 = vand.u32 4294901760, %v3249_v54  ;;  %v3395_v29 = vand.u32 4294901760, %v3376_v51 }
 0x5d8   :  { %v3546_v13 = vand.u32 4294901760, %v3545_v50 }
 0x5d9   :  { %3251 = vmatmul.f32.vlgmr.msrb.gmra.mxu0 %v3250_v18  ;;  %3325 = vmatmul.f32.vlgmr.msra.gmra.mxu1 %v3248_v59  ;;  %v3396_v58 = vsub.f32 %v3376_v51, %v3395_v29 }
 0x5da   :  { %3347 = vmatpush.msrb.mxu0 %v3272_v40  ;;  %3424 = vmatpush.msra.mxu1 %v3423_v60  ;;  %v3547_v0 = vsub.f32 %v3545_v50, %v3546_v13 }
 0x5db   :  { %v3397_v61 = vand.u32 4294901760, %v3396_v58 }
 0x5dc   :  { %v3548_v32 = vand.u32 4294901760, %v3547_v0 }
 0x5dd   :  { %v3398_v8 = vsub.f32 %v3396_v58, %v3397_v61 }
 0x5df   :  { %v3399_v7 = vand.u32 4294901760, %v3398_v8 }
 0x5e1   :  { %3301 = vmatmul.f32.vlgmr.msra.gmra.mxu0 %v3247_v3  ;;  %3371 = vmatmul.f32.vlgmr.msrb.gmra.mxu1 %v3246_v9 }
 0x5e2   :  { %3394 = vmatpush.msra.mxu0 %v3393_v24  ;;  %3470 = vmatpush.msrb.mxu1 %v3393_v24 }
 0x5e5   :  { %v3210_v12 = vpop.trf.xlu0 }
 0x5e6   :  { %v3674_v25 = vsel %vm800_vm8, %v3210_v12, 0 }
 0x5e7   :  { %v3693_v15 = vand.u32 4294901760, %v3674_v25 }
 0x5e9   :  { %3349 = vmatmul.f32.vlgmr.msrb.gmra.mxu0 %v3246_v9  ;;  %3426 = vmatmul.f32.vlgmr.msra.gmra.mxu1 %v3395_v29  ;;  %v3694_v40 = vsub.f32 %v3674_v25, %v3693_v15 }
 0x5ea   :  { %3447 = vmatpush.msrb.mxu0 %v3420_v47  ;;  %3518 = vmatpush.msra.mxu1 %v3393_v24 }
 0x5eb   :  { %v3695_v62 = vand.u32 4294901760, %v3694_v40  ;;  %3724 = vmatmul.f32.vlgmr.msrb.gmra.mxu3 %v3693_v15 }
 0x5ed   :  { %v3696_v2 = vsub.f32 %v3694_v40, %v3695_v62 }
 0x5ef   :  { %v3697_v16 = vand.u32 4294901760, %v3696_v2 }
 0x5f1   :  { %3400 = vmatmul.f32.vlgmr.msra.gmra.mxu0 %v3399_v7  ;;  %3474 = vmatmul.f32.vlgmr.msrb.gmra.mxu1 %v3397_v61  ;;  %v6035_v61 = vpop.f32.mrf.mxu2 }
 0x5f2   :  { %3496 = vmatpush.msra.mxu0 %v3421_v33  ;;  %3573 = vmatpush.msrb.mxu1 %v3572_v63 }
 0x5f3   :  { %3698 = vmatmul.f32.vlgmr.msrb.gmra.mxu2 %v3697_v16  ;;  %3818 = vmatmul.f32.vlgmr.msra.gmra.mxu3 %v3693_v15 }
 0x5f9   :  { %3450 = vmatmul.f32.vlgmr.msrb.gmra.mxu0 %v3396_v58  ;;  %3520 = vmatmul.f32.vlgmr.msra.gmra.mxu1 %v3395_v29 }
 0x5fa   :  { %3543 = vmatpush.msrb.mxu0 %v3542_v11  ;;  %3619 = vmatpush.msra.mxu1 %v3542_v11 }
 0x5fb   :  { %3796 = vmatmul.f32.vlgmr.msra.gmra.mxu2 %v3693_v15 }
 0x601   :  { %3498 = vmatmul.f32.vlgmr.msra.gmra.mxu0 %v3395_v29  ;;  %3575 = vmatmul.f32.vlgmr.msrb.gmra.mxu1 %v3544_v22 }
 0x602   :  { %3596 = vmatpush.msra.mxu0 %v3569_v36  ;;  %3667 = vmatpush.msrb.mxu1 %v3542_v11 }
 0x609   :  { %3549 = vmatmul.f32.vlgmr.msrb.gmra.mxu0 %v3548_v32  ;;  %3623 = vmatmul.f32.vlgmr.msra.gmra.mxu1 %v3546_v13 }
 0x60a   :  { %3645 = vmatpush.msrb.mxu0 %v3570_v49  ;;  %3768 = vmatpush.msra.mxu1 %v5997_v37  ;;  %v6037_v49 = vpop.f32.mrf.mxu3 }
 0x611   :  { %3599 = vmatmul.f32.vlgmr.msra.gmra.mxu0 %v3545_v50  ;;  %3669 = vmatmul.f32.vlgmr.msrb.gmra.mxu1 %v3544_v22 }
 0x612   :  { %3745 = vmatpush.msra.mxu0 %v6002_v34 }
 0x619   :  { %3647 = vmatmul.f32.vlgmr.msrb.gmra.mxu0 %v3544_v22  ;;  %3772 = vmatmul.f32.vlgmr.msra.gmra.mxu1 %v3695_v62 }
 0x621   :  { %3748 = vmatmul.f32.vlgmr.msra.gmra.mxu0 %v3694_v40 }
 0x64e   :  { %v3278_v5 = vpop.f32.mrf.mxu1 }
 0x656   :  { %v3252_v42 = vpop.f32.mrf.mxu0  ;;  %v3326_v43 = vpop.f32.mrf.mxu1 }
 0x657   :  { %v3279_v21 = vadd.f32 %v3278_v5, %v3252_v42 }
 0x65e   :  { %v3302_v48 = vpop.f32.mrf.mxu0  ;;  %v3372_v55 = vpop.f32.mrf.mxu1 }
 0x65f   :  { %v3303_v1 = vadd.f32 %v3302_v48, %v3279_v21  ;;  %v2340_v48 = vadd.f32 %v5907_v19, %v5873_v4  ;;  %v2344_v21 = vadd.f32 %v5919_v44, %v5879_v17 }
 0x661   :  { %v3327_v24 = vadd.f32 %v3326_v43, %v3303_v1  ;;  %v2381_v1 = vadd.f32 %v5923_v57, %v2344_v21 }
 0x666   :  { %v3350_v37 = vpop.f32.mrf.mxu0  ;;  %v3427_v47 = vpop.f32.mrf.mxu1 }
 0x667   :  { %v3351_v35 = vadd.f32 %v3350_v37, %v3327_v24  ;;  %v2348_v24 = vadd.f32 %v5931_v6, %v5885_v31 }
 0x669   :  { %v3373_v26 = vadd.f32 %v3372_v55, %v3351_v35  ;;  %v2377_v55 = vadd.f32 %v5911_v27, %v2340_v48  ;;  %v2385_v37 = vadd.f32 %v5933_v39, %v2348_v24 }
 0x66b   :  { %v3822_v34 = vsel %vm800_vm8, %v3373_v26, -inf }
 0x66c   :  { %3823 = vmax.xlane.f32.xlu0 %v3822_v34 }
 0x66e   :  { %v3401_v9 = vpop.f32.mrf.mxu0  ;;  %v3475_v33 = vpop.f32.mrf.mxu1 }
 0x66f   :  { %v3428_v59 = vadd.f32 %v3427_v47, %v3401_v9  ;;  %v3725_v16 = vpop.f32.mrf.mxu3  ;;  %v2352_v47 = vadd.f32 %v5941_v30, %v5890_v23 }
 0x671   :  { %v2389_v4 = vadd.f32 %v5943_v52, %v2352_v47 }
 0x676   :  { %v3451_v3 = vpop.f32.mrf.mxu0  ;;  %v3521_v45 = vpop.f32.mrf.mxu1 }
 0x677   :  { %v3452_v54 = vadd.f32 %v3451_v3, %v3428_v59  ;;  %v3699_v2 = vpop.f32.mrf.mxu2  ;;  %v3819_v5 = vpop.f32.mrf.mxu3 }
 0x678   :  { %v3726_v14 = vadd.f32 %v3725_v16, %v3699_v2 }
 0x679   :  { %v3476_v18 = vadd.f32 %v3475_v33, %v3452_v54 }
 0x67e   :  { %v3499_v60 = vpop.f32.mrf.mxu0  ;;  %v3576_v29 = vpop.f32.mrf.mxu1 }
 0x67f   :  { %v3500_v56 = vadd.f32 %v3499_v60, %v3476_v18  ;;  %v3797_v0 = vpop.f32.mrf.mxu2  ;;  %v3919_v60 = vsel %vm800_vm8, %v6008_v38, 0 }
 0x681   :  { %v3522_v51 = vadd.f32 %v3521_v45, %v3500_v56 }
 0x683   :  { %v3825_v11 = vsel %vm800_vm8, %v3522_v51, -inf }
 0x684   :  { %3826 = vmax.xlane.f32.xlu1 %v3825_v11 }
 0x686   :  { %v3550_v58 = vpop.f32.mrf.mxu0  ;;  %v3624_v36 = vpop.f32.mrf.mxu1 }
 0x687   :  { %v3577_v25 = vadd.f32 %v3576_v29, %v3550_v58 }
 0x68e   :  { %v3600_v12 = vpop.f32.mrf.mxu0  ;;  %v3670_v62 = vpop.f32.mrf.mxu1 }
 0x68f   :  { %v3601_v15 = vadd.f32 %v3600_v12, %v3577_v25 }
 0x691   :  { %v3625_v40 = vadd.f32 %v3624_v36, %v3601_v15 }
 0x696   :  { %v3648_v8 = vpop.f32.mrf.mxu0  ;;  %v3773_v50 = vpop.f32.mrf.mxu1 }
 0x697   :  { %v3649_v28 = vadd.f32 %v3648_v8, %v3625_v40 }
 0x699   :  { %v3671_v7 = vadd.f32 %v3670_v62, %v3649_v28 }
 0x69b   :  { %v3828_v63 = vsel %vm800_vm8, %v3671_v7, -inf }
 0x69c   :  { %3829 = vmax.xlane.f32.xlu2 %v3828_v63 }
 0x69e   :  { %v3749_v41 = vpop.f32.mrf.mxu0 }
 0x69f   :  { %v3750_v22 = vadd.f32 %v3749_v41, %v3726_v14 }
 0x6a1   :  { %v3774_v13 = vadd.f32 %v3773_v50, %v3750_v22 }
 0x6a3   :  { %v3798_v32 = vadd.f32 %v3797_v0, %v3774_v13  ;;  %v4071_v13 = vsel %vm800_vm8, %v6014_v20, 0 }
 0x6a5   :  { %v3820_v42 = vadd.f32 %v3819_v5, %v3798_v32  ;;  %v6071_v5 = vand.u32 4294901760, %v4071_v13 }
 0x6a7   :  { %v3831_v43 = vsel %vm800_vm8, %v3820_v42, -inf }
 0x6a8   :  { %3832 = vmax.xlane.f32.xlu1 %v3831_v43 }
 0x6c5   :  { %2391 = vxpose.xlu2.b32.start [1/4] (short) (narrow) %v2377_v55, 8  ;;  %v4094_v55 = vsub.f32 %v4071_v13, %v6071_v5 }
 0x6cd   :  { %2392 = vxpose.xlu2.b32.cont [2/4] (short) (narrow) %v2381_v1, 8 }
 0x6d5   :  { %2393 = vxpose.xlu2.b32.cont [3/4] (short) (narrow) %v2385_v37, 8  ;;  %v4095_v37 = vand.u32 4294901760, %v4094_v55 }
 0x6dd   :  { %2394 = vxpose.xlu2.b32.end [4/4] (short) (narrow) %v2389_v4, 8 }
 0x6df   :  { %v3824_v19 = vpop.xlane.xlu0 %3823 }
 0x6e0   :  { %v3834_v27 = vsub.f32 %v3373_v26, %v3824_v19 }
 0x6e2   :  { %v3838_v35 = vmul.f32 1.442695, %v3834_v27  ;;  %v4096_v27 = vsub.f32 %v4094_v55, %v4095_v37 }
 0x6e4   :  { %5087 = vpow2.f32 %v3838_v35 }
 0x6ea   :  { %v5088_v17 = vpop.eup %5087 }
 0x6eb   :  { %v3846_v44 = vsel %vm800_vm8, %v5088_v17, 0.0 }
 0x6ec   :  { %3847 = vadd.xlane.f32.xlu0 %v3846_v44  ;;  %v6564_v44 = vld [vmem:[#allocation36_spill] sm:$0xff] }
 0x6f7   :  { %v3827_v57 = vpop.xlane.xlu1 %3826 }
 0x6f8   :  { %v3835_v34 = vsub.f32 %v3522_v51, %v3827_v57  ;;  %v3941_v51 = vand.u32 4294901760, %v3919_v60  ;;  %v6565_v57 = vld [vmem:[#allocation21_spill] sm:$0xff] }
 0x6fa   :  { %v3840_v31 = vmul.f32 1.442695, %v3835_v34  ;;  %v3942_v36 = vsub.f32 %v3919_v60, %v3941_v51  ;;  %v2723_v34 = vadd.f32 %v6565_v57, %v6564_v44 }
 0x6fc   :  { %5089 = vpow2.f32 %v3840_v31  ;;  %v3943_v8 = vand.u32 4294901760, %v3942_v36 }
 0x702   :  { %v6054_v6 = vpop.eup %5089 }
 0x703   :  { %v3849_v23 = vsel %vm800_vm8, %v6054_v6, 0.0 }
 0x704   :  { %3850 = vadd.xlane.f32.xlu1 %v3849_v23  ;;  %v4097_v23 = vand.u32 4294901760, %v4096_v27 }
 0x70f   :  { %v3830_v39 = vpop.xlane.xlu2 %3829 }
 0x710   :  { %v3836_v30 = vsub.f32 %v3671_v7, %v3830_v39  ;;  %v3944_v7 = vsub.f32 %v3942_v36, %v3943_v8 }
 0x712   :  { %v3842_v52 = vmul.f32 1.442695, %v3836_v30  ;;  %v3945_v14 = vand.u32 4294901760, %v3944_v7 }
 0x714   :  { %5091 = vpow2.f32 %v3842_v52  ;;  %v6566_v52 = vld [vmem:[#allocation13_spill] sm:$0xff] }
 0x71a   :  { %v6058_v26 = vpop.eup %5091 }
 0x71b   :  { %v3833_v9 = vpop.xlane.xlu1 %3832  ;;  %v3852_v33 = vsel %vm800_vm8, %v6058_v26, 0.0 }
 0x71c   :  { %v3837_v3 = vsub.f32 %v3820_v42, %v3833_v9  ;;  %3853 = vadd.xlane.f32.xlu0 %v3852_v33  ;;  %v2793_v9 = vadd.f32 %v6566_v52, %v2723_v34 }
 0x71e   :  { %v3844_v59 = vmul.f32 1.442695, %v3837_v3  ;;  %v2872_v3 = vadd.f32 %v6031_v10, %v2793_v9 }
 0x720   :  { %5093 = vpow2.f32 %v3844_v59 }
 0x726   :  { %v6062_v45 = vpop.eup %5093 }
 0x727   :  { %v3855_v54 = vsel %vm800_vm8, %v6062_v45, 0.0 }
 0x728   :  { %3856 = vadd.xlane.f32.xlu1 %v3855_v54 }
 0x75f   :  { %v3848_v18 = vpop.xlane.xlu0 %3847 }
 0x760   :  { %5095 = vrcp.f32 %v3848_v18  ;;  %v3869_v58 = vand.u32 2147483648, %v3848_v18  ;;  %v3867_v25 = vand.u32 2147483647, %v3848_v18  ;;  %vm3863_vm12 = vweird.f32 %v3848_v18 }
 0x762   :  { %v3870_v40 = vor.u32 1.1754944e-38, %v3869_v58  ;;  %vm3868_vm14 = vcmp.eq.f32.partialorder %v3867_v25, 8.507059e+37 }
 0x766   :  { %v5096_v56 = vpop.eup %5095 }
 0x767   :  { %v3859_v29 = vmul.f32 %v5096_v56, %v3848_v18  ;;  %vm3864_vm11 = vweird.f32 %v5096_v56  ;;  %v2962_v18 = vadd.f32 %v6029_v53, %v2872_v3 }
 0x768   :  { %vm3865_vm13 = vmor %vm3863_vm12, %vm3864_vm11 }
 0x769   :  { %v3860_v11 = vsub.f32 1.0, %v3859_v29 }
 0x76b   :  { %v3861_v12 = vmul.f32 %v5096_v56, %v3860_v11 }
 0x76d   :  { %v3862_v15 = vadd.f32 %v5096_v56, %v3861_v12 }
 0x76f   :  { %v3866_v62 = vsel %vm3865_vm13, %v5096_v56, %v3862_v15 }
 0x770   :  { %v3871_v28 = vsel %vm3868_vm14, %v3870_v40, %v3866_v62 }
 0x771   :  { %v3872_v2 = vmul.f32 %v5088_v17, %v3871_v28 }
 0x773   :  { %v3922_v38 = vsel %vm800_vm8, %v3872_v2, 0 }
 0x774   :  { %v3939_v16 = vand.u32 4294901760, %v3922_v38 }
 0x776   :  { %3940 = vmatpush.xpose.msrb.mxu0 %v3939_v16  ;;  %4016 = vmatpush.xpose.msrb.mxu3 %v3939_v16  ;;  %v3966_v63 = vsub.f32 %v3922_v38, %v3939_v16 }
 0x777   :  { %v3851_v41 = vpop.xlane.xlu1 %3850 }
 0x778   :  { %5097 = vrcp.f32 %v3851_v41  ;;  %3993 = vmatpush.xpose.msrb.mxu2 %v3966_v63  ;;  %v3967_v22 = vand.u32 4294901760, %v3966_v63  ;;  %v3884_v48 = vand.u32 2147483648, %v3851_v41  ;;  %v3882_v1 = vand.u32 2147483647, %v3851_v41 }
 0x779   :  { %3946 = vmatmul.f32.vlgmr.msrb.gmra.mxu0 %v3945_v14  ;;  %4020 = vmatmul.f32.vlgmr.msrb.gmra.mxu3 %v3943_v8  ;;  %vm3878_vm9 = vweird.f32 %v3851_v41 }
 0x77a   :  { %4042 = vmatpush.xpose.msra.mxu0 %v3967_v22  ;;  %v3968_v50 = vsub.f32 %v3966_v63, %v3967_v22  ;;  %v3885_v20 = vor.u32 1.1754944e-38, %v3884_v48  ;;  %vm3883_vm11 = vcmp.eq.f32.partialorder %v3882_v1, 8.507059e+37 }
 0x77b   :  { %3996 = vmatmul.f32.vlgmr.msrb.gmra.mxu2 %v3942_v36 }
 0x77c   :  { %v3969_v0 = vand.u32 4294901760, %v3968_v50 }
 0x77e   :  { %v5098_v32 = vpop.eup %5097  ;;  %3970 = vmatpush.xpose.msrb.mxu1 %v3969_v0 }
 0x77f   :  { %v3874_v42 = vmul.f32 %v5098_v32, %v3851_v41  ;;  %vm3879_vm15 = vweird.f32 %v5098_v32 }
 0x780   :  { %vm3880_vm10 = vmor %vm3878_vm9, %vm3879_vm15 }
 0x781   :  { %v3875_v43 = vsub.f32 1.0, %v3874_v42  ;;  %4044 = vmatmul.f32.vlgmr.msra.gmra.mxu0 %v3941_v51  ;;  %3972 = vmatmul.f32.vlgmr.msrb.gmra.mxu1 %v3941_v51 }
 0x782   :  { %4064 = vmatpush.xpose.msra.mxu1 %v3939_v16 }
 0x783   :  { %v3876_v21 = vmul.f32 %v5098_v32, %v3875_v43 }
 0x785   :  { %v3877_v24 = vadd.f32 %v5098_v32, %v3876_v21 }
 0x787   :  { %v3881_v47 = vsel %vm3880_vm10, %v5098_v32, %v3877_v24 }
 0x788   :  { %v3886_v4 = vsel %vm3883_vm11, %v3885_v20, %v3881_v47 }
 0x789   :  { %v3887_v19 = vmul.f32 %v6054_v6, %v3886_v4  ;;  %4066 = vmatmul.f32.vlgmr.msra.gmra.mxu1 %v3941_v51  ;;  %v4223_v6 = vsel %vm800_vm8, %v6016_v46, 0  ;;  %v3030_v51 = vadd.f32 %v6035_v61, %v2962_v18 }
 0x78a   :  { %v6083_v60 = vand.u32 4294901760, %v4223_v6 }
 0x78b   :  { %v4074_v35 = vsel %vm800_vm8, %v3887_v19, 0  ;;  %v3096_v53 = vadd.f32 %v6037_v49, %v3030_v51 }
 0x78c   :  { %v4091_v17 = vand.u32 4294901760, %v4074_v35  ;;  %v4246_v46 = vsub.f32 %v4223_v6, %v6083_v60 }
 0x78d   :  { %v4375_v40 = vsel %vm800_vm8, %v3096_v53, 0 }
 0x78e   :  { %4092 = vmatpush.xpose.msra.mxu2 %v4091_v17  ;;  %4168 = vmatpush.xpose.msrb.mxu1 %v4091_v17  ;;  %v4118_v31 = vsub.f32 %v4074_v35, %v4091_v17  ;;  %v4247_v25 = vand.u32 4294901760, %v4246_v46  ;;  %v4397_v7 = vand.u32 4294901760, %v4375_v40 }
 0x78f   :  { %v3854_v39 = vpop.xlane.xlu0 %3853 }
 0x790   :  { %5099 = vrcp.f32 %v3854_v39  ;;  %4145 = vmatpush.xpose.msrb.mxu0 %v4118_v31  ;;  %v4119_v30 = vand.u32 4294901760, %v4118_v31  ;;  %v3899_v11 = vand.u32 2147483648, %v3854_v39  ;;  %v3897_v58 = vand.u32 2147483647, %v3854_v39 }
 0x791   :  { %4098 = vmatmul.f32.vlgmr.msra.gmra.mxu2 %v4097_v23  ;;  %4172 = vmatmul.f32.vlgmr.msrb.gmra.mxu1 %v4095_v37  ;;  %vm3893_vm13 = vweird.f32 %v3854_v39  ;;  %v4248_v2 = vsub.f32 %v4246_v46, %v4247_v25  ;;  %v4398_v50 = vsub.f32 %v4375_v40, %v4397_v7 }
 0x792   :  { %4194 = vmatpush.xpose.msrb.mxu2 %v4119_v30  ;;  %v4120_v33 = vsub.f32 %v4118_v31, %v4119_v30  ;;  %v3900_v61 = vor.u32 1.1754944e-38, %v3899_v11  ;;  %vm3898_vm15 = vcmp.eq.f32.partialorder %v3897_v58, 8.507059e+37 }
 0x793   :  { %4148 = vmatmul.f32.vlgmr.msrb.gmra.mxu0 %v4094_v55  ;;  %v4249_v14 = vand.u32 4294901760, %v4248_v2  ;;  %v4399_v43 = vand.u32 4294901760, %v4398_v50 }
 0x794   :  { %v4121_v59 = vand.u32 4294901760, %v4120_v33 }
 0x795   :  { %v4400_v24 = vsub.f32 %v4398_v50, %v4399_v43 }
 0x796   :  { %v5100_v54 = vpop.eup %5099  ;;  %4122 = vmatpush.xpose.msra.mxu3 %v4121_v59 }
 0x797   :  { %v3889_v56 = vmul.f32 %v5100_v54, %v3854_v39  ;;  %vm3894_vm12 = vweird.f32 %v5100_v54  ;;  %v4401_v4 = vand.u32 4294901760, %v4400_v24 }
 0x798   :  { %vm3895_vm14 = vmor %vm3893_vm13, %vm3894_vm12  ;;  %vm4884_vm13 = vcmask 261121  }
 0x799   :  { %v3890_v29 = vsub.f32 1.0, %v3889_v56  ;;  %4196 = vmatmul.f32.vlgmr.msrb.gmra.mxu2 %v6071_v5  ;;  %4124 = vmatmul.f32.vlgmr.msra.gmra.mxu3 %v6071_v5 }
 0x79a   :  { %4216 = vmatpush.xpose.msrb.mxu3 %v4091_v17 }
 0x79b   :  { %v3891_v10 = vmul.f32 %v5100_v54, %v3890_v29  ;;  %v3857_v36 = vpop.xlane.xlu1 %3856 }
 0x79c   :  { %5101 = vrcp.f32 %v3857_v36  ;;  %v3914_v41 = vand.u32 2147483648, %v3857_v36  ;;  %v3912_v0 = vand.u32 2147483647, %v3857_v36  ;;  %vm3908_vm10 = vweird.f32 %v3857_v36 }
 0x79d   :  { %v3892_v12 = vadd.f32 %v5100_v54, %v3891_v10 }
 0x79e   :  { %vm3913_vm12 = vcmp.eq.f32.partialorder %v3912_v0, 8.507059e+37 }
 0x79f   :  { %v3896_v15 = vsel %vm3895_vm14, %v5100_v54, %v3892_v12 }
 0x7a0   :  { %v3901_v8 = vsel %vm3898_vm15, %v3900_v61, %v3896_v15 }
 0x7a1   :  { %v3902_v62 = vmul.f32 %v6058_v26, %v3901_v8  ;;  %4218 = vmatmul.f32.vlgmr.msrb.gmra.mxu3 %v6071_v5  ;;  %v3915_v5 = vor.u32 1.1754944e-38, %v3914_v41 }
 0x7a2   :  { %v5102_v28 = vpop.eup %5101 }
 0x7a3   :  { %v3904_v38 = vmul.f32 %v5102_v28, %v3857_v36  ;;  %v4226_v49 = vsel %vm800_vm8, %v3902_v62, 0  ;;  %vm3909_vm9 = vweird.f32 %v5102_v28 }
 0x7a4   :  { %v4243_v16 = vand.u32 4294901760, %v4226_v49  ;;  %vm3910_vm11 = vmor %vm3908_vm10, %vm3909_vm9 }
 0x7a5   :  { %v3905_v63 = vsub.f32 1.0, %v3904_v38 }
 0x7a6   :  { %4244 = vmatpush.xpose.msra.mxu0 %v4243_v16  ;;  %4320 = vmatpush.xpose.msra.mxu3 %v4243_v16  ;;  %v4270_v22 = vsub.f32 %v4226_v49, %v4243_v16 }
 0x7a7   :  { %v3906_v13 = vmul.f32 %v5102_v28, %v3905_v63 }
 0x7a8   :  { %4297 = vmatpush.xpose.msra.mxu2 %v4270_v22  ;;  %v4271_v26 = vand.u32 4294901760, %v4270_v22 }
 0x7a9   :  { %v3907_v32 = vadd.f32 %v5102_v28, %v3906_v13  ;;  %4250 = vmatmul.f32.vlgmr.msra.gmra.mxu0 %v4249_v14  ;;  %4324 = vmatmul.f32.vlgmr.msra.gmra.mxu3 %v4247_v25 }
 0x7aa   :  { %4346 = vmatpush.xpose.msrb.mxu0 %v4271_v26  ;;  %v4272_v42 = vsub.f32 %v4270_v22, %v4271_v26 }
 0x7ab   :  { %v3911_v48 = vsel %vm3910_vm11, %v5102_v28, %v3907_v32  ;;  %4300 = vmatmul.f32.vlgmr.msra.gmra.mxu2 %v4246_v46 }
 0x7ac   :  { %v3916_v55 = vsel %vm3913_vm12, %v3915_v5, %v3911_v48  ;;  %v4273_v21 = vand.u32 4294901760, %v4272_v42 }
 0x7ad   :  { %v3917_v1 = vmul.f32 %v6062_v45, %v3916_v55 }
 0x7ae   :  { %4274 = vmatpush.xpose.msra.mxu1 %v4273_v21 }
 0x7af   :  { %v4378_v20 = vsel %vm800_vm8, %v3917_v1, 0 }
 0x7b0   :  { %v4395_v37 = vand.u32 4294901760, %v4378_v20 }
 0x7b1   :  { %4276 = vmatmul.f32.vlgmr.msra.gmra.mxu1 %v6083_v60  ;;  %4348 = vmatmul.f32.vlgmr.msrb.gmra.mxu0 %v6083_v60 }
 0x7b2   :  { %4368 = vmatpush.xpose.msrb.mxu1 %v4243_v16  ;;  %4396 = vmatpush.xpose.msrb.mxu2 %v4395_v37  ;;  %v4422_v47 = vsub.f32 %v4378_v20, %v4395_v37 }
 0x7b4   :  { %4449 = vmatpush.xpose.msra.mxu0 %v4422_v47  ;;  %v4423_v19 = vand.u32 4294901760, %v4422_v47 }
 0x7b5   :  { %4402 = vmatmul.f32.vlgmr.msrb.gmra.mxu2 %v4401_v4 }
 0x7b6   :  { %4472 = vmatpush.xpose.msra.mxu1 %v4395_v37  ;;  %4498 = vmatpush.xpose.msra.mxu2 %v4423_v19  ;;  %v4424_v27 = vsub.f32 %v4422_v47, %v4423_v19 }
 0x7b8   :  { %v4425_v45 = vand.u32 4294901760, %v4424_v27  ;;  %v6567_v27 = vld [vmem:[#allocation38_spill] sm:$0xff] }
 0x7b9   :  { %4370 = vmatmul.f32.vlgmr.msrb.gmra.mxu1 %v6083_v60  ;;  %4452 = vmatmul.f32.vlgmr.msra.gmra.mxu0 %v4398_v50 }
 0x7ba   :  { %4426 = vmatpush.xpose.msrb.mxu3 %v4425_v45 }
 0x7bd   :  { %4428 = vmatmul.f32.vlgmr.msrb.gmra.mxu3 %v4397_v7  ;;  %4500 = vmatmul.f32.vlgmr.msra.gmra.mxu2 %v4397_v7 }
 0x7be   :  { %4520 = vmatpush.xpose.msra.mxu3 %v4395_v37 }
 0x7c1   :  { %4476 = vmatmul.f32.vlgmr.msra.gmra.mxu1 %v4399_v43 }
 0x7c5   :  { %4522 = vmatmul.f32.vlgmr.msra.gmra.mxu3 %v4397_v7 }
 0x7f6   :  { %v3947_v17 = vpop.f32.mrf.mxu0 }
 0x7fc   :  { %v4021_v57 = vpop.f32.mrf.mxu3 }
 0x7fe   :  { %v3973_v35 = vpop.f32.mrf.mxu1  ;;  %v3997_v44 = vpop.f32.mrf.mxu2 }
 0x7ff   :  { %v4045_v31 = vpop.f32.mrf.mxu0  ;;  %v3974_v60 = vadd.f32 %v3973_v35, %v3947_v17  ;;  %v6568_v35 = vld [vmem:[#allocation42_spill] sm:$0xff]  ;;  %v6569_v17 = vld [vmem:[#allocation39_spill] sm:$0xff] }
 0x801   :  { %v3998_v11 = vadd.f32 %v3997_v44, %v3974_v60 }
 0x803   :  { %v4022_v12 = vadd.f32 %v4021_v57, %v3998_v11  ;;  %v6570_v57 = vld [vmem:[#allocation37_spill] sm:$0xff] }
 0x805   :  { %v4046_v40 = vadd.f32 %v4045_v31, %v4022_v12  ;;  %v6572_v31 = vld [vmem:[#allocation46_spill] sm:$0xff]  ;;  %v2407_v12 = vpop.trf.xlu2 }
 0x806   :  { %v4067_v34 = vpop.f32.mrf.mxu1 }
 0x807   :  { %v4068_v49 = vadd.f32 %v4067_v34, %v4046_v40  ;;  %v6571_v34 = vld [vmem:[#allocation41_spill] sm:$0xff] }
 0x809   :  { %v4544_v13 = vand.u32 4294901760, %v4068_v49 }
 0x80b   :  { %v4610_v42 = vsub.f32 %v4068_v49, %v4544_v13 }
 0x80d   :  { %v4611_v20 = vand.u32 4294901760, %v4610_v42 }
 0x80e   :  { %v4173_v30 = vpop.f32.mrf.mxu1 }
 0x80f   :  { %v4612_v19 = vsub.f32 %v4610_v42, %v4611_v20 }
 0x810   :  { %v4149_v52 = vpop.f32.mrf.mxu0 }
 0x811   :  { %v4613_v44 = vand.u32 4294901760, %v4612_v19 }
 0x814   :  { %v4099_v23 = vpop.f32.mrf.mxu2 }
 0x81c   :  { %v4125_v39 = vpop.f32.mrf.mxu3  ;;  %v4197_v9 = vpop.f32.mrf.mxu2 }
 0x81d   :  { %v4126_v54 = vadd.f32 %v4125_v39, %v4099_v23  ;;  %v6573_v23 = vld [vmem:[#allocation43_spill] sm:$0xff]  ;;  %v6574_v39 = vld [vmem:[#allocation40_spill] sm:$0xff] }
 0x81f   :  { %v4150_v51 = vadd.f32 %v4149_v52, %v4126_v54  ;;  %v6576_v52 = vld [vmem:[#allocation50_spill] sm:$0xff]  ;;  %v6582_v54 = vld [vmem:[#allocation48_spill] sm:$0xff] }
 0x821   :  { %v4174_v36 = vadd.f32 %v4173_v30, %v4150_v51  ;;  %v6575_v30 = vld [vmem:[#allocation45_spill] sm:$0xff] }
 0x823   :  { %v4198_v61 = vadd.f32 %v4197_v9, %v4174_v36  ;;  %v6577_v9 = vld [vmem:[#allocation47_spill] sm:$0xff] }
 0x824   :  { %v4219_v6 = vpop.f32.mrf.mxu3 }
 0x825   :  { %v4220_v2 = vadd.f32 %v4219_v6, %v4198_v61  ;;  %v6578_v6 = vld [vmem:[#allocation44_spill] sm:$0xff] }
 0x826   :  { %v4251_v33 = vpop.f32.mrf.mxu0 }
 0x827   :  { %v4542_v41 = vand.u32 4294901760, %v4220_v2 }
 0x829   :  { %v4604_v32 = vsub.f32 %v4220_v2, %v4542_v41 }
 0x82b   :  { %v4605_v21 = vand.u32 4294901760, %v4604_v32 }
 0x82c   :  { %v4325_v29 = vpop.f32.mrf.mxu3 }
 0x82d   :  { %v4606_v47 = vsub.f32 %v4604_v32, %v4605_v21 }
 0x82e   :  { %v4277_v3 = vpop.f32.mrf.mxu1  ;;  %v4301_v18 = vpop.f32.mrf.mxu2 }
 0x82f   :  { %v4278_v59 = vadd.f32 %v4277_v3, %v4251_v33  ;;  %v4349_v46 = vpop.f32.mrf.mxu0  ;;  %v4607_v45 = vand.u32 4294901760, %v4606_v47  ;;  %v6579_v33 = vld [vmem:[#allocation49_spill] sm:$0xff]  ;;  %v6580_v3 = vld [vmem:[#allocation52_spill] sm:$0xff] }
 0x831   :  { %v4302_v56 = vadd.f32 %v4301_v18, %v4278_v59  ;;  %v6581_v59 = vld [vmem:[#allocation51_spill] sm:$0xff] }
 0x833   :  { %v4326_v10 = vadd.f32 %v4325_v29, %v4302_v56 }
 0x835   :  { %v4350_v25 = vadd.f32 %v4349_v46, %v4326_v10 }
 0x836   :  { %v4371_v58 = vpop.f32.mrf.mxu1 }
 0x837   :  { %v4372_v8 = vadd.f32 %v4371_v58, %v4350_v25  ;;  %v4453_v28 = vpop.f32.mrf.mxu0 }
 0x838   :  { %v4403_v53 = vpop.f32.mrf.mxu2 }
 0x839   :  { %v4540_v16 = vand.u32 4294901760, %v4372_v8 }
 0x83b   :  { %v4598_v0 = vsub.f32 %v4372_v8, %v4540_v16 }
 0x83d   :  { %v4599_v48 = vand.u32 4294901760, %v4598_v0 }
 0x83e   :  { %v4477_v38 = vpop.f32.mrf.mxu1 }
 0x83f   :  { %v4600_v24 = vsub.f32 %v4598_v0, %v4599_v48 }
 0x840   :  { %v4429_v15 = vpop.f32.mrf.mxu3  ;;  %v4501_v14 = vpop.f32.mrf.mxu2 }
 0x841   :  { %v4430_v62 = vadd.f32 %v4429_v15, %v4403_v53  ;;  %v4601_v4 = vand.u32 4294901760, %v4600_v24  ;;  %v6128_v53 = vld [vmem:[%s6424_s3] ss:$0 sm:$0xff] }
 0x842   :  { %v2424_v15 = vadd.f32 %v6128_v53, %v2407_v12 }
 0x843   :  { %v4454_v7 = vadd.f32 %v4453_v28, %v4430_v62 }
 0x844   :  { %v2426_v8 = vrot.slane %v2424_v15, 1  ;;  %v2427_v28 = vrot.slane %v2424_v15, 2  ;;  %v2428_v2 = vrot.slane %v2424_v15, 3  ;;  %v2430_v49 = vrot.slane %v2424_v15, 5 }
 0x845   :  { %v4478_v63 = vadd.f32 %v4477_v38, %v4454_v7  ;;  %v2429_v7 = vrot.slane %v2424_v15, 4 }
 0x847   :  { %v4502_v22 = vadd.f32 %v4501_v14, %v4478_v63  ;;  %v2432_v63 = vrot.slane %v2424_v15, 7 }
 0x848   :  { %v4523_v50 = vpop.f32.mrf.mxu3 }
 0x849   :  { %v4524_v26 = vadd.f32 %v4523_v50, %v4502_v22  ;;  %v6144_v50 = vld [vmem:[%s6421_s0 + $0x2] sm:$0x3] }
 0x84b   :  { %v4538_v5 = vand.u32 4294901760, %v4524_v26 }
 0x84d   :  { %v4592_v43 = vsub.f32 %v4524_v26, %v4538_v5  ;;  %4539 = vmatpush.msrb.mxu0 %v4538_v5  ;;  %4690 = vmatpush.msrb.mxu3 %v4538_v5 }
 0x84f   :  { %v4593_v55 = vand.u32 4294901760, %v4592_v43  ;;  %4541 = vmatpush.msrb.mxu0 %v4540_v16  ;;  %4646 = vmatpush.msrb.mxu2 %v4592_v43 }
 0x850   :  { %4692 = vmatpush.msrb.mxu3 %v4540_v16 }
 0x851   :  { %v4594_v1 = vsub.f32 %v4592_v43, %v4593_v55  ;;  %4543 = vmatpush.msrb.mxu0 %v4542_v41  ;;  %4649 = vmatpush.msrb.mxu2 %v4598_v0  ;;  %v6152_v0 = vld [vmem:[%s6421_s0 + $0x4] sm:$0x3]  ;;  %v6168_v43 = vld [vmem:[%s6421_s0 + $0x8] sm:$0x3] }
 0x852   :  { %4694 = vmatpush.msrb.mxu3 %v4542_v41  ;;  %v6155_v26 = vadd.f32 %v6152_v0, %v2427_v28 }
 0x853   :  { %4545 = vmatpush.msrb.mxu0 %v4544_v13  ;;  %4652 = vmatpush.msrb.mxu2 %v4604_v32  ;;  %v4595_v37 = vand.u32 4294901760, %v4594_v1  ;;  %v6184_v1 = vld [vmem:[%s6421_s0 + $0xc] sm:$0x3] }
 0x854   :  { %4696 = vmatpush.msrb.mxu3 %v4544_v13  ;;  %4551 = vmatmul.f32.vlgmr.msrb.gmra.mxu0 %v6568_v35  ;;  %v2459_v19 = vrot.slane %v6155_v26, 6 }
 0x855   :  { %4737 = vmatpush.msra.mxu0 %v4593_v55  ;;  %4596 = vmatpush.msrb.mxu1 %v4595_v37  ;;  %v6176_v55 = vld [vmem:[%s6421_s0 + $0xa] sm:$0x3]  ;;  %v6192_v37 = vld [vmem:[%s6421_s0 + $0xe] sm:$0x3] }
 0x856   :  { %4655 = vmatpush.msrb.mxu2 %v4610_v42  ;;  %4700 = vmatmul.f32.vlgmr.msrb.gmra.mxu3 %v6569_v17  ;;  %v6195_v47 = vadd.f32 %v6192_v37, %v2432_v63  ;;  %v5154_v63 = vmov 32.0  }
 0x857   :  { %4741 = vmatpush.msra.mxu0 %v4599_v48  ;;  %4658 = vmatmul.f32.vlgmr.msrb.gmra.mxu2 %v6567_v27  ;;  %v6171_v48 = vadd.f32 %v6168_v43, %v2429_v7  ;;  %5103 = vrcp.f32 %v5154_v63 }
 0x858   :  { %4602 = vmatpush.msrb.mxu1 %v4601_v4 }
 0x859   :  { %4745 = vmatpush.msra.mxu0 %v4605_v21  ;;  %v6179_v21 = vadd.f32 %v6176_v55, %v2430_v49  ;;  %v2463_v35 = vrot.slane %v6171_v48, 4 }
 0x85a   :  { %4608 = vmatpush.msrb.mxu1 %v4607_v45 }
 0x85b   :  { %4749 = vmatpush.msra.mxu0 %v4611_v20 }
 0x85c   :  { %4614 = vmatpush.msrb.mxu1 %v4613_v44  ;;  %4559 = vmatmul.f32.gmra.mxu0 %v6572_v31 }
 0x85d   :  { %4616 = vmatmul.f32.vlgmr.msrb.gmra.mxu1 %v6570_v57 }
 0x85e   :  { %4780 = vmatpush.msra.mxu1 %v4538_v5  ;;  %4706 = vmatmul.f32.gmra.mxu3 %v6573_v23  ;;  %v6160_v5 = vld [vmem:[%s6421_s0 + $0x6] sm:$0x3] }
 0x85f   :  { %4663 = vmatmul.f32.gmra.mxu2 %v6571_v34  ;;  %v6163_v42 = vadd.f32 %v6160_v5, %v2428_v2  ;;  %v2465_v34 = vrot.slane %v6179_v21, 3 }
 0x860   :  { %4782 = vmatpush.msra.mxu1 %v4540_v16  ;;  %v2431_v16 = vrot.slane %v2424_v15, 6 }
 0x861   :  { %v2461_v45 = vrot.slane %v6163_v42, 5 }
 0x862   :  { %4784 = vmatpush.msra.mxu1 %v4542_v41  ;;  %v6136_v41 = vld [vmem:[%s6421_s0] sm:$0x3]  ;;  %v6187_v24 = vadd.f32 %v6184_v1, %v2431_v16 }
 0x863   :  { %v6139_v22 = vadd.f32 %v6136_v41, %v2424_v15 }
 0x864   :  { %4786 = vmatpush.msra.mxu1 %v4544_v13  ;;  %4567 = vmatmul.f32.gmra.mxu0 %v6576_v52  ;;  %v6147_v13 = vadd.f32 %v6144_v50, %v2426_v8  ;;  %v2467_v23 = vrot.slane %v6187_v24, 2  ;;  %v2469_v52 = vrot.slane %v6195_v47, 1 }
 0x865   :  { %4620 = vmatmul.f32.gmra.mxu1 %v6574_v39 }
 0x866   :  { %4712 = vmatmul.f32.gmra.mxu3 %v6577_v9  ;;  %v2457_v4 = vrot.slane %v6147_v13, 7 }
 0x867   :  { %4668 = vmatmul.f32.gmra.mxu2 %v6575_v30 }
 0x86c   :  { %4575 = vmatmul.f32.gmra.mxu0 %v6580_v3 }
 0x86d   :  { %4624 = vmatmul.f32.gmra.mxu1 %v6578_v6 }
 0x86e   :  { %4718 = vmatmul.f32.gmra.mxu3 %v6581_v59 }
 0x86f   :  { %4673 = vmatmul.f32.gmra.mxu2 %v6579_v33 }
 0x874   :  { %4751 = vmatmul.f32.vlgmr.msra.gmra.mxu0 %v6570_v57 }
 0x875   :  { %4628 = vmatmul.f32.gmra.mxu1 %v6582_v54 }
 0x87c   :  { %4755 = vmatmul.f32.gmra.mxu0 %v6574_v39 }
 0x87d   :  { %4788 = vmatmul.f32.vlgmr.msra.gmra.mxu1 %v6570_v57  ;;  %v2458_v57 = vsel %vm126_vm0, %v2457_v4, %v6139_v22 }
 0x87e   :  { %v2460_v31 = vsel %vm129_vm1, %v2459_v19, %v2458_v57 }
 0x87f   :  { %v2462_v30 = vsel %vm132_vm2, %v2461_v45, %v2460_v31 }
 0x884   :  { %4759 = vmatmul.f32.gmra.mxu0 %v6578_v6 }
 0x885   :  { %4792 = vmatmul.f32.gmra.mxu1 %v6574_v39 }
 0x88c   :  { %4763 = vmatmul.f32.gmra.mxu0 %v6582_v54 }
 0x88d   :  { %4796 = vmatmul.f32.gmra.mxu1 %v6578_v6  ;;  %v2464_v6 = vsel %vm135_vm3, %v2463_v35, %v2462_v30 }
 0x88e   :  { %v2466_v59 = vsel %vm138_vm4, %v2465_v34, %v2464_v6 }
 0x895   :  { %4800 = vmatmul.f32.gmra.mxu1 %v6582_v54  ;;  %v2468_v54 = vsel %vm141_vm5, %v2467_v23, %v2466_v59 }
 0x8d1   :  { %v4552_v18 = vpop.f32.mrf.mxu0 }
 0x8d9   :  { %v4560_v56 = vpop.f32.mrf.mxu0  ;;  %v4701_v36 = vpop.f32.mrf.mxu3 }
 0x8da   :  { %v4617_v60 = vpop.f32.mrf.mxu1  ;;  %v4659_v11 = vpop.f32.mrf.mxu2 }
 0x8db   :  { %v4618_v58 = vadd.f32 %v4617_v60, %v4552_v18  ;;  %v2470_v60 = vsel %vm144_vm6, %v2469_v52, %v2468_v54 }
 0x8dd   :  { %v4660_v61 = vadd.f32 %v4659_v11, %v4618_v58  ;;  %v2472_v11 = vsel %vm146_vm7, %v2470_v60, 0.0 }
 0x8de   :  { %2473 = vadd.xlane.f32.xlu1 %v2472_v11 }
 0x8df   :  { %v4702_v38 = vadd.f32 %v4701_v36, %v4660_v61 }
 0x8e1   :  { %v4568_v29 = vpop.f32.mrf.mxu0  ;;  %v4707_v32 = vpop.f32.mrf.mxu3 }
 0x8e2   :  { %v4621_v51 = vpop.f32.mrf.mxu1  ;;  %v4664_v40 = vpop.f32.mrf.mxu2 }
 0x8e3   :  { %v4622_v14 = vadd.f32 %v4621_v51, %v4560_v56 }
 0x8e5   :  { %v4665_v44 = vadd.f32 %v4664_v40, %v4622_v14  ;;  %v5104_v14 = vpop.eup %5103 }
 0x8e6   :  { %vm2480_vm8 = vweird.f32 %v5104_v14 }
 0x8e7   :  { %v4708_v3 = vadd.f32 %v4707_v32, %v4665_v44  ;;  %v2476_v32 = vmul.f32 32.0, %v5104_v14 }
 0x8e9   :  { %v6123_v10 = vpop.f32.mrf.mxu0  ;;  %v4713_v51 = vpop.f32.mrf.mxu3 }
 0x8ea   :  { %v4625_v46 = vpop.f32.mrf.mxu1  ;;  %v4669_v9 = vpop.f32.mrf.mxu2 }
 0x8eb   :  { %v4626_v33 = vadd.f32 %v4625_v46, %v4568_v29 }
 0x8ed   :  { %v4670_v36 = vadd.f32 %v4669_v9, %v4626_v33 }
 0x8ef   :  { %v4714_v46 = vadd.f32 %v4713_v51, %v4670_v36 }
 0x8f1   :  { %v4752_v62 = vpop.f32.mrf.mxu0  ;;  %v4719_v28 = vpop.f32.mrf.mxu3 }
 0x8f2   :  { %v6130_v25 = vpop.f32.mrf.mxu1  ;;  %v4753_v20 = vadd.f32 %v4752_v62, %v4702_v38  ;;  %v4674_v61 = vpop.f32.mrf.mxu2 }
 0x8f3   :  { %v4630_v29 = vadd.f32 %v6130_v25, %v6123_v10 }
 0x8f5   :  { %v4675_v62 = vadd.f32 %v4674_v61, %v4630_v29 }
 0x8f7   :  { %v4720_v7 = vadd.f32 %v4719_v28, %v4675_v62 }
 0x8f9   :  { %v4756_v39 = vpop.f32.mrf.mxu0 }
 0x8fa   :  { %v4789_v27 = vpop.f32.mrf.mxu1  ;;  %v4757_v18 = vadd.f32 %v4756_v39, %v4708_v3 }
 0x8fb   :  { %v4790_v17 = vadd.f32 %v4789_v27, %v4753_v20  ;;  %v2477_v20 = vsub.f32 1.0, %v2476_v32 }
 0x8fd   :  { %4804 = vxpose.xlu0.b32.start [1/4] (short) (narrow) %v4790_v17, 8  ;;  %v2478_v10 = vmul.f32 %v5104_v14, %v2477_v20 }
 0x8ff   :  { %v2479_v25 = vadd.f32 %v5104_v14, %v2478_v10 }
 0x901   :  { %v4760_v12 = vpop.f32.mrf.mxu0  ;;  %v6215_v4 = vsel %vm2480_vm8, %v5104_v14, %v2479_v25 }
 0x902   :  { %v4793_v56 = vpop.f32.mrf.mxu1  ;;  %v4761_v15 = vadd.f32 %v4760_v12, %v4714_v46 }
 0x903   :  { %v4794_v58 = vadd.f32 %v4793_v56, %v4757_v18 }
 0x905   :  { %4805 = vxpose.xlu0.b32.cont [2/4] (short) (narrow) %v4794_v58, 8 }
 0x909   :  { %v4764_v2 = vpop.f32.mrf.mxu0 }
 0x90a   :  { %v4797_v40 = vpop.f32.mrf.mxu1  ;;  %v4765_v38 = vadd.f32 %v4764_v2, %v4720_v7 }
 0x90b   :  { %v4798_v8 = vadd.f32 %v4797_v40, %v4761_v15 }
 0x90d   :  { %4806 = vxpose.xlu0.b32.cont [3/4] (short) (narrow) %v4798_v8, 8 }
 0x912   :  { %v4801_v49 = vpop.f32.mrf.mxu1 }
 0x913   :  { %v4802_v16 = vadd.f32 %v4801_v49, %v4765_v38 }
 0x915   :  { %4807 = vxpose.xlu0.b32.end [4/4] (short) (narrow) %v4802_v16, 8 }
 0x951   :  { %v2474_v19 = vpop.xlane.xlu1 %2473 }
 0x952   :  { %v2482_v27 = vmul.f32 %v6215_v4, %v2474_v19 }
 0x954   :  { %v2484_v45 = vrot.slane %v2482_v27, 1  ;;  %v2485_v35 = vrot.slane %v2482_v27, 2  ;;  %v2486_v44 = vrot.slane %v2482_v27, 3  ;;  %v6222_v57 = vsub.f32 %v6139_v22, %v2482_v27 }
 0x955   :  { %v2487_v30 = vrot.slane %v2482_v27, 4  ;;  %v2488_v52 = vrot.slane %v2482_v27, 5  ;;  %v2489_v46 = vrot.slane %v2482_v27, 6 }
 0x956   :  { %v6219_v17 = vsub.f32 %v6147_v13, %v2484_v45  ;;  %v6225_v34 = vsub.f32 %v6155_v26, %v2485_v35  ;;  %v6231_v9 = vsub.f32 %v6163_v42, %v2486_v44  ;;  %v2507_v13 = vmul.f32 %v6222_v57, %v6222_v57 }
 0x957   :  { %v6247_v36 = vsub.f32 %v6171_v48, %v2487_v30  ;;  %v6255_v15 = vsub.f32 %v6179_v21, %v2488_v52  ;;  %v6264_v49 = vsub.f32 %v6187_v24, %v2489_v46 }
 0x958   :  { %v2508_v23 = vmul.f32 %v6219_v17, %v6219_v17  ;;  %v2509_v22 = vmul.f32 %v6225_v34, %v6225_v34 }
 0x959   :  { %v2511_v62 = vmul.f32 %v6247_v36, %v6247_v36  ;;  %v2512_v63 = vmul.f32 %v6255_v15, %v6255_v15  ;;  %v2513_v24 = vmul.f32 %v6264_v49, %v6264_v49 }
 0x95a   :  { %v2525_v61 = vrot.slane %v2509_v22, 6 }
 0x95b   :  { %v2529_v20 = vrot.slane %v2511_v62, 4  ;;  %v2531_v19 = vrot.slane %v2512_v63, 3  ;;  %v2533_v44 = vrot.slane %v2513_v24, 2 }
 0x9a1   :  { %v4820_v31 = vpop.trf.xlu0 }
 0x9a2   :  { %v4836_v39 = vadd.f32 %v6128_v53, %v4820_v31  ;;  %v2523_v53 = vrot.slane %v2508_v23, 7 }
 0x9a4   :  { %v4838_v6 = vrot.slane %v4836_v39, 7  ;;  %v4839_v26 = vrot.slane %v4836_v39, 1  ;;  %v4840_v33 = vrot.slane %v4836_v39, 2  ;;  %v4841_v3 = vrot.slane %v4836_v39, 3 }
 0x9a5   :  { %v4842_v59 = vrot.slane %v4836_v39, 4  ;;  %v4843_v54 = vrot.slane %v4836_v39, 5  ;;  %v6238_v18 = vadd.f32 %v6144_v50, %v4836_v39  ;;  %v2524_v48 = vsel %vm126_vm0, %v2523_v53, %v2507_v13 }
 0x9a6   :  { %v4853_v60 = vadd.f32 %v6136_v41, %v4838_v6  ;;  %v4855_v42 = vadd.f32 %v6152_v0, %v4839_v26  ;;  %v4856_v56 = vadd.f32 %v6160_v5, %v4840_v33  ;;  %v4857_v51 = vadd.f32 %v6168_v43, %v4841_v3 }
 0x9a7   :  { %v4858_v11 = vadd.f32 %v6176_v55, %v4842_v59  ;;  %v4869_v58 = vrot.slane %v6238_v18, 7  ;;  %v4859_v12 = vadd.f32 %v6184_v1, %v4843_v54  ;;  %v2510_v41 = vmul.f32 %v6231_v9, %v6231_v9 }
 0x9a8   :  { %v4871_v50 = vrot.slane %v4855_v42, 6  ;;  %v4873_v29 = vrot.slane %v4856_v56, 5  ;;  %v2490_v5 = vrot.slane %v2482_v27, 7  ;;  %v4875_v55 = vrot.slane %v4857_v51, 4 }
 0x9a9   :  { %v4870_v0 = vsel %vm129_vm1, %v4869_v58, %v4853_v60  ;;  %v4877_v40 = vrot.slane %v4858_v11, 3  ;;  %v4844_v8 = vrot.slane %v4836_v39, 6  ;;  %v4879_v2 = vrot.slane %v4859_v12, 2 }
 0x9aa   :  { %v4872_v43 = vsel %vm132_vm2, %v4871_v50, %v4870_v0  ;;  %v2527_v7 = vrot.slane %v2510_v41, 5  ;;  %v2526_v21 = vsel %vm129_vm1, %v2525_v61, %v2524_v48  ;;  %v6273_v10 = vsub.f32 %v6195_v47, %v2490_v5 }
 0x9ab   :  { %v4874_v1 = vsel %vm135_vm3, %v4873_v29, %v4872_v43  ;;  %v4860_v32 = vadd.f32 %v6192_v37, %v4844_v8  ;;  %vm4888_vm0 = vcmask 253952  }
 0x9ac   :  { %v4876_v28 = vsel %vm138_vm4, %v4875_v55, %v4874_v1  ;;  %v2528_v25 = vsel %vm132_vm2, %v2527_v7, %v2526_v21  ;;  %v2514_v35 = vmul.f32 %v6273_v10, %v6273_v10 }
 0x9ad   :  { %v4878_v38 = vsel %vm141_vm5, %v4877_v40, %v4876_v28  ;;  %v4881_v27 = vrot.slane %v4860_v32, 1  ;;  %v2530_v45 = vsel %vm135_vm3, %v2529_v20, %v2528_v25 }
 0x9ae   :  { %v4880_v16 = vsel %vm144_vm6, %v4879_v2, %v4878_v38  ;;  %v2532_v37 = vsel %vm138_vm4, %v2531_v19, %v2530_v45  ;;  %v2535_v47 = vrot.slane %v2514_v35, 1 }
 0x9af   :  { %v4885_v14 = vsel %vm4884_vm13, %v4880_v16, 0.0  ;;  %v4889_v31 = vsel %vm4888_vm0, %v4881_v27, 0.0  ;;  %v2534_v23 = vsel %vm141_vm5, %v2533_v44, %v2532_v37 }
 0x9b0   :  { %4886 = vadd.xlane.f32.xlu1 %v4885_v14  ;;  %v2536_v39 = vsel %vm144_vm6, %v2535_v47, %v2534_v23 }
 0x9b1   :  { %v2538_v30 = vsel %vm146_vm7, %v2536_v39, 0.0 }
 0x9b8   :  { %4890 = vadd.xlane.f32.xlu1 %v4889_v31 }
 0x9c0   :  { %2539 = vadd.xlane.f32.xlu1 %v2538_v30 }
 0xa23   :  { %v4887_v52 = vpop.xlane.xlu1 %4886 }
 0xa24   :  { %v4892_v13 = vmul.f32 %v4887_v52, %v6215_v4 }
 0xa26   :  { %v4896_v22 = vrot.slane %v4892_v13, 1  ;;  %v4897_v6 = vrot.slane %v4892_v13, 2  ;;  %v4898_v26 = vrot.slane %v4892_v13, 3  ;;  %v4899_v33 = vrot.slane %v4892_v13, 4 }
 0xa27   :  { %v4900_v3 = vrot.slane %v4892_v13, 5  ;;  %v4901_v59 = vrot.slane %v4892_v13, 6  ;;  %v6287_v54 = vsub.f32 %v4853_v60, %v4892_v13 }
 0xa28   :  { %v6290_v53 = vsub.f32 %v6238_v18, %v4896_v22  ;;  %v6292_v58 = vsub.f32 %v4855_v42, %v4897_v6  ;;  %v6294_v50 = vsub.f32 %v4856_v56, %v4898_v26  ;;  %v6296_v29 = vsub.f32 %v4857_v51, %v4899_v33 }
 0xa29   :  { %v6298_v41 = vsub.f32 %v4858_v11, %v4900_v3  ;;  %v6300_v0 = vsub.f32 %v4859_v12, %v4901_v59  ;;  %v4919_v42 = vmul.f32 %v6287_v54, %v6287_v54 }
 0xa2a   :  { %v4920_v46 = vmul.f32 %v6290_v53, %v6290_v53  ;;  %v4921_v60 = vmul.f32 %v6292_v58, %v6292_v58  ;;  %v4922_v18 = vmul.f32 %v6294_v50, %v6294_v50  ;;  %v4923_v56 = vmul.f32 %v6296_v29, %v6296_v29 }
 0xa2b   :  { %v4891_v5 = vpop.xlane.xlu1 %4890  ;;  %v4924_v11 = vmul.f32 %v6298_v41, %v6298_v41  ;;  %v4925_v43 = vmul.f32 %v6300_v0, %v6300_v0 }
 0xa2c   :  { %v4893_v51 = vmul.f32 %v4891_v5, %v6215_v4  ;;  %v4935_v12 = vrot.slane %v4920_v46, 7  ;;  %v4937_v61 = vrot.slane %v4921_v60, 6  ;;  %v4939_v1 = vrot.slane %v4922_v18, 5  ;;  %v6337_v18 = vld [vmem:[%s6424_s3 + $0x1] ss:$0 sm:$0xff] }
 0xa2d   :  { %v4941_v8 = vrot.slane %v4923_v56, 4  ;;  %v4943_v2 = vrot.slane %v4924_v11, 3  ;;  %v4945_v38 = vrot.slane %v4925_v43, 2 }
 0xa2e   :  { %v4902_v55 = vrot.slane %v4893_v51, 7  ;;  %v4936_v48 = vsel %vm129_vm1, %v4935_v12, %v4919_v42 }
 0xa2f   :  { %v4938_v40 = vsel %vm132_vm2, %v4937_v61, %v4936_v48 }
 0xa30   :  { %v6319_v62 = vsub.f32 %v4860_v32, %v4902_v55  ;;  %v4940_v28 = vsel %vm135_vm3, %v4939_v1, %v4938_v40 }
 0xa31   :  { %v4942_v7 = vsel %vm138_vm4, %v4941_v8, %v4940_v28 }
 0xa32   :  { %v4944_v21 = vsel %vm141_vm5, %v4943_v2, %v4942_v7  ;;  %v4926_v14 = vmul.f32 %v6319_v62, %v6319_v62  ;;  %vm5021_vm5 = vcmask 1040384  }
 0xa33   :  { %v4946_v16 = vsel %vm144_vm6, %v4945_v38, %v4944_v21  ;;  %v2540_v25 = vpop.xlane.xlu1 %2539  ;;  %vm5030_vm6 = vcmask 254976  }
 0xa34   :  { %v4950_v63 = vsel %vm4884_vm13, %v4946_v16, 0.0  ;;  %v4947_v20 = vrot.slane %v4926_v14, 1  ;;  %v2541_v24 = vmul.f32 %v2540_v25, %v6215_v4 }
 0xa35   :  { %4951 = vadd.xlane.f32.xlu1 %v4950_v63 }
 0xa36   :  { %v4953_v32 = vsel %vm4888_vm0, %v4947_v20, 0.0  ;;  %v2542_v19 = vadd.f32 1e-05, %v2541_v24 }
 0xa38   :  { %5105 = vrsqrt.f32 %v2542_v19  ;;  %vm2549_vm2 = vweird.f32 %v2542_v19 }
 0xa3d   :  { %4954 = vadd.xlane.f32.xlu1 %v4953_v32 }
 0xa3e   :  { %v5106_v27 = vpop.eup %5105 }
 0xa3f   :  { %v2544_v45 = vmul.f32 %v5106_v27, %v2542_v19  ;;  %vm2550_vm1 = vweird.f32 %v5106_v27 }
 0xa40   :  { %vm2551_vm3 = vmor %vm2549_vm2, %vm2550_vm1 }
 0xa41   :  { %v2545_v35 = vmul.f32 %v5106_v27, %v2544_v45 }
 0xa43   :  { %v2546_v44 = vmul.f32 0.5, %v2545_v35 }
 0xa45   :  { %v2547_v37 = vsub.f32 1.5, %v2546_v44 }
 0xa47   :  { %v2548_v47 = vmul.f32 %v5106_v27, %v2547_v37 }
 0xa49   :  { %v2552_v30 = vsel %vm2551_vm3, %v5106_v27, %v2548_v47 }
 0xa4a   :  { %v2554_v52 = vrot.slane %v2552_v30, 1  ;;  %v2555_v22 = vrot.slane %v2552_v30, 2  ;;  %v2556_v6 = vrot.slane %v2552_v30, 3  ;;  %v2557_v26 = vrot.slane %v2552_v30, 4 }
 0xa4b   :  { %v2558_v59 = vrot.slane %v2552_v30, 5  ;;  %v2559_v46 = vrot.slane %v2552_v30, 6  ;;  %v2569_v5 = vmul.f32 %v2552_v30, %v6222_v57  ;;  %v2560_v61 = vrot.slane %v2552_v30, 7  ;;  %v6350_v57 = vld [vmem:[%s6424_s3 + $0x2] ss:$0 sm:$0xff]  ;;  %s5155_s3 = smov [#allocation2]  }
 0xa4c   :  { %v2570_v42 = vmul.f32 %v2554_v52, %v6219_v17  ;;  %v2571_v51 = vmul.f32 %v2555_v22, %v6225_v34  ;;  %v2572_v11 = vmul.f32 %v2556_v6, %v6231_v9  ;;  %s5043_s17 = sshll.u32 %s5155_s3, 4  ;;  %s5044_s17 = int_to_ptr.vmem [resolvable:$true] %s5043_s17 }
 0xa4d   :  { %v2574_v43 = vmul.f32 %v2558_v59, %v6255_v15  ;;  %v2575_v55 = vmul.f32 %v2559_v46, %v6264_v49  ;;  %v2578_v17 = vmul.f32 %v6337_v18, %v2569_v5  ;;  %v6358_v49 = vmul.f32 %v2560_v61, %v6273_v10 }
 0xa4e   :  { %v2579_v9 = vmul.f32 %v6337_v18, %v2570_v42  ;;  %v2581_v48 = vmul.f32 %v6337_v18, %v2572_v11 }
 0xa4f   :  { %v2583_v8 = vmul.f32 %v6337_v18, %v2574_v43  ;;  %v2584_v28 = vmul.f32 %v6337_v18, %v2575_v55  ;;  %v2587_v2 = vadd.f32 %v6350_v57, %v2578_v17  ;;  %v2585_v17 = vmul.f32 %v6337_v18, %v6358_v49 }
 0xa50   :  { %v2588_v21 = vadd.f32 %v6350_v57, %v2579_v9  ;;  %v2590_v63 = vadd.f32 %v6350_v57, %v2581_v48 }
 0xaa8   :  { %v4952_v31 = vpop.xlane.xlu1 %4951 }
 0xaa9   :  { %v4956_v23 = vmul.f32 %v4952_v31, %v6215_v4 }
 0xaab   :  { %v4958_v39 = vadd.f32 1e-05, %v4956_v23 }
 0xaad   :  { %5107 = vrsqrt.f32 %v4958_v39  ;;  %vm4966_vm7 = vweird.f32 %v4958_v39 }
 0xab0   :  { %v4955_v13 = vpop.xlane.xlu1 %4954 }
 0xab1   :  { %v4957_v33 = vmul.f32 %v4955_v13, %v6215_v4  ;;  %v2573_v4 = vmul.f32 %v2557_v26, %v6247_v36  ;;  %v2580_v36 = vmul.f32 %v6337_v18, %v2571_v51 }
 0xab3   :  { %v5108_v3 = vpop.eup %5107  ;;  %v6332_v60 = vadd.f32 1e-05, %v4957_v33  ;;  %v2582_v1 = vmul.f32 %v6337_v18, %v2573_v4  ;;  %v2589_v16 = vadd.f32 %v6350_v57, %v2580_v36  ;;  %v2594_v36 = vadd.f32 %v6350_v57, %v2585_v17 }
 0xab4   :  { %v4961_v56 = vmul.f32 %v5108_v3, %v4958_v39  ;;  %vm4967_vm4 = vweird.f32 %v5108_v3 }
 0xab5   :  { %5109 = vrsqrt.f32 %v6332_v60  ;;  %v2591_v10 = vadd.f32 %v6350_v57, %v2582_v1  ;;  %vm4968_vm14 = vmor %vm4966_vm7, %vm4967_vm4  ;;  %vm4976_vm15 = vweird.f32 %v6332_v60 }
 0xab6   :  { %v4962_v12 = vmul.f32 %v5108_v3, %v4961_v56  ;;  %v2592_v56 = vadd.f32 %v6350_v57, %v2583_v8 }
 0xab8   :  { %v4963_v34 = vmul.f32 0.5, %v4962_v12 }
 0xaba   :  { %v4964_v40 = vsub.f32 1.5, %v4963_v34 }
 0xabb   :  { %v5110_v15 = vpop.eup %5109 }
 0xabc   :  { %v4965_v7 = vmul.f32 %v5108_v3, %v4964_v40  ;;  %v4971_v38 = vmul.f32 %v5110_v15, %v6332_v60  ;;  %vm4977_vm9 = vweird.f32 %v5110_v15  ;;  %v2593_v60 = vadd.f32 %v6350_v57, %v2584_v28 }
 0xabd   :  { %vm4978_vm10 = vmor %vm4976_vm15, %vm4977_vm9 }
 0xabe   :  { %v4969_v14 = vsel %vm4968_vm14, %v5108_v3, %v4965_v7  ;;  %v4972_v20 = vmul.f32 %v5110_v15, %v4971_v38 }
 0xabf   :  { %v4982_v32 = vrot.slane %v4969_v14, 1  ;;  %v4983_v25 = vrot.slane %v4969_v14, 2  ;;  %v4984_v24 = vrot.slane %v4969_v14, 3  ;;  %v4985_v19 = vrot.slane %v4969_v14, 4 }
 0xac0   :  { %v4986_v27 = vrot.slane %v4969_v14, 5  ;;  %v4987_v45 = vrot.slane %v4969_v14, 6  ;;  %v4997_v35 = vmul.f32 %v4969_v14, %v6287_v54  ;;  %v4973_v44 = vmul.f32 0.5, %v4972_v20 }
 0xac1   :  { %v4998_v37 = vmul.f32 %v4982_v32, %v6290_v53  ;;  %v4999_v31 = vmul.f32 %v4983_v25, %v6292_v58  ;;  %v5000_v47 = vmul.f32 %v4984_v24, %v6294_v50  ;;  %v5001_v23 = vmul.f32 %v4985_v19, %v6296_v29 }
 0xac2   :  { %v5002_v39 = vmul.f32 %v4986_v27, %v6298_v41  ;;  %v5003_v30 = vmul.f32 %v4987_v45, %v6300_v0  ;;  %v5005_v52 = vmul.f32 %v6337_v18, %v4997_v35  ;;  %v4974_v13 = vsub.f32 1.5, %v4973_v44 }
 0xac3   :  { %v5006_v22 = vmul.f32 %v6337_v18, %v4998_v37  ;;  %v5007_v54 = vmul.f32 %v6337_v18, %v4999_v31  ;;  %v5008_v6 = vmul.f32 %v6337_v18, %v5000_v47  ;;  %v5009_v53 = vmul.f32 %v6337_v18, %v5001_v23 }
 0xac4   :  { %v5010_v58 = vmul.f32 %v6337_v18, %v5002_v39  ;;  %v5011_v50 = vmul.f32 %v6337_v18, %v5003_v30  ;;  %v5013_v29 = vadd.f32 %v6350_v57, %v5005_v52  ;;  %v4975_v41 = vmul.f32 %v5110_v15, %v4974_v13 }
 0xac5   :  { %v5014_v0 = vadd.f32 %v6350_v57, %v5006_v22  ;;  %v5015_v26 = vadd.f32 %v6350_v57, %v5007_v54  ;;  %v5016_v33 = vadd.f32 %v6350_v57, %v5008_v6  ;;  %v5017_v3 = vadd.f32 %v6350_v57, %v5009_v53 }
 0xac6   :  { %v5018_v59 = vadd.f32 %v6350_v57, %v5010_v58  ;;  %v5019_v46 = vadd.f32 %v6350_v57, %v5011_v50  ;;  %v5022_v5 = vsel %vm5021_vm5, %v2587_v2, %v5013_v29  ;;  %v4979_v42 = vsel %vm4978_vm10, %v5110_v15, %v4975_v41 }
 0xac7   :  { %v5023_v51 = vsel %vm5021_vm5, %v2588_v21, %v5014_v0  ;;  %v5024_v11 = vsel %vm5021_vm5, %v2589_v16, %v5015_v26  ;;  %v5025_v4 = vsel %vm5021_vm5, %v2590_v63, %v5016_v33  ;;  %5031 = vst.msk [vmem:[#allocation2] sm:$0x3] %vm5030_vm6, %v5022_v5  ;;  %v5026_v12 = vsel %vm5021_vm5, %v2591_v10, %v5017_v3 }
 0xac8   :  { %5032 = vst.msk [vmem:[#allocation2 + $0x2] sm:$0x3] %vm5030_vm6, %v5023_v51  ;;  %v4988_v61 = vrot.slane %v4979_v42, 7  ;;  %v5027_v43 = vsel %vm5021_vm5, %v2592_v56, %v5018_v59  ;;  %v5028_v55 = vsel %vm5021_vm5, %v2593_v60, %v5019_v46 }
 0xac9   :  { %5033 = vst.msk [vmem:[#allocation2 + $0x4] sm:$0x3] %vm5030_vm6, %v5024_v11 }
 0xaca   :  { %5034 = vst.msk [vmem:[#allocation2 + $0x6] sm:$0x3] %vm5030_vm6, %v5025_v4  ;;  %v5004_v34 = vmul.f32 %v4988_v61, %v6319_v62 }
 0xacb   :  { %5035 = vst.msk [vmem:[#allocation2 + $0x8] sm:$0x3] %vm5030_vm6, %v5026_v12 }
 0xacc   :  { %5036 = vst.msk [vmem:[#allocation2 + $0xa] sm:$0x3] %vm5030_vm6, %v5027_v43  ;;  %v5012_v9 = vmul.f32 %v6337_v18, %v5004_v34 }
 0xacd   :  { %5037 = vst.msk [vmem:[#allocation2 + $0xc] sm:$0x3] %vm5030_vm6, %v5028_v55 }
 0xace   :  { %v5020_v48 = vadd.f32 %v6350_v57, %v5012_v9 }
 0xad0   :  { %v5029_v62 = vsel %vm5021_vm5, %v2594_v36, %v5020_v48 }
 0xad1   :  { %5038 = vst.msk [vmem:[#allocation2 + $0xe] sm:$0x3] %vm5030_vm6, %v5029_v62 }
 0xad2   :  { %5051 = dma.vmem_to_hbm [thread:$0]  %s5044_s17, 256, %s5046_s20, [#allocation3], %s5156_s21, %s5156_s21, %s5157_s22  }
 0xad3   :  { %5151 = dma.done.wait [#allocation3], 256  }
 0xad4   :  { %5152 = vsyncadd [#allocation3], 4294967040 }
 0xad5   :  { %5056 = vsyncpa [#allocation3], 1 }

</bundles_post_ra>
